<compile_context>
chip_gen: v7x
topology: tpu7x:2x2x1
jax: 0.10.0
libtpu: 0.0.40
codegen_flags: <defaults>
</compile_context>

<pallas_src>
import jax
import jax.numpy as jnp
from jax.experimental import pallas as pl
from jax.experimental.pallas import tpu as pltpu

# ----- model hyper-parameters (consistent with TransformerModel.__init__) -----
VOCAB_SIZE = 100
EMBED_DIM = 32
NUM_HEADS = 4
HIDDEN_DIM = 64
NUM_LAYERS = 2
NUM_CLASSES = 5
HEAD_DIM = EMBED_DIM // NUM_HEADS
CLS_HIDDEN = HIDDEN_DIM // 2
GRAD_MULT = 4.0
LN_EPS = 1e-5
MAX_POS = 2000
PAD_C = 128          # lane-dense classifier output width (>= NUM_CLASSES)


def _layernorm(x, w, b):
    mu = jnp.mean(x, axis=-1, keepdims=True)
    xc = x - mu
    var = jnp.mean(xc * xc, axis=-1, keepdims=True)
    return xc * jax.lax.rsqrt(var + LN_EPS) * w + b


def _gelu(x):
    # TODO(synk): PyTorch 'gelu' is the exact erf form; tanh approximation kept
    # for a Mosaic-safe EUP lowering (deviation ~1e-3).
    c = 0.7978845608028654  # sqrt(2/pi)
    return 0.5 * x * (1.0 + jnp.tanh(c * (x + 0.044715 * x * x * x)))


def _softmax_last(x):
    m = jnp.max(x, axis=-1, keepdims=True)
    e = jnp.exp(x - m)
    # denominator >= 1, approx reciprocal rides the EUP slot for free
    return e * pl.reciprocal(jnp.sum(e, axis=-1, keepdims=True), approx=True)


def _mm(a, b):
    # MXU matmul: bf16 operands, f32 accumulation.
    return jnp.dot(a.astype(jnp.bfloat16), b.astype(jnp.bfloat16),
                   preferred_element_type=jnp.float32)


def _bdot_qk(q, k):
    # (BH, S, hd) x (BH, S, hd) -> (BH, S, S), heads batched in one dot_general.
    return jnp.einsum("bqd,bkd->bqk",
                      q.astype(jnp.bfloat16), k.astype(jnp.bfloat16),
                      preferred_element_type=jnp.float32)


def _bdot_pv(p, v):
    # (BH, S, S) x (BH, S, hd) -> (BH, S, hd)
    return jnp.einsum("bqk,bkd->bqd",
                      p.astype(jnp.bfloat16), v.astype(jnp.bfloat16),
                      preferred_element_type=jnp.float32)


def transformer_kernel(
    xe_ref, bias_ref, keep_ref,
    lne_w_ref, lne_b_ref,
    ln1_w_ref, ln1_b_ref, wqkv_ref, bqkv_ref, wo_ref, bo_ref,
    ln2_w_ref, ln2_b_ref, w1_ref, b1_ref, w2_ref, b2_ref,
    lnf_w_ref, lnf_b_ref,
    wa_ref, ba_ref,
    wc1_ref, bc1_ref, lnc_w_ref, lnc_b_ref, wc2_ref, bc2_ref,
    out_ref,
):
    BT, S, E = xe_ref.shape
    L = wqkv_ref.shape[0]
    M = BT * S
    H = NUM_HEADS
    HD = HEAD_DIM
    scale = 1.0 / (HD ** 0.5)

    # Fold batch tile into the matmul M dimension.
    h = xe_ref[...].reshape(M, E)                               # (M, E)
    keep = keep_ref[...].reshape(M, 1)                          # (M, 1)
    bias4 = bias_ref[...][None]                                 # (1, BT, 1, S) -> bcast over heads

    h = _layernorm(h, lne_w_ref[...], lne_b_ref[...])

    # TODO(synk): tile the KV axis (flash-style online softmax) before S grows
    # toward MAX_POS -- materialized (S,S) scores blow past v7x's 64 MiB VMEM
    # around S ~ 1-2k.
    for l in range(L):                                          # static (NUM_LAYERS)
        layer_in = h

        # ---- self-attention block (norm_first) ----
        hn = _layernorm(h, ln1_w_ref[l], ln1_b_ref[l])
        # wqkv columns are pre-permuted to [head][q|k|v][dim] order in the wrapper.
        qkv = (_mm(hn, wqkv_ref[l]) + bqkv_ref[l]).reshape(BT, S, 3 * E)
        # Stack heads onto the leading axis with ONE concat of H 24-lane slices.
        # NOTE: a two-batch-dim einsum ('bqhd,bkhd->bhqk') would avoid this
        # relayout but multi-batch-dim dot_general is not reliably lowered by
        # Mosaic; single-leading-batch-dim 3-D einsums are used instead.
        stacked = jnp.concatenate(
            [qkv[:, :, hh * 3 * HD:(hh + 1) * 3 * HD] for hh in range(H)], axis=0)
        q_bh = stacked[:, :, 0:HD] * scale                      # fold 1/sqrt(hd) into Q once
        k_bh = stacked[:, :, HD:2 * HD]
        v_bh = stacked[:, :, 2 * HD:3 * HD]

        scores = _bdot_qk(q_bh, k_bh)                           # (H*BT, S, S)
        # Broadcast key-padding bias over heads via leading-dim views (no copies).
        scores = (scores.reshape(H, BT, S, S) + bias4).reshape(H * BT, S, S)
        p = _softmax_last(scores)
        ctx = _bdot_pv(p, v_bh)                                 # (H*BT, S, HD)

        # Concat heads back on the lane axis, single output projection.
        attn_cat = jnp.concatenate(
            [ctx[hh * BT:(hh + 1) * BT] for hh in range(H)], axis=-1).reshape(M, E)
        attn = _mm(attn_cat, wo_ref[l]) + bo_ref[l]
        h = h + attn

        # ---- feed-forward block (norm_first) ----
        hn2 = _layernorm(h, ln2_w_ref[l], ln2_b_ref[l])
        f = _gelu(_mm(hn2, w1_ref[l]) + b1_ref[l])
        f = _mm(f, w2_ref[l]) + b2_ref[l]
        h = h + f

        # ---- extra scaled residual from TransformerModel.forward ----
        h = h + (GRAD_MULT * 0.1) * layer_in

    h = _layernorm(h, lnf_w_ref[...], lnf_b_ref[...])

    # ---- token-attention weighted pooling ----
    tw = jax.nn.sigmoid(_mm(h, wa_ref[...]) + ba_ref[...])      # (M, 1)
    twk = tw * keep
    token_sum = jnp.sum((h * twk).reshape(BT, S, E), axis=1)    # (BT, E)
    tw_sum = jnp.maximum(jnp.sum(twk.reshape(BT, S, 1), axis=1), 1e-9)
    pooled = token_sum * pl.reciprocal(tw_sum, approx=True)     # (BT, E)

    # ---- classifier head (lane-dense, padded to PAD_C) ----
    c = _mm(pooled, wc1_ref[...]) + bc1_ref[...]
    c = _gelu(_layernorm(c, lnc_w_ref[...], lnc_b_ref[...]))
    logits = _mm(c, wc2_ref[...]) + bc2_ref[...]                # (BT, PAD_C)
    out_ref[:, 0, :] = logits                                   # single lane-dense store


def init_params(key):
    ks = iter(jax.random.split(key, 32))

    def w(shape, scale=0.02):
        return (scale * jax.random.normal(next(ks), shape)).astype(jnp.float32)

    return dict(
        embedding=w((VOCAB_SIZE, EMBED_DIM)),
        pos=w((MAX_POS, EMBED_DIM)),
        lne_w=jnp.ones((1, EMBED_DIM), jnp.float32),
        lne_b=jnp.zeros((1, EMBED_DIM), jnp.float32),
        ln1_w=jnp.ones((NUM_LAYERS, 1, EMBED_DIM), jnp.float32),
        ln1_b=jnp.zeros((NUM_LAYERS, 1, EMBED_DIM), jnp.float32),
        wqkv=w((NUM_LAYERS, EMBED_DIM, 3 * EMBED_DIM)),
        bqkv=w((NUM_LAYERS, 1, 3 * EMBED_DIM)),
        wo=w((NUM_LAYERS, EMBED_DIM, EMBED_DIM)),
        bo=w((NUM_LAYERS, 1, EMBED_DIM)),
        ln2_w=jnp.ones((NUM_LAYERS, 1, EMBED_DIM), jnp.float32),
        ln2_b=jnp.zeros((NUM_LAYERS, 1, EMBED_DIM), jnp.float32),
        w1=w((NUM_LAYERS, EMBED_DIM, HIDDEN_DIM)),
        b1=w((NUM_LAYERS, 1, HIDDEN_DIM)),
        w2=w((NUM_LAYERS, HIDDEN_DIM, EMBED_DIM)),
        b2=w((NUM_LAYERS, 1, EMBED_DIM)),
        lnf_w=jnp.ones((1, EMBED_DIM), jnp.float32),
        lnf_b=jnp.zeros((1, EMBED_DIM), jnp.float32),
        wa=w((EMBED_DIM, 1)),
        ba=jnp.zeros((1, 1), jnp.float32),
        wc1=w((EMBED_DIM, CLS_HIDDEN)),
        bc1=w((1, CLS_HIDDEN)),
        lnc_w=jnp.ones((1, CLS_HIDDEN), jnp.float32),
        lnc_b=jnp.zeros((1, CLS_HIDDEN), jnp.float32),
        wc2=w((CLS_HIDDEN, NUM_CLASSES)),
        bc2=jnp.zeros((1, NUM_CLASSES), jnp.float32),
    )


def _pick_batch_tile(batch, seq, target_rows=1024):
    """Rows-per-step cap. Small batches run as ONE fat grid step (single-TC
    chips pay pure per-step overhead for extra steps); large batches are split
    so bt*seq stays near target_rows, which also yields >=2 steps for v7x's
    two TensorCores once there is enough work."""
    rows_cap = max(1, target_rows // max(seq, 1))
    if batch <= rows_cap:
        return batch
    for bt in range(rows_cap, 0, -1):
        if batch % bt == 0:
            return bt
    return 1


@jax.jit
def transformer_forward(tokens, params):
    B, S = tokens.shape
    # glue: embedding + positional lookup (gather), mask construction
    xe = params["embedding"][tokens] + params["pos"][:S][None, :, :]        # (B,S,E)
    pad = tokens == 0
    bias = jnp.where(pad, -1e30, 0.0).astype(jnp.float32)[:, None, :]       # (B,1,S)
    keep = (~pad).astype(jnp.float32)[:, :, None]                           # (B,S,1)

    bf16 = jnp.bfloat16
    L = NUM_LAYERS
    # QKV weight/bias columns permuted from canonical [q|k|v][head][dim] to
    # [head][q|k|v][dim] so the kernel stacks heads with a single concat.
    wqkv = (params["wqkv"].reshape(L, EMBED_DIM, 3, NUM_HEADS, HEAD_DIM)
            .transpose(0, 1, 3, 2, 4).reshape(L, EMBED_DIM, 3 * EMBED_DIM)).astype(bf16)
    bqkv = (params["bqkv"].reshape(L, 1, 3, NUM_HEADS, HEAD_DIM)
            .transpose(0, 1, 3, 2, 4).reshape(L, 1, 3 * EMBED_DIM))
    # remaining matmul weights pre-cast to bf16 (MXU); biases / LN params stay f32
    wo = params["wo"].astype(bf16)
    w1 = params["w1"].astype(bf16)
    w2 = params["w2"].astype(bf16)
    wa = params["wa"].astype(bf16)
    wc1 = params["wc1"].astype(bf16)
    # lane-dense classifier output: zero-pad last Linear to PAD_C lanes
    wc2 = jnp.pad(params["wc2"], ((0, 0), (0, PAD_C - NUM_CLASSES))).astype(bf16)
    bc2 = jnp.pad(params["bc2"], ((0, 0), (0, PAD_C - NUM_CLASSES)))

    kernel_inputs = [
        xe, bias, keep,
        params["lne_w"], params["lne_b"],
        params["ln1_w"], params["ln1_b"], wqkv, bqkv, wo, params["bo"],
        params["ln2_w"], params["ln2_b"], w1, params["b1"], w2, params["b2"],
        params["lnf_w"], params["lnf_b"],
        wa, params["ba"],
        wc1, params["bc1"], params["lnc_w"], params["lnc_b"], wc2, bc2,
    ]

    bt = _pick_batch_tile(B, S)
    grid = (B // bt,)

    def tiled(block_shape):
        nd = len(block_shape)
        return pl.BlockSpec(block_shape, lambda i, _n=nd: (i,) + (0,) * (_n - 1))

    def resident(arr):
        nd = arr.ndim
        return pl.BlockSpec(arr.shape, lambda i, _n=nd: (0,) * _n)

    in_specs = [
        tiled((bt, S, EMBED_DIM)),
        tiled((bt, 1, S)),
        tiled((bt, S, 1)),
    ] + [resident(a) for a in kernel_inputs[3:]]

    # explicit scoped-VMEM budget: resident weights + double-buffered blocks +
    # live f32 activations (rough, generous), capped under v7x's 64 MiB.
    resident_bytes = sum(int(a.size) * a.dtype.itemsize for a in kernel_inputs[3:])
    block_bytes = 4 * bt * (S * EMBED_DIM + S + S + PAD_C)
    act_bytes = (4 * bt * S * (10 * EMBED_DIM + 2 * HIDDEN_DIM + 9 * EMBED_DIM)
                 + 4 * 3 * NUM_HEADS * bt * S * S)
    vmem_limit = int(min(56 << 20,
                         max(32 << 20, 2 * resident_bytes + 4 * block_bytes + 2 * act_bytes)))

    # advisory cost estimate so XLA does not treat the call as zero-cost
    flops_layer = 2 * B * S * (3 * EMBED_DIM * EMBED_DIM          # qkv proj
                               + EMBED_DIM * EMBED_DIM            # out proj
                               + 2 * EMBED_DIM * HIDDEN_DIM)      # ffn
    flops_attn = 4 * B * NUM_HEADS * S * S * HEAD_DIM             # qk^T + pv
    flops = (NUM_LAYERS * (flops_layer + flops_attn)
             + 2 * B * S * EMBED_DIM                              # token attention
             + 2 * B * (EMBED_DIM * CLS_HIDDEN + CLS_HIDDEN * PAD_C))
    transc = (B * S * NUM_LAYERS * (NUM_HEADS * S + HIDDEN_DIM)
              + B * S + B * CLS_HIDDEN)
    bytes_accessed = sum(int(a.size) * a.dtype.itemsize for a in kernel_inputs) \
        + B * PAD_C * 4

    out = pl.pallas_call(
        transformer_kernel,
        out_shape=jax.ShapeDtypeStruct((B, 1, PAD_C), jnp.float32),
        grid=grid,
        in_specs=in_specs,
        out_specs=tiled((bt, 1, PAD_C)),
        compiler_params=pltpu.CompilerParams(
            dimension_semantics=("parallel",),
            vmem_limit_bytes=vmem_limit),
        cost_estimate=pl.CostEstimate(
            flops=flops, transcendentals=transc, bytes_accessed=bytes_accessed),
    )(*kernel_inputs)
    return out[:, 0, :NUM_CLASSES]                                # (B, C)


if __name__ == "__main__":
    key = jax.random.PRNGKey(0)
    pkey, tkey = jax.random.split(key)
    params = init_params(pkey)

    B, S = 2, 8
    tokens = jax.random.randint(tkey, (B, S), 1, VOCAB_SIZE, dtype=jnp.int32)
    tokens = tokens.at[1, 5:].set(0)   # padding tokens (id 0) in the second sequence

    logits = transformer_forward(tokens, params)
    jax.block_until_ready(logits)
    assert logits.shape == (B, NUM_CLASSES), logits.shape
    assert bool(jnp.all(jnp.isfinite(logits)))
    print("KERNEL_OK")
</pallas_src>

<mosaic_0001>
module attributes {stable_mosaic.version = 11 : i64} {
  func.func @transformer_kernel(%arg0: i32, %arg1: memref<2x8x32xf32, #tpu.memory_space<vmem>>, %arg2: memref<2x1x8xf32, #tpu.memory_space<vmem>>, %arg3: memref<2x8x1xf32, #tpu.memory_space<vmem>>, %arg4: memref<1x32xf32, #tpu.memory_space<vmem>>, %arg5: memref<1x32xf32, #tpu.memory_space<vmem>>, %arg6: memref<2x1x32xf32, #tpu.memory_space<vmem>>, %arg7: memref<2x1x32xf32, #tpu.memory_space<vmem>>, %arg8: memref<2x32x96xbf16, #tpu.memory_space<vmem>>, %arg9: memref<2x1x96xf32, #tpu.memory_space<vmem>>, %arg10: memref<2x32x32xbf16, #tpu.memory_space<vmem>>, %arg11: memref<2x1x32xf32, #tpu.memory_space<vmem>>, %arg12: memref<2x1x32xf32, #tpu.memory_space<vmem>>, %arg13: memref<2x1x32xf32, #tpu.memory_space<vmem>>, %arg14: memref<2x32x64xbf16, #tpu.memory_space<vmem>>, %arg15: memref<2x1x64xf32, #tpu.memory_space<vmem>>, %arg16: memref<2x64x32xbf16, #tpu.memory_space<vmem>>, %arg17: memref<2x1x32xf32, #tpu.memory_space<vmem>>, %arg18: memref<1x32xf32, #tpu.memory_space<vmem>>, %arg19: memref<1x32xf32, #tpu.memory_space<vmem>>, %arg20: memref<32x1xbf16, #tpu.memory_space<vmem>>, %arg21: memref<1x1xf32, #tpu.memory_space<vmem>>, %arg22: memref<32x32xbf16, #tpu.memory_space<vmem>>, %arg23: memref<1x32xf32, #tpu.memory_space<vmem>>, %arg24: memref<1x32xf32, #tpu.memory_space<vmem>>, %arg25: memref<1x32xf32, #tpu.memory_space<vmem>>, %arg26: memref<32x128xbf16, #tpu.memory_space<vmem>>, %arg27: memref<1x128xf32, #tpu.memory_space<vmem>>, %arg28: memref<2x1x128xf32, #tpu.memory_space<vmem>>) attributes {dimension_semantics = [#tpu.dimension_semantics<parallel>], iteration_bounds = array<i64: 1>, scalar_prefetch = 0 : i64, scratch_operands = 0 : i64, tpu.core_type = #tpu.core_type<tc>, window_params = [{transform_indices = @transform_0, window_bounds = array<i64: 2, 8, 32>}, {transform_indices = @transform_1, window_bounds = array<i64: 2, 1, 8>}, {transform_indices = @transform_2, window_bounds = array<i64: 2, 8, 1>}, {pipeline_mode = #tpu.pipeline_mode<synchronous>, transform_indices = @transform_3, window_bounds = array<i64: 1, 32>}, {pipeline_mode = #tpu.pipeline_mode<synchronous>, transform_indices = @transform_4, window_bounds = array<i64: 1, 32>}, {pipeline_mode = #tpu.pipeline_mode<synchronous>, transform_indices = @transform_5, window_bounds = array<i64: 2, 1, 32>}, {pipeline_mode = #tpu.pipeline_mode<synchronous>, transform_indices = @transform_6, window_bounds = array<i64: 2, 1, 32>}, {pipeline_mode = #tpu.pipeline_mode<synchronous>, transform_indices = @transform_7, window_bounds = array<i64: 2, 32, 96>}, {pipeline_mode = #tpu.pipeline_mode<synchronous>, transform_indices = @transform_8, window_bounds = array<i64: 2, 1, 96>}, {pipeline_mode = #tpu.pipeline_mode<synchronous>, transform_indices = @transform_9, window_bounds = array<i64: 2, 32, 32>}, {pipeline_mode = #tpu.pipeline_mode<synchronous>, transform_indices = @transform_10, window_bounds = array<i64: 2, 1, 32>}, {pipeline_mode = #tpu.pipeline_mode<synchronous>, transform_indices = @transform_11, window_bounds = array<i64: 2, 1, 32>}, {pipeline_mode = #tpu.pipeline_mode<synchronous>, transform_indices = @transform_12, window_bounds = array<i64: 2, 1, 32>}, {pipeline_mode = #tpu.pipeline_mode<synchronous>, transform_indices = @transform_13, window_bounds = array<i64: 2, 32, 64>}, {pipeline_mode = #tpu.pipeline_mode<synchronous>, transform_indices = @transform_14, window_bounds = array<i64: 2, 1, 64>}, {pipeline_mode = #tpu.pipeline_mode<synchronous>, transform_indices = @transform_15, window_bounds = array<i64: 2, 64, 32>}, {pipeline_mode = #tpu.pipeline_mode<synchronous>, transform_indices = @transform_16, window_bounds = array<i64: 2, 1, 32>}, {pipeline_mode = #tpu.pipeline_mode<synchronous>, transform_indices = @transform_17, window_bounds = array<i64: 1, 32>}, {pipeline_mode = #tpu.pipeline_mode<synchronous>, transform_indices = @transform_18, window_bounds = array<i64: 1, 32>}, {pipeline_mode = #tpu.pipeline_mode<synchronous>, transform_indices = @transform_19, window_bounds = array<i64: 32, 1>}, {pipeline_mode = #tpu.pipeline_mode<synchronous>, transform_indices = @transform_20, window_bounds = array<i64: 1, 1>}, {pipeline_mode = #tpu.pipeline_mode<synchronous>, transform_indices = @transform_21, window_bounds = array<i64: 32, 32>}, {pipeline_mode = #tpu.pipeline_mode<synchronous>, transform_indices = @transform_22, window_bounds = array<i64: 1, 32>}, {pipeline_mode = #tpu.pipeline_mode<synchronous>, transform_indices = @transform_23, window_bounds = array<i64: 1, 32>}, {pipeline_mode = #tpu.pipeline_mode<synchronous>, transform_indices = @transform_24, window_bounds = array<i64: 1, 32>}, {pipeline_mode = #tpu.pipeline_mode<synchronous>, transform_indices = @transform_25, window_bounds = array<i64: 32, 128>}, {pipeline_mode = #tpu.pipeline_mode<synchronous>, transform_indices = @transform_26, window_bounds = array<i64: 1, 128>}, {transform_indices = @transform_27, window_bounds = array<i64: 2, 1, 128>}]} {
    %c0 = arith.constant 0 : index
    %c0_0 = arith.constant 0 : index
    %c0_1 = arith.constant 0 : index
    %0 = vector.load %arg1[%c0, %c0_0, %c0_1] : memref<2x8x32xf32, #tpu.memory_space<vmem>>, vector<2x8x32xf32>
    %1 = vector.shape_cast %0 : vector<2x8x32xf32> to vector<16x32xf32>
    %c0_2 = arith.constant 0 : index
    %c0_3 = arith.constant 0 : index
    %c0_4 = arith.constant 0 : index
    %2 = vector.load %arg3[%c0_2, %c0_3, %c0_4] : memref<2x8x1xf32, #tpu.memory_space<vmem>>, vector<2x8x1xf32>
    %3 = vector.shape_cast %2 : vector<2x8x1xf32> to vector<16x1xf32>
    %c0_5 = arith.constant 0 : index
    %c0_6 = arith.constant 0 : index
    %c0_7 = arith.constant 0 : index
    %4 = vector.load %arg2[%c0_5, %c0_6, %c0_7] : memref<2x1x8xf32, #tpu.memory_space<vmem>>, vector<2x1x8xf32>
    %5 = vector.shape_cast %4 : vector<2x1x8xf32> to vector<1x2x1x8xf32>
    %c0_8 = arith.constant 0 : index
    %c0_9 = arith.constant 0 : index
    %6 = vector.load %arg4[%c0_8, %c0_9] : memref<1x32xf32, #tpu.memory_space<vmem>>, vector<1x32xf32>
    %c0_10 = arith.constant 0 : index
    %c0_11 = arith.constant 0 : index
    %7 = vector.load %arg5[%c0_10, %c0_11] : memref<1x32xf32, #tpu.memory_space<vmem>>, vector<1x32xf32>
    %cst = arith.constant dense<0.000000e+00> : vector<16xf32>
    %8 = vector.multi_reduction <add>, %1, %cst [1] : vector<16x32xf32> to vector<16xf32>
    %9 = vector.shape_cast %8 : vector<16xf32> to vector<16x1xf32>
    %cst_12 = arith.constant 3.200000e+01 : f32
    %10 = vector.broadcast %cst_12 : f32 to vector<16x1xf32>
    %11 = arith.divf %9, %10 : vector<16x1xf32>
    %12 = vector.broadcast %11 : vector<16x1xf32> to vector<16x32xf32>
    %13 = arith.subf %1, %12 : vector<16x32xf32>
    %14 = arith.mulf %13, %13 : vector<16x32xf32>
    %cst_13 = arith.constant dense<0.000000e+00> : vector<16xf32>
    %15 = vector.multi_reduction <add>, %14, %cst_13 [1] : vector<16x32xf32> to vector<16xf32>
    %16 = vector.shape_cast %15 : vector<16xf32> to vector<16x1xf32>
    %cst_14 = arith.constant 3.200000e+01 : f32
    %17 = vector.broadcast %cst_14 : f32 to vector<16x1xf32>
    %18 = arith.divf %16, %17 : vector<16x1xf32>
    %cst_15 = arith.constant 9.99999974E-6 : f32
    %19 = vector.broadcast %cst_15 : f32 to vector<16x1xf32>
    %20 = arith.addf %18, %19 : vector<16x1xf32>
    %21 = math.rsqrt %20 : vector<16x1xf32>
    %22 = vector.broadcast %21 : vector<16x1xf32> to vector<16x32xf32>
    %23 = arith.mulf %13, %22 : vector<16x32xf32>
    %24 = vector.broadcast %6 : vector<1x32xf32> to vector<16x32xf32>
    %25 = arith.mulf %23, %24 : vector<16x32xf32>
    %26 = vector.broadcast %7 : vector<1x32xf32> to vector<16x32xf32>
    %27 = arith.addf %25, %26 : vector<16x32xf32>
    %c0_16 = arith.constant 0 : index
    %c0_17 = arith.constant 0 : index
    %c0_18 = arith.constant 0 : index
    %28 = vector.load %arg6[%c0_16, %c0_17, %c0_18] : memref<2x1x32xf32, #tpu.memory_space<vmem>>, vector<1x1x32xf32>
    %29 = vector.shape_cast %28 : vector<1x1x32xf32> to vector<1x32xf32>
    %c0_19 = arith.constant 0 : index
    %c0_20 = arith.constant 0 : index
    %c0_21 = arith.constant 0 : index
    %30 = vector.load %arg7[%c0_19, %c0_20, %c0_21] : memref<2x1x32xf32, #tpu.memory_space<vmem>>, vector<1x1x32xf32>
    %31 = vector.shape_cast %30 : vector<1x1x32xf32> to vector<1x32xf32>
    %cst_22 = arith.constant dense<0.000000e+00> : vector<16xf32>
    %32 = vector.multi_reduction <add>, %27, %cst_22 [1] : vector<16x32xf32> to vector<16xf32>
    %33 = vector.shape_cast %32 : vector<16xf32> to vector<16x1xf32>
    %cst_23 = arith.constant 3.200000e+01 : f32
    %34 = vector.broadcast %cst_23 : f32 to vector<16x1xf32>
    %35 = arith.divf %33, %34 : vector<16x1xf32>
    %36 = vector.broadcast %35 : vector<16x1xf32> to vector<16x32xf32>
    %37 = arith.subf %27, %36 : vector<16x32xf32>
    %38 = arith.mulf %37, %37 : vector<16x32xf32>
    %cst_24 = arith.constant dense<0.000000e+00> : vector<16xf32>
    %39 = vector.multi_reduction <add>, %38, %cst_24 [1] : vector<16x32xf32> to vector<16xf32>
    %40 = vector.shape_cast %39 : vector<16xf32> to vector<16x1xf32>
    %cst_25 = arith.constant 3.200000e+01 : f32
    %41 = vector.broadcast %cst_25 : f32 to vector<16x1xf32>
    %42 = arith.divf %40, %41 : vector<16x1xf32>
    %cst_26 = arith.constant 9.99999974E-6 : f32
    %43 = vector.broadcast %cst_26 : f32 to vector<16x1xf32>
    %44 = arith.addf %42, %43 : vector<16x1xf32>
    %45 = math.rsqrt %44 : vector<16x1xf32>
    %46 = vector.broadcast %45 : vector<16x1xf32> to vector<16x32xf32>
    %47 = arith.mulf %37, %46 : vector<16x32xf32>
    %48 = vector.broadcast %29 : vector<1x32xf32> to vector<16x32xf32>
    %49 = arith.mulf %47, %48 : vector<16x32xf32>
    %50 = vector.broadcast %31 : vector<1x32xf32> to vector<16x32xf32>
    %51 = arith.addf %49, %50 : vector<16x32xf32>
    %c0_27 = arith.constant 0 : index
    %c0_28 = arith.constant 0 : index
    %c0_29 = arith.constant 0 : index
    %52 = vector.load %arg8[%c0_27, %c0_28, %c0_29] : memref<2x32x96xbf16, #tpu.memory_space<vmem>>, vector<1x32x96xbf16>
    %53 = vector.shape_cast %52 : vector<1x32x96xbf16> to vector<32x96xbf16>
    %54 = arith.truncf %51 : vector<16x32xf32> to vector<16x32xbf16>
    %cst_30 = arith.constant dense<0.000000e+00> : vector<16x96xf32>
    %55 = tpu.matmul %54, %53, %cst_30 {dimension_numbers = #tpu.dot_dimension_numbers<[1], [0], [0], [1], [0, 0, 1, 1], [], []>} : vector<16x32xbf16>, vector<32x96xbf16>, vector<16x96xf32> -> vector<16x96xf32>
    %c0_31 = arith.constant 0 : index
    %c0_32 = arith.constant 0 : index
    %c0_33 = arith.constant 0 : index
    %56 = vector.load %arg9[%c0_31, %c0_32, %c0_33] : memref<2x1x96xf32, #tpu.memory_space<vmem>>, vector<1x1x96xf32>
    %57 = vector.shape_cast %56 : vector<1x1x96xf32> to vector<1x96xf32>
    %58 = vector.broadcast %57 : vector<1x96xf32> to vector<16x96xf32>
    %59 = arith.addf %55, %58 : vector<16x96xf32>
    %60 = vector.shape_cast %59 : vector<16x96xf32> to vector<2x8x96xf32>
    %61 = vector.extract_strided_slice %60 {offsets = [0, 0, 0], sizes = [2, 8, 24], strides = [1, 1, 1]} : vector<2x8x96xf32> to vector<2x8x24xf32>
    %62 = vector.extract_strided_slice %60 {offsets = [0, 0, 24], sizes = [2, 8, 24], strides = [1, 1, 1]} : vector<2x8x96xf32> to vector<2x8x24xf32>
    %63 = vector.extract_strided_slice %60 {offsets = [0, 0, 48], sizes = [2, 8, 24], strides = [1, 1, 1]} : vector<2x8x96xf32> to vector<2x8x24xf32>
    %64 = vector.extract_strided_slice %60 {offsets = [0, 0, 72], sizes = [2, 8, 24], strides = [1, 1, 1]} : vector<2x8x96xf32> to vector<2x8x24xf32>
    %65 = tpu.concatenate %61, %62, %63, %64 in 0 : vector<2x8x24xf32>, vector<2x8x24xf32>, vector<2x8x24xf32>, vector<2x8x24xf32> -> vector<8x8x24xf32>
    %66 = vector.extract_strided_slice %65 {offsets = [0, 0, 0], sizes = [8, 8, 8], strides = [1, 1, 1]} : vector<8x8x24xf32> to vector<8x8x8xf32>
    %cst_34 = arith.constant 0.353553385 : f32
    %67 = vector.broadcast %cst_34 : f32 to vector<8x8x8xf32>
    %68 = arith.mulf %66, %67 : vector<8x8x8xf32>
    %69 = vector.extract_strided_slice %65 {offsets = [0, 0, 8], sizes = [8, 8, 8], strides = [1, 1, 1]} : vector<8x8x24xf32> to vector<8x8x8xf32>
    %70 = vector.extract_strided_slice %65 {offsets = [0, 0, 16], sizes = [8, 8, 8], strides = [1, 1, 1]} : vector<8x8x24xf32> to vector<8x8x8xf32>
    %71 = arith.truncf %68 : vector<8x8x8xf32> to vector<8x8x8xbf16>
    %72 = arith.truncf %69 : vector<8x8x8xf32> to vector<8x8x8xbf16>
    "tpu.trace_start"() <{level = 10 : i32, message = "bqd,bkd->bqk"}> : () -> ()
    %cst_35 = arith.constant dense<0.000000e+00> : vector<8x8x8xf32>
    %73 = tpu.matmul %71, %72, %cst_35 {dimension_numbers = #tpu.dot_dimension_numbers<[2], [2], [1], [1], [0, 0, 0, 1, 1, 1], [0], [0]>} : vector<8x8x8xbf16>, vector<8x8x8xbf16>, vector<8x8x8xf32> -> vector<8x8x8xf32>
    "tpu.trace_stop"() : () -> ()
    %74 = vector.shape_cast %73 : vector<8x8x8xf32> to vector<4x2x8x8xf32>
    %75 = vector.broadcast %5 : vector<1x2x1x8xf32> to vector<4x2x8x8xf32>
    %76 = arith.addf %74, %75 : vector<4x2x8x8xf32>
    %77 = vector.shape_cast %76 : vector<4x2x8x8xf32> to vector<8x8x8xf32>
    %cst_36 = arith.constant dense<0xFF800000> : vector<8x8xf32>
    %78 = vector.multi_reduction <maximumf>, %77, %cst_36 [2] : vector<8x8x8xf32> to vector<8x8xf32>
    %79 = vector.shape_cast %78 : vector<8x8xf32> to vector<8x8x1xf32>
    %80 = vector.broadcast %79 : vector<8x8x1xf32> to vector<8x8x8xf32>
    %81 = arith.subf %77, %80 : vector<8x8x8xf32>
    %82 = math.exp %81 : vector<8x8x8xf32>
    %cst_37 = arith.constant dense<0.000000e+00> : vector<8x8xf32>
    %83 = vector.multi_reduction <add>, %82, %cst_37 [2] : vector<8x8x8xf32> to vector<8x8xf32>
    %84 = vector.shape_cast %83 : vector<8x8xf32> to vector<8x8x1xf32>
    %85 = tpu.reciprocal %84 {approx = true} : vector<8x8x1xf32> -> vector<8x8x1xf32>
    %86 = vector.broadcast %85 : vector<8x8x1xf32> to vector<8x8x8xf32>
    %87 = arith.mulf %82, %86 : vector<8x8x8xf32>
    %88 = arith.truncf %87 : vector<8x8x8xf32> to vector<8x8x8xbf16>
    %89 = arith.truncf %70 : vector<8x8x8xf32> to vector<8x8x8xbf16>
    "tpu.trace_start"() <{level = 10 : i32, message = "bqk,bkd->bqd"}> : () -> ()
    %cst_38 = arith.constant dense<0.000000e+00> : vector<8x8x8xf32>
    %90 = tpu.matmul %88, %89, %cst_38 {dimension_numbers = #tpu.dot_dimension_numbers<[2], [1], [1], [2], [0, 0, 0, 1, 1, 2], [0], [0]>} : vector<8x8x8xbf16>, vector<8x8x8xbf16>, vector<8x8x8xf32> -> vector<8x8x8xf32>
    "tpu.trace_stop"() : () -> ()
    %91 = vector.extract_strided_slice %90 {offsets = [0, 0, 0], sizes = [2, 8, 8], strides = [1, 1, 1]} : vector<8x8x8xf32> to vector<2x8x8xf32>
    %92 = vector.extract_strided_slice %90 {offsets = [2, 0, 0], sizes = [2, 8, 8], strides = [1, 1, 1]} : vector<8x8x8xf32> to vector<2x8x8xf32>
    %93 = vector.extract_strided_slice %90 {offsets = [4, 0, 0], sizes = [2, 8, 8], strides = [1, 1, 1]} : vector<8x8x8xf32> to vector<2x8x8xf32>
    %94 = vector.extract_strided_slice %90 {offsets = [6, 0, 0], sizes = [2, 8, 8], strides = [1, 1, 1]} : vector<8x8x8xf32> to vector<2x8x8xf32>
    %95 = tpu.concatenate %91, %92, %93, %94 in 2 : vector<2x8x8xf32>, vector<2x8x8xf32>, vector<2x8x8xf32>, vector<2x8x8xf32> -> vector<2x8x32xf32>
    %96 = vector.shape_cast %95 : vector<2x8x32xf32> to vector<16x32xf32>
    %c0_39 = arith.constant 0 : index
    %c0_40 = arith.constant 0 : index
    %c0_41 = arith.constant 0 : index
    %97 = vector.load %arg10[%c0_39, %c0_40, %c0_41] : memref<2x32x32xbf16, #tpu.memory_space<vmem>>, vector<1x32x32xbf16>
    %98 = vector.shape_cast %97 : vector<1x32x32xbf16> to vector<32x32xbf16>
    %99 = arith.truncf %96 : vector<16x32xf32> to vector<16x32xbf16>
    %cst_42 = arith.constant dense<0.000000e+00> : vector<16x32xf32>
    %100 = tpu.matmul %99, %98, %cst_42 {dimension_numbers = #tpu.dot_dimension_numbers<[1], [0], [0], [1], [0, 0, 1, 1], [], []>} : vector<16x32xbf16>, vector<32x32xbf16>, vector<16x32xf32> -> vector<16x32xf32>
    %c0_43 = arith.constant 0 : index
    %c0_44 = arith.constant 0 : index
    %c0_45 = arith.constant 0 : index
    %101 = vector.load %arg11[%c0_43, %c0_44, %c0_45] : memref<2x1x32xf32, #tpu.memory_space<vmem>>, vector<1x1x32xf32>
    %102 = vector.shape_cast %101 : vector<1x1x32xf32> to vector<1x32xf32>
    %103 = vector.broadcast %102 : vector<1x32xf32> to vector<16x32xf32>
    %104 = arith.addf %100, %103 : vector<16x32xf32>
    %105 = arith.addf %27, %104 : vector<16x32xf32>
    %c0_46 = arith.constant 0 : index
    %c0_47 = arith.constant 0 : index
    %c0_48 = arith.constant 0 : index
    %106 = vector.load %arg12[%c0_46, %c0_47, %c0_48] : memref<2x1x32xf32, #tpu.memory_space<vmem>>, vector<1x1x32xf32>
    %107 = vector.shape_cast %106 : vector<1x1x32xf32> to vector<1x32xf32>
    %c0_49 = arith.constant 0 : index
    %c0_50 = arith.constant 0 : index
    %c0_51 = arith.constant 0 : index
    %108 = vector.load %arg13[%c0_49, %c0_50, %c0_51] : memref<2x1x32xf32, #tpu.memory_space<vmem>>, vector<1x1x32xf32>
    %109 = vector.shape_cast %108 : vector<1x1x32xf32> to vector<1x32xf32>
    %cst_52 = arith.constant dense<0.000000e+00> : vector<16xf32>
    %110 = vector.multi_reduction <add>, %105, %cst_52 [1] : vector<16x32xf32> to vector<16xf32>
    %111 = vector.shape_cast %110 : vector<16xf32> to vector<16x1xf32>
    %cst_53 = arith.constant 3.200000e+01 : f32
    %112 = vector.broadcast %cst_53 : f32 to vector<16x1xf32>
    %113 = arith.divf %111, %112 : vector<16x1xf32>
    %114 = vector.broadcast %113 : vector<16x1xf32> to vector<16x32xf32>
    %115 = arith.subf %105, %114 : vector<16x32xf32>
    %116 = arith.mulf %115, %115 : vector<16x32xf32>
    %cst_54 = arith.constant dense<0.000000e+00> : vector<16xf32>
    %117 = vector.multi_reduction <add>, %116, %cst_54 [1] : vector<16x32xf32> to vector<16xf32>
    %118 = vector.shape_cast %117 : vector<16xf32> to vector<16x1xf32>
    %cst_55 = arith.constant 3.200000e+01 : f32
    %119 = vector.broadcast %cst_55 : f32 to vector<16x1xf32>
    %120 = arith.divf %118, %119 : vector<16x1xf32>
    %cst_56 = arith.constant 9.99999974E-6 : f32
    %121 = vector.broadcast %cst_56 : f32 to vector<16x1xf32>
    %122 = arith.addf %120, %121 : vector<16x1xf32>
    %123 = math.rsqrt %122 : vector<16x1xf32>
    %124 = vector.broadcast %123 : vector<16x1xf32> to vector<16x32xf32>
    %125 = arith.mulf %115, %124 : vector<16x32xf32>
    %126 = vector.broadcast %107 : vector<1x32xf32> to vector<16x32xf32>
    %127 = arith.mulf %125, %126 : vector<16x32xf32>
    %128 = vector.broadcast %109 : vector<1x32xf32> to vector<16x32xf32>
    %129 = arith.addf %127, %128 : vector<16x32xf32>
    %c0_57 = arith.constant 0 : index
    %c0_58 = arith.constant 0 : index
    %c0_59 = arith.constant 0 : index
    %130 = vector.load %arg14[%c0_57, %c0_58, %c0_59] : memref<2x32x64xbf16, #tpu.memory_space<vmem>>, vector<1x32x64xbf16>
    %131 = vector.shape_cast %130 : vector<1x32x64xbf16> to vector<32x64xbf16>
    %132 = arith.truncf %129 : vector<16x32xf32> to vector<16x32xbf16>
    %cst_60 = arith.constant dense<0.000000e+00> : vector<16x64xf32>
    %133 = tpu.matmul %132, %131, %cst_60 {dimension_numbers = #tpu.dot_dimension_numbers<[1], [0], [0], [1], [0, 0, 1, 1], [], []>} : vector<16x32xbf16>, vector<32x64xbf16>, vector<16x64xf32> -> vector<16x64xf32>
    %c0_61 = arith.constant 0 : index
    %c0_62 = arith.constant 0 : index
    %c0_63 = arith.constant 0 : index
    %134 = vector.load %arg15[%c0_61, %c0_62, %c0_63] : memref<2x1x64xf32, #tpu.memory_space<vmem>>, vector<1x1x64xf32>
    %135 = vector.shape_cast %134 : vector<1x1x64xf32> to vector<1x64xf32>
    %136 = vector.broadcast %135 : vector<1x64xf32> to vector<16x64xf32>
    %137 = arith.addf %133, %136 : vector<16x64xf32>
    %cst_64 = arith.constant 5.000000e-01 : f32
    %138 = vector.broadcast %cst_64 : f32 to vector<16x64xf32>
    %139 = arith.mulf %138, %137 : vector<16x64xf32>
    %cst_65 = arith.constant 4.471500e-02 : f32
    %140 = vector.broadcast %cst_65 : f32 to vector<16x64xf32>
    %141 = arith.mulf %140, %137 : vector<16x64xf32>
    %142 = arith.mulf %141, %137 : vector<16x64xf32>
    %143 = arith.mulf %142, %137 : vector<16x64xf32>
    %144 = arith.addf %137, %143 : vector<16x64xf32>
    %cst_66 = arith.constant 0.797884583 : f32
    %145 = vector.broadcast %cst_66 : f32 to vector<16x64xf32>
    %146 = arith.mulf %145, %144 : vector<16x64xf32>
    %147 = math.tanh %146 : vector<16x64xf32>
    %cst_67 = arith.constant 1.000000e+00 : f32
    %148 = vector.broadcast %cst_67 : f32 to vector<16x64xf32>
    %149 = arith.addf %148, %147 : vector<16x64xf32>
    %150 = arith.mulf %139, %149 : vector<16x64xf32>
    %c0_68 = arith.constant 0 : index
    %c0_69 = arith.constant 0 : index
    %c0_70 = arith.constant 0 : index
    %151 = vector.load %arg16[%c0_68, %c0_69, %c0_70] : memref<2x64x32xbf16, #tpu.memory_space<vmem>>, vector<1x64x32xbf16>
    %152 = vector.shape_cast %151 : vector<1x64x32xbf16> to vector<64x32xbf16>
    %153 = arith.truncf %150 : vector<16x64xf32> to vector<16x64xbf16>
    %cst_71 = arith.constant dense<0.000000e+00> : vector<16x32xf32>
    %154 = tpu.matmul %153, %152, %cst_71 {dimension_numbers = #tpu.dot_dimension_numbers<[1], [0], [0], [1], [0, 0, 1, 1], [], []>} : vector<16x64xbf16>, vector<64x32xbf16>, vector<16x32xf32> -> vector<16x32xf32>
    %c0_72 = arith.constant 0 : index
    %c0_73 = arith.constant 0 : index
    %c0_74 = arith.constant 0 : index
    %155 = vector.load %arg17[%c0_72, %c0_73, %c0_74] : memref<2x1x32xf32, #tpu.memory_space<vmem>>, vector<1x1x32xf32>
    %156 = vector.shape_cast %155 : vector<1x1x32xf32> to vector<1x32xf32>
    %157 = vector.broadcast %156 : vector<1x32xf32> to vector<16x32xf32>
    %158 = arith.addf %154, %157 : vector<16x32xf32>
    %159 = arith.addf %105, %158 : vector<16x32xf32>
    %cst_75 = arith.constant 4.000000e-01 : f32
    %160 = vector.broadcast %cst_75 : f32 to vector<16x32xf32>
    %161 = arith.mulf %160, %27 : vector<16x32xf32>
    %162 = arith.addf %159, %161 : vector<16x32xf32>
    %c1 = arith.constant 1 : index
    %c0_76 = arith.constant 0 : index
    %c0_77 = arith.constant 0 : index
    %163 = vector.load %arg6[%c1, %c0_76, %c0_77] : memref<2x1x32xf32, #tpu.memory_space<vmem>>, vector<1x1x32xf32>
    %164 = vector.shape_cast %163 : vector<1x1x32xf32> to vector<1x32xf32>
    %c1_78 = arith.constant 1 : index
    %c0_79 = arith.constant 0 : index
    %c0_80 = arith.constant 0 : index
    %165 = vector.load %arg7[%c1_78, %c0_79, %c0_80] : memref<2x1x32xf32, #tpu.memory_space<vmem>>, vector<1x1x32xf32>
    %166 = vector.shape_cast %165 : vector<1x1x32xf32> to vector<1x32xf32>
    %cst_81 = arith.constant dense<0.000000e+00> : vector<16xf32>
    %167 = vector.multi_reduction <add>, %162, %cst_81 [1] : vector<16x32xf32> to vector<16xf32>
    %168 = vector.shape_cast %167 : vector<16xf32> to vector<16x1xf32>
    %cst_82 = arith.constant 3.200000e+01 : f32
    %169 = vector.broadcast %cst_82 : f32 to vector<16x1xf32>
    %170 = arith.divf %168, %169 : vector<16x1xf32>
    %171 = vector.broadcast %170 : vector<16x1xf32> to vector<16x32xf32>
    %172 = arith.subf %162, %171 : vector<16x32xf32>
    %173 = arith.mulf %172, %172 : vector<16x32xf32>
    %cst_83 = arith.constant dense<0.000000e+00> : vector<16xf32>
    %174 = vector.multi_reduction <add>, %173, %cst_83 [1] : vector<16x32xf32> to vector<16xf32>
    %175 = vector.shape_cast %174 : vector<16xf32> to vector<16x1xf32>
    %cst_84 = arith.constant 3.200000e+01 : f32
    %176 = vector.broadcast %cst_84 : f32 to vector<16x1xf32>
    %177 = arith.divf %175, %176 : vector<16x1xf32>
    %cst_85 = arith.constant 9.99999974E-6 : f32
    %178 = vector.broadcast %cst_85 : f32 to vector<16x1xf32>
    %179 = arith.addf %177, %178 : vector<16x1xf32>
    %180 = math.rsqrt %179 : vector<16x1xf32>
    %181 = vector.broadcast %180 : vector<16x1xf32> to vector<16x32xf32>
    %182 = arith.mulf %172, %181 : vector<16x32xf32>
    %183 = vector.broadcast %164 : vector<1x32xf32> to vector<16x32xf32>
    %184 = arith.mulf %182, %183 : vector<16x32xf32>
    %185 = vector.broadcast %166 : vector<1x32xf32> to vector<16x32xf32>
    %186 = arith.addf %184, %185 : vector<16x32xf32>
    %c1_86 = arith.constant 1 : index
    %c0_87 = arith.constant 0 : index
    %c0_88 = arith.constant 0 : index
    %187 = vector.load %arg8[%c1_86, %c0_87, %c0_88] : memref<2x32x96xbf16, #tpu.memory_space<vmem>>, vector<1x32x96xbf16>
    %188 = vector.shape_cast %187 : vector<1x32x96xbf16> to vector<32x96xbf16>
    %189 = arith.truncf %186 : vector<16x32xf32> to vector<16x32xbf16>
    %cst_89 = arith.constant dense<0.000000e+00> : vector<16x96xf32>
    %190 = tpu.matmul %189, %188, %cst_89 {dimension_numbers = #tpu.dot_dimension_numbers<[1], [0], [0], [1], [0, 0, 1, 1], [], []>} : vector<16x32xbf16>, vector<32x96xbf16>, vector<16x96xf32> -> vector<16x96xf32>
    %c1_90 = arith.constant 1 : index
    %c0_91 = arith.constant 0 : index
    %c0_92 = arith.constant 0 : index
    %191 = vector.load %arg9[%c1_90, %c0_91, %c0_92] : memref<2x1x96xf32, #tpu.memory_space<vmem>>, vector<1x1x96xf32>
    %192 = vector.shape_cast %191 : vector<1x1x96xf32> to vector<1x96xf32>
    %193 = vector.broadcast %192 : vector<1x96xf32> to vector<16x96xf32>
    %194 = arith.addf %190, %193 : vector<16x96xf32>
    %195 = vector.shape_cast %194 : vector<16x96xf32> to vector<2x8x96xf32>
    %196 = vector.extract_strided_slice %195 {offsets = [0, 0, 0], sizes = [2, 8, 24], strides = [1, 1, 1]} : vector<2x8x96xf32> to vector<2x8x24xf32>
    %197 = vector.extract_strided_slice %195 {offsets = [0, 0, 24], sizes = [2, 8, 24], strides = [1, 1, 1]} : vector<2x8x96xf32> to vector<2x8x24xf32>
    %198 = vector.extract_strided_slice %195 {offsets = [0, 0, 48], sizes = [2, 8, 24], strides = [1, 1, 1]} : vector<2x8x96xf32> to vector<2x8x24xf32>
    %199 = vector.extract_strided_slice %195 {offsets = [0, 0, 72], sizes = [2, 8, 24], strides = [1, 1, 1]} : vector<2x8x96xf32> to vector<2x8x24xf32>
    %200 = tpu.concatenate %196, %197, %198, %199 in 0 : vector<2x8x24xf32>, vector<2x8x24xf32>, vector<2x8x24xf32>, vector<2x8x24xf32> -> vector<8x8x24xf32>
    %201 = vector.extract_strided_slice %200 {offsets = [0, 0, 0], sizes = [8, 8, 8], strides = [1, 1, 1]} : vector<8x8x24xf32> to vector<8x8x8xf32>
    %cst_93 = arith.constant 0.353553385 : f32
    %202 = vector.broadcast %cst_93 : f32 to vector<8x8x8xf32>
    %203 = arith.mulf %201, %202 : vector<8x8x8xf32>
    %204 = vector.extract_strided_slice %200 {offsets = [0, 0, 8], sizes = [8, 8, 8], strides = [1, 1, 1]} : vector<8x8x24xf32> to vector<8x8x8xf32>
    %205 = vector.extract_strided_slice %200 {offsets = [0, 0, 16], sizes = [8, 8, 8], strides = [1, 1, 1]} : vector<8x8x24xf32> to vector<8x8x8xf32>
    %206 = arith.truncf %203 : vector<8x8x8xf32> to vector<8x8x8xbf16>
    %207 = arith.truncf %204 : vector<8x8x8xf32> to vector<8x8x8xbf16>
    "tpu.trace_start"() <{level = 10 : i32, message = "bqd,bkd->bqk"}> : () -> ()
    %cst_94 = arith.constant dense<0.000000e+00> : vector<8x8x8xf32>
    %208 = tpu.matmul %206, %207, %cst_94 {dimension_numbers = #tpu.dot_dimension_numbers<[2], [2], [1], [1], [0, 0, 0, 1, 1, 1], [0], [0]>} : vector<8x8x8xbf16>, vector<8x8x8xbf16>, vector<8x8x8xf32> -> vector<8x8x8xf32>
    "tpu.trace_stop"() : () -> ()
    %209 = vector.shape_cast %208 : vector<8x8x8xf32> to vector<4x2x8x8xf32>
    %210 = vector.broadcast %5 : vector<1x2x1x8xf32> to vector<4x2x8x8xf32>
    %211 = arith.addf %209, %210 : vector<4x2x8x8xf32>
    %212 = vector.shape_cast %211 : vector<4x2x8x8xf32> to vector<8x8x8xf32>
    %cst_95 = arith.constant dense<0xFF800000> : vector<8x8xf32>
    %213 = vector.multi_reduction <maximumf>, %212, %cst_95 [2] : vector<8x8x8xf32> to vector<8x8xf32>
    %214 = vector.shape_cast %213 : vector<8x8xf32> to vector<8x8x1xf32>
    %215 = vector.broadcast %214 : vector<8x8x1xf32> to vector<8x8x8xf32>
    %216 = arith.subf %212, %215 : vector<8x8x8xf32>
    %217 = math.exp %216 : vector<8x8x8xf32>
    %cst_96 = arith.constant dense<0.000000e+00> : vector<8x8xf32>
    %218 = vector.multi_reduction <add>, %217, %cst_96 [2] : vector<8x8x8xf32> to vector<8x8xf32>
    %219 = vector.shape_cast %218 : vector<8x8xf32> to vector<8x8x1xf32>
    %220 = tpu.reciprocal %219 {approx = true} : vector<8x8x1xf32> -> vector<8x8x1xf32>
    %221 = vector.broadcast %220 : vector<8x8x1xf32> to vector<8x8x8xf32>
    %222 = arith.mulf %217, %221 : vector<8x8x8xf32>
    %223 = arith.truncf %222 : vector<8x8x8xf32> to vector<8x8x8xbf16>
    %224 = arith.truncf %205 : vector<8x8x8xf32> to vector<8x8x8xbf16>
    "tpu.trace_start"() <{level = 10 : i32, message = "bqk,bkd->bqd"}> : () -> ()
    %cst_97 = arith.constant dense<0.000000e+00> : vector<8x8x8xf32>
    %225 = tpu.matmul %223, %224, %cst_97 {dimension_numbers = #tpu.dot_dimension_numbers<[2], [1], [1], [2], [0, 0, 0, 1, 1, 2], [0], [0]>} : vector<8x8x8xbf16>, vector<8x8x8xbf16>, vector<8x8x8xf32> -> vector<8x8x8xf32>
    "tpu.trace_stop"() : () -> ()
    %226 = vector.extract_strided_slice %225 {offsets = [0, 0, 0], sizes = [2, 8, 8], strides = [1, 1, 1]} : vector<8x8x8xf32> to vector<2x8x8xf32>
    %227 = vector.extract_strided_slice %225 {offsets = [2, 0, 0], sizes = [2, 8, 8], strides = [1, 1, 1]} : vector<8x8x8xf32> to vector<2x8x8xf32>
    %228 = vector.extract_strided_slice %225 {offsets = [4, 0, 0], sizes = [2, 8, 8], strides = [1, 1, 1]} : vector<8x8x8xf32> to vector<2x8x8xf32>
    %229 = vector.extract_strided_slice %225 {offsets = [6, 0, 0], sizes = [2, 8, 8], strides = [1, 1, 1]} : vector<8x8x8xf32> to vector<2x8x8xf32>
    %230 = tpu.concatenate %226, %227, %228, %229 in 2 : vector<2x8x8xf32>, vector<2x8x8xf32>, vector<2x8x8xf32>, vector<2x8x8xf32> -> vector<2x8x32xf32>
    %231 = vector.shape_cast %230 : vector<2x8x32xf32> to vector<16x32xf32>
    %c1_98 = arith.constant 1 : index
    %c0_99 = arith.constant 0 : index
    %c0_100 = arith.constant 0 : index
    %232 = vector.load %arg10[%c1_98, %c0_99, %c0_100] : memref<2x32x32xbf16, #tpu.memory_space<vmem>>, vector<1x32x32xbf16>
    %233 = vector.shape_cast %232 : vector<1x32x32xbf16> to vector<32x32xbf16>
    %234 = arith.truncf %231 : vector<16x32xf32> to vector<16x32xbf16>
    %cst_101 = arith.constant dense<0.000000e+00> : vector<16x32xf32>
    %235 = tpu.matmul %234, %233, %cst_101 {dimension_numbers = #tpu.dot_dimension_numbers<[1], [0], [0], [1], [0, 0, 1, 1], [], []>} : vector<16x32xbf16>, vector<32x32xbf16>, vector<16x32xf32> -> vector<16x32xf32>
    %c1_102 = arith.constant 1 : index
    %c0_103 = arith.constant 0 : index
    %c0_104 = arith.constant 0 : index
    %236 = vector.load %arg11[%c1_102, %c0_103, %c0_104] : memref<2x1x32xf32, #tpu.memory_space<vmem>>, vector<1x1x32xf32>
    %237 = vector.shape_cast %236 : vector<1x1x32xf32> to vector<1x32xf32>
    %238 = vector.broadcast %237 : vector<1x32xf32> to vector<16x32xf32>
    %239 = arith.addf %235, %238 : vector<16x32xf32>
    %240 = arith.addf %162, %239 : vector<16x32xf32>
    %c1_105 = arith.constant 1 : index
    %c0_106 = arith.constant 0 : index
    %c0_107 = arith.constant 0 : index
    %241 = vector.load %arg12[%c1_105, %c0_106, %c0_107] : memref<2x1x32xf32, #tpu.memory_space<vmem>>, vector<1x1x32xf32>
    %242 = vector.shape_cast %241 : vector<1x1x32xf32> to vector<1x32xf32>
    %c1_108 = arith.constant 1 : index
    %c0_109 = arith.constant 0 : index
    %c0_110 = arith.constant 0 : index
    %243 = vector.load %arg13[%c1_108, %c0_109, %c0_110] : memref<2x1x32xf32, #tpu.memory_space<vmem>>, vector<1x1x32xf32>
    %244 = vector.shape_cast %243 : vector<1x1x32xf32> to vector<1x32xf32>
    %cst_111 = arith.constant dense<0.000000e+00> : vector<16xf32>
    %245 = vector.multi_reduction <add>, %240, %cst_111 [1] : vector<16x32xf32> to vector<16xf32>
    %246 = vector.shape_cast %245 : vector<16xf32> to vector<16x1xf32>
    %cst_112 = arith.constant 3.200000e+01 : f32
    %247 = vector.broadcast %cst_112 : f32 to vector<16x1xf32>
    %248 = arith.divf %246, %247 : vector<16x1xf32>
    %249 = vector.broadcast %248 : vector<16x1xf32> to vector<16x32xf32>
    %250 = arith.subf %240, %249 : vector<16x32xf32>
    %251 = arith.mulf %250, %250 : vector<16x32xf32>
    %cst_113 = arith.constant dense<0.000000e+00> : vector<16xf32>
    %252 = vector.multi_reduction <add>, %251, %cst_113 [1] : vector<16x32xf32> to vector<16xf32>
    %253 = vector.shape_cast %252 : vector<16xf32> to vector<16x1xf32>
    %cst_114 = arith.constant 3.200000e+01 : f32
    %254 = vector.broadcast %cst_114 : f32 to vector<16x1xf32>
    %255 = arith.divf %253, %254 : vector<16x1xf32>
    %cst_115 = arith.constant 9.99999974E-6 : f32
    %256 = vector.broadcast %cst_115 : f32 to vector<16x1xf32>
    %257 = arith.addf %255, %256 : vector<16x1xf32>
    %258 = math.rsqrt %257 : vector<16x1xf32>
    %259 = vector.broadcast %258 : vector<16x1xf32> to vector<16x32xf32>
    %260 = arith.mulf %250, %259 : vector<16x32xf32>
    %261 = vector.broadcast %242 : vector<1x32xf32> to vector<16x32xf32>
    %262 = arith.mulf %260, %261 : vector<16x32xf32>
    %263 = vector.broadcast %244 : vector<1x32xf32> to vector<16x32xf32>
    %264 = arith.addf %262, %263 : vector<16x32xf32>
    %c1_116 = arith.constant 1 : index
    %c0_117 = arith.constant 0 : index
    %c0_118 = arith.constant 0 : index
    %265 = vector.load %arg14[%c1_116, %c0_117, %c0_118] : memref<2x32x64xbf16, #tpu.memory_space<vmem>>, vector<1x32x64xbf16>
    %266 = vector.shape_cast %265 : vector<1x32x64xbf16> to vector<32x64xbf16>
    %267 = arith.truncf %264 : vector<16x32xf32> to vector<16x32xbf16>
    %cst_119 = arith.constant dense<0.000000e+00> : vector<16x64xf32>
    %268 = tpu.matmul %267, %266, %cst_119 {dimension_numbers = #tpu.dot_dimension_numbers<[1], [0], [0], [1], [0, 0, 1, 1], [], []>} : vector<16x32xbf16>, vector<32x64xbf16>, vector<16x64xf32> -> vector<16x64xf32>
    %c1_120 = arith.constant 1 : index
    %c0_121 = arith.constant 0 : index
    %c0_122 = arith.constant 0 : index
    %269 = vector.load %arg15[%c1_120, %c0_121, %c0_122] : memref<2x1x64xf32, #tpu.memory_space<vmem>>, vector<1x1x64xf32>
    %270 = vector.shape_cast %269 : vector<1x1x64xf32> to vector<1x64xf32>
    %271 = vector.broadcast %270 : vector<1x64xf32> to vector<16x64xf32>
    %272 = arith.addf %268, %271 : vector<16x64xf32>
    %cst_123 = arith.constant 5.000000e-01 : f32
    %273 = vector.broadcast %cst_123 : f32 to vector<16x64xf32>
    %274 = arith.mulf %273, %272 : vector<16x64xf32>
    %cst_124 = arith.constant 4.471500e-02 : f32
    %275 = vector.broadcast %cst_124 : f32 to vector<16x64xf32>
    %276 = arith.mulf %275, %272 : vector<16x64xf32>
    %277 = arith.mulf %276, %272 : vector<16x64xf32>
    %278 = arith.mulf %277, %272 : vector<16x64xf32>
    %279 = arith.addf %272, %278 : vector<16x64xf32>
    %cst_125 = arith.constant 0.797884583 : f32
    %280 = vector.broadcast %cst_125 : f32 to vector<16x64xf32>
    %281 = arith.mulf %280, %279 : vector<16x64xf32>
    %282 = math.tanh %281 : vector<16x64xf32>
    %cst_126 = arith.constant 1.000000e+00 : f32
    %283 = vector.broadcast %cst_126 : f32 to vector<16x64xf32>
    %284 = arith.addf %283, %282 : vector<16x64xf32>
    %285 = arith.mulf %274, %284 : vector<16x64xf32>
    %c1_127 = arith.constant 1 : index
    %c0_128 = arith.constant 0 : index
    %c0_129 = arith.constant 0 : index
    %286 = vector.load %arg16[%c1_127, %c0_128, %c0_129] : memref<2x64x32xbf16, #tpu.memory_space<vmem>>, vector<1x64x32xbf16>
    %287 = vector.shape_cast %286 : vector<1x64x32xbf16> to vector<64x32xbf16>
    %288 = arith.truncf %285 : vector<16x64xf32> to vector<16x64xbf16>
    %cst_130 = arith.constant dense<0.000000e+00> : vector<16x32xf32>
    %289 = tpu.matmul %288, %287, %cst_130 {dimension_numbers = #tpu.dot_dimension_numbers<[1], [0], [0], [1], [0, 0, 1, 1], [], []>} : vector<16x64xbf16>, vector<64x32xbf16>, vector<16x32xf32> -> vector<16x32xf32>
    %c1_131 = arith.constant 1 : index
    %c0_132 = arith.constant 0 : index
    %c0_133 = arith.constant 0 : index
    %290 = vector.load %arg17[%c1_131, %c0_132, %c0_133] : memref<2x1x32xf32, #tpu.memory_space<vmem>>, vector<1x1x32xf32>
    %291 = vector.shape_cast %290 : vector<1x1x32xf32> to vector<1x32xf32>
    %292 = vector.broadcast %291 : vector<1x32xf32> to vector<16x32xf32>
    %293 = arith.addf %289, %292 : vector<16x32xf32>
    %294 = arith.addf %240, %293 : vector<16x32xf32>
    %cst_134 = arith.constant 4.000000e-01 : f32
    %295 = vector.broadcast %cst_134 : f32 to vector<16x32xf32>
    %296 = arith.mulf %295, %162 : vector<16x32xf32>
    %297 = arith.addf %294, %296 : vector<16x32xf32>
    %c0_135 = arith.constant 0 : index
    %c0_136 = arith.constant 0 : index
    %298 = vector.load %arg18[%c0_135, %c0_136] : memref<1x32xf32, #tpu.memory_space<vmem>>, vector<1x32xf32>
    %c0_137 = arith.constant 0 : index
    %c0_138 = arith.constant 0 : index
    %299 = vector.load %arg19[%c0_137, %c0_138] : memref<1x32xf32, #tpu.memory_space<vmem>>, vector<1x32xf32>
    %cst_139 = arith.constant dense<0.000000e+00> : vector<16xf32>
    %300 = vector.multi_reduction <add>, %297, %cst_139 [1] : vector<16x32xf32> to vector<16xf32>
    %301 = vector.shape_cast %300 : vector<16xf32> to vector<16x1xf32>
    %cst_140 = arith.constant 3.200000e+01 : f32
    %302 = vector.broadcast %cst_140 : f32 to vector<16x1xf32>
    %303 = arith.divf %301, %302 : vector<16x1xf32>
    %304 = vector.broadcast %303 : vector<16x1xf32> to vector<16x32xf32>
    %305 = arith.subf %297, %304 : vector<16x32xf32>
    %306 = arith.mulf %305, %305 : vector<16x32xf32>
    %cst_141 = arith.constant dense<0.000000e+00> : vector<16xf32>
    %307 = vector.multi_reduction <add>, %306, %cst_141 [1] : vector<16x32xf32> to vector<16xf32>
    %308 = vector.shape_cast %307 : vector<16xf32> to vector<16x1xf32>
    %cst_142 = arith.constant 3.200000e+01 : f32
    %309 = vector.broadcast %cst_142 : f32 to vector<16x1xf32>
    %310 = arith.divf %308, %309 : vector<16x1xf32>
    %cst_143 = arith.constant 9.99999974E-6 : f32
    %311 = vector.broadcast %cst_143 : f32 to vector<16x1xf32>
    %312 = arith.addf %310, %311 : vector<16x1xf32>
    %313 = math.rsqrt %312 : vector<16x1xf32>
    %314 = vector.broadcast %313 : vector<16x1xf32> to vector<16x32xf32>
    %315 = arith.mulf %305, %314 : vector<16x32xf32>
    %316 = vector.broadcast %298 : vector<1x32xf32> to vector<16x32xf32>
    %317 = arith.mulf %315, %316 : vector<16x32xf32>
    %318 = vector.broadcast %299 : vector<1x32xf32> to vector<16x32xf32>
    %319 = arith.addf %317, %318 : vector<16x32xf32>
    %c0_144 = arith.constant 0 : index
    %c0_145 = arith.constant 0 : index
    %320 = vector.load %arg20[%c0_144, %c0_145] : memref<32x1xbf16, #tpu.memory_space<vmem>>, vector<32x1xbf16>
    %321 = arith.truncf %319 : vector<16x32xf32> to vector<16x32xbf16>
    %cst_146 = arith.constant dense<0.000000e+00> : vector<16x1xf32>
    %322 = tpu.matmul %321, %320, %cst_146 {dimension_numbers = #tpu.dot_dimension_numbers<[1], [0], [0], [1], [0, 0, 1, 1], [], []>} : vector<16x32xbf16>, vector<32x1xbf16>, vector<16x1xf32> -> vector<16x1xf32>
    %c0_147 = arith.constant 0 : index
    %c0_148 = arith.constant 0 : index
    %323 = vector.load %arg21[%c0_147, %c0_148] : memref<1x1xf32, #tpu.memory_space<vmem>>, vector<1x1xf32>
    %324 = vector.broadcast %323 : vector<1x1xf32> to vector<16x1xf32>
    %325 = arith.addf %322, %324 : vector<16x1xf32>
    %326 = arith.negf %325 : vector<16x1xf32>
    %327 = math.exp %326 : vector<16x1xf32>
    %cst_149 = arith.constant 1.000000e+00 : f32
    %328 = vector.broadcast %cst_149 : f32 to vector<16x1xf32>
    %329 = arith.addf %328, %327 : vector<16x1xf32>
    %330 = arith.divf %328, %329 : vector<16x1xf32>
    %331 = arith.mulf %330, %3 : vector<16x1xf32>
    %332 = vector.broadcast %331 : vector<16x1xf32> to vector<16x32xf32>
    %333 = arith.mulf %319, %332 : vector<16x32xf32>
    %334 = vector.shape_cast %333 : vector<16x32xf32> to vector<2x8x32xf32>
    %cst_150 = arith.constant dense<0.000000e+00> : vector<2x32xf32>
    %335 = vector.multi_reduction <add>, %334, %cst_150 [1] : vector<2x8x32xf32> to vector<2x32xf32>
    %336 = vector.shape_cast %331 : vector<16x1xf32> to vector<2x8x1xf32>
    %cst_151 = arith.constant dense<0.000000e+00> : vector<2x1xf32>
    %337 = vector.multi_reduction <add>, %336, %cst_151 [1] : vector<2x8x1xf32> to vector<2x1xf32>
    %cst_152 = arith.constant 9.99999971E-10 : f32
    %338 = vector.broadcast %cst_152 : f32 to vector<2x1xf32>
    %339 = arith.maximumf %337, %338 : vector<2x1xf32>
    %340 = tpu.reciprocal %339 {approx = true} : vector<2x1xf32> -> vector<2x1xf32>
    %341 = vector.broadcast %340 : vector<2x1xf32> to vector<2x32xf32>
    %342 = arith.mulf %335, %341 : vector<2x32xf32>
    %c0_153 = arith.constant 0 : index
    %c0_154 = arith.constant 0 : index
    %343 = vector.load %arg22[%c0_153, %c0_154] : memref<32x32xbf16, #tpu.memory_space<vmem>>, vector<32x32xbf16>
    %344 = arith.truncf %342 : vector<2x32xf32> to vector<2x32xbf16>
    %cst_155 = arith.constant dense<0.000000e+00> : vector<2x32xf32>
    %345 = tpu.matmul %344, %343, %cst_155 {dimension_numbers = #tpu.dot_dimension_numbers<[1], [0], [0], [1], [0, 0, 1, 1], [], []>} : vector<2x32xbf16>, vector<32x32xbf16>, vector<2x32xf32> -> vector<2x32xf32>
    %c0_156 = arith.constant 0 : index
    %c0_157 = arith.constant 0 : index
    %346 = vector.load %arg23[%c0_156, %c0_157] : memref<1x32xf32, #tpu.memory_space<vmem>>, vector<1x32xf32>
    %347 = vector.broadcast %346 : vector<1x32xf32> to vector<2x32xf32>
    %348 = arith.addf %345, %347 : vector<2x32xf32>
    %c0_158 = arith.constant 0 : index
    %c0_159 = arith.constant 0 : index
    %349 = vector.load %arg24[%c0_158, %c0_159] : memref<1x32xf32, #tpu.memory_space<vmem>>, vector<1x32xf32>
    %c0_160 = arith.constant 0 : index
    %c0_161 = arith.constant 0 : index
    %350 = vector.load %arg25[%c0_160, %c0_161] : memref<1x32xf32, #tpu.memory_space<vmem>>, vector<1x32xf32>
    %cst_162 = arith.constant dense<0.000000e+00> : vector<2xf32>
    %351 = vector.multi_reduction <add>, %348, %cst_162 [1] : vector<2x32xf32> to vector<2xf32>
    %352 = vector.shape_cast %351 : vector<2xf32> to vector<2x1xf32>
    %cst_163 = arith.constant 3.200000e+01 : f32
    %353 = vector.broadcast %cst_163 : f32 to vector<2x1xf32>
    %354 = arith.divf %352, %353 : vector<2x1xf32>
    %355 = vector.broadcast %354 : vector<2x1xf32> to vector<2x32xf32>
    %356 = arith.subf %348, %355 : vector<2x32xf32>
    %357 = arith.mulf %356, %356 : vector<2x32xf32>
    %cst_164 = arith.constant dense<0.000000e+00> : vector<2xf32>
    %358 = vector.multi_reduction <add>, %357, %cst_164 [1] : vector<2x32xf32> to vector<2xf32>
    %359 = vector.shape_cast %358 : vector<2xf32> to vector<2x1xf32>
    %cst_165 = arith.constant 3.200000e+01 : f32
    %360 = vector.broadcast %cst_165 : f32 to vector<2x1xf32>
    %361 = arith.divf %359, %360 : vector<2x1xf32>
    %cst_166 = arith.constant 9.99999974E-6 : f32
    %362 = vector.broadcast %cst_166 : f32 to vector<2x1xf32>
    %363 = arith.addf %361, %362 : vector<2x1xf32>
    %364 = math.rsqrt %363 : vector<2x1xf32>
    %365 = vector.broadcast %364 : vector<2x1xf32> to vector<2x32xf32>
    %366 = arith.mulf %356, %365 : vector<2x32xf32>
    %367 = vector.broadcast %349 : vector<1x32xf32> to vector<2x32xf32>
    %368 = arith.mulf %366, %367 : vector<2x32xf32>
    %369 = vector.broadcast %350 : vector<1x32xf32> to vector<2x32xf32>
    %370 = arith.addf %368, %369 : vector<2x32xf32>
    %cst_167 = arith.constant 5.000000e-01 : f32
    %371 = vector.broadcast %cst_167 : f32 to vector<2x32xf32>
    %372 = arith.mulf %371, %370 : vector<2x32xf32>
    %cst_168 = arith.constant 4.471500e-02 : f32
    %373 = vector.broadcast %cst_168 : f32 to vector<2x32xf32>
    %374 = arith.mulf %373, %370 : vector<2x32xf32>
    %375 = arith.mulf %374, %370 : vector<2x32xf32>
    %376 = arith.mulf %375, %370 : vector<2x32xf32>
    %377 = arith.addf %370, %376 : vector<2x32xf32>
    %cst_169 = arith.constant 0.797884583 : f32
    %378 = vector.broadcast %cst_169 : f32 to vector<2x32xf32>
    %379 = arith.mulf %378, %377 : vector<2x32xf32>
    %380 = math.tanh %379 : vector<2x32xf32>
    %cst_170 = arith.constant 1.000000e+00 : f32
    %381 = vector.broadcast %cst_170 : f32 to vector<2x32xf32>
    %382 = arith.addf %381, %380 : vector<2x32xf32>
    %383 = arith.mulf %372, %382 : vector<2x32xf32>
    %c0_171 = arith.constant 0 : index
    %c0_172 = arith.constant 0 : index
    %384 = vector.load %arg26[%c0_171, %c0_172] : memref<32x128xbf16, #tpu.memory_space<vmem>>, vector<32x128xbf16>
    %385 = arith.truncf %383 : vector<2x32xf32> to vector<2x32xbf16>
    %cst_173 = arith.constant dense<0.000000e+00> : vector<2x128xf32>
    %386 = tpu.matmul %385, %384, %cst_173 {dimension_numbers = #tpu.dot_dimension_numbers<[1], [0], [0], [1], [0, 0, 1, 1], [], []>} : vector<2x32xbf16>, vector<32x128xbf16>, vector<2x128xf32> -> vector<2x128xf32>
    %c0_174 = arith.constant 0 : index
    %c0_175 = arith.constant 0 : index
    %387 = vector.load %arg27[%c0_174, %c0_175] : memref<1x128xf32, #tpu.memory_space<vmem>>, vector<1x128xf32>
    %388 = vector.broadcast %387 : vector<1x128xf32> to vector<2x128xf32>
    %389 = arith.addf %386, %388 : vector<2x128xf32>
    %c0_176 = arith.constant 0 : index
    %c0_177 = arith.constant 0 : index
    %c0_178 = arith.constant 0 : index
    %390 = vector.load %arg28[%c0_176, %c0_177, %c0_178] : memref<2x1x128xf32, #tpu.memory_space<vmem>>, vector<2x1x128xf32>
    %391 = vector.shape_cast %390 : vector<2x1x128xf32> to vector<2x128xf32>
    %392 = vector.shape_cast %389 : vector<2x128xf32> to vector<2x1x128xf32>
    tpu.vector_store %arg28[%c0_176, %c0_177, %c0_178], %392 {strides = array<i32>} : memref<2x1x128xf32, #tpu.memory_space<vmem>>, vector<2x1x128xf32>,
    return
  }
  func.func @transform_0(%arg0: i32) -> (i32, i32, i32) {
    %c0_i32 = arith.constant 0 : i32
    %c0_i32_0 = arith.constant 0 : i32
    %c0_i32_1 = arith.constant 0 : i32
    return %arg0, %c0_i32, %c0_i32_0 : i32, i32, i32
  }
  func.func @transform_1(%arg0: i32) -> (i32, i32, i32) {
    %c0_i32 = arith.constant 0 : i32
    %c0_i32_0 = arith.constant 0 : i32
    %c0_i32_1 = arith.constant 0 : i32
    return %arg0, %c0_i32, %c0_i32_0 : i32, i32, i32
  }
  func.func @transform_2(%arg0: i32) -> (i32, i32, i32) {
    %c0_i32 = arith.constant 0 : i32
    %c0_i32_0 = arith.constant 0 : i32
    %c0_i32_1 = arith.constant 0 : i32
    return %arg0, %c0_i32, %c0_i32_0 : i32, i32, i32
  }
  func.func @transform_3(%arg0: i32) -> (i32, i32) {
    %c0_i32 = arith.constant 0 : i32
    %c0_i32_0 = arith.constant 0 : i32
    %c0_i32_1 = arith.constant 0 : i32
    return %c0_i32, %c0_i32_0 : i32, i32
  }
  func.func @transform_4(%arg0: i32) -> (i32, i32) {
    %c0_i32 = arith.constant 0 : i32
    %c0_i32_0 = arith.constant 0 : i32
    %c0_i32_1 = arith.constant 0 : i32
    return %c0_i32, %c0_i32_0 : i32, i32
  }
  func.func @transform_5(%arg0: i32) -> (i32, i32, i32) {
    %c0_i32 = arith.constant 0 : i32
    %c0_i32_0 = arith.constant 0 : i32
    %c0_i32_1 = arith.constant 0 : i32
    %c0_i32_2 = arith.constant 0 : i32
    return %c0_i32, %c0_i32_0, %c0_i32_1 : i32, i32, i32
  }
  func.func @transform_6(%arg0: i32) -> (i32, i32, i32) {
    %c0_i32 = arith.constant 0 : i32
    %c0_i32_0 = arith.constant 0 : i32
    %c0_i32_1 = arith.constant 0 : i32
    %c0_i32_2 = arith.constant 0 : i32
    return %c0_i32, %c0_i32_0, %c0_i32_1 : i32, i32, i32
  }
  func.func @transform_7(%arg0: i32) -> (i32, i32, i32) {
    %c0_i32 = arith.constant 0 : i32
    %c0_i32_0 = arith.constant 0 : i32
    %c0_i32_1 = arith.constant 0 : i32
    %c0_i32_2 = arith.constant 0 : i32
    return %c0_i32, %c0_i32_0, %c0_i32_1 : i32, i32, i32
  }
  func.func @transform_8(%arg0: i32) -> (i32, i32, i32) {
    %c0_i32 = arith.constant 0 : i32
    %c0_i32_0 = arith.constant 0 : i32
    %c0_i32_1 = arith.constant 0 : i32
    %c0_i32_2 = arith.constant 0 : i32
    return %c0_i32, %c0_i32_0, %c0_i32_1 : i32, i32, i32
  }
  func.func @transform_9(%arg0: i32) -> (i32, i32, i32) {
    %c0_i32 = arith.constant 0 : i32
    %c0_i32_0 = arith.constant 0 : i32
    %c0_i32_1 = arith.constant 0 : i32
    %c0_i32_2 = arith.constant 0 : i32
    return %c0_i32, %c0_i32_0, %c0_i32_1 : i32, i32, i32
  }
  func.func @transform_10(%arg0: i32) -> (i32, i32, i32) {
    %c0_i32 = arith.constant 0 : i32
    %c0_i32_0 = arith.constant 0 : i32
    %c0_i32_1 = arith.constant 0 : i32
    %c0_i32_2 = arith.constant 0 : i32
    return %c0_i32, %c0_i32_0, %c0_i32_1 : i32, i32, i32
  }
  func.func @transform_11(%arg0: i32) -> (i32, i32, i32) {
    %c0_i32 = arith.constant 0 : i32
    %c0_i32_0 = arith.constant 0 : i32
    %c0_i32_1 = arith.constant 0 : i32
    %c0_i32_2 = arith.constant 0 : i32
    return %c0_i32, %c0_i32_0, %c0_i32_1 : i32, i32, i32
  }
  func.func @transform_12(%arg0: i32) -> (i32, i32, i32) {
    %c0_i32 = arith.constant 0 : i32
    %c0_i32_0 = arith.constant 0 : i32
    %c0_i32_1 = arith.constant 0 : i32
    %c0_i32_2 = arith.constant 0 : i32
    return %c0_i32, %c0_i32_0, %c0_i32_1 : i32, i32, i32
  }
  func.func @transform_13(%arg0: i32) -> (i32, i32, i32) {
    %c0_i32 = arith.constant 0 : i32
    %c0_i32_0 = arith.constant 0 : i32
    %c0_i32_1 = arith.constant 0 : i32
    %c0_i32_2 = arith.constant 0 : i32
    return %c0_i32, %c0_i32_0, %c0_i32_1 : i32, i32, i32
  }
  func.func @transform_14(%arg0: i32) -> (i32, i32, i32) {
    %c0_i32 = arith.constant 0 : i32
    %c0_i32_0 = arith.constant 0 : i32
    %c0_i32_1 = arith.constant 0 : i32
    %c0_i32_2 = arith.constant 0 : i32
    return %c0_i32, %c0_i32_0, %c0_i32_1 : i32, i32, i32
  }
  func.func @transform_15(%arg0: i32) -> (i32, i32, i32) {
    %c0_i32 = arith.constant 0 : i32
    %c0_i32_0 = arith.constant 0 : i32
    %c0_i32_1 = arith.constant 0 : i32
    %c0_i32_2 = arith.constant 0 : i32
    return %c0_i32, %c0_i32_0, %c0_i32_1 : i32, i32, i32
  }
  func.func @transform_16(%arg0: i32) -> (i32, i32, i32) {
    %c0_i32 = arith.constant 0 : i32
    %c0_i32_0 = arith.constant 0 : i32
    %c0_i32_1 = arith.constant 0 : i32
    %c0_i32_2 = arith.constant 0 : i32
    return %c0_i32, %c0_i32_0, %c0_i32_1 : i32, i32, i32
  }
  func.func @transform_17(%arg0: i32) -> (i32, i32) {
    %c0_i32 = arith.constant 0 : i32
    %c0_i32_0 = arith.constant 0 : i32
    %c0_i32_1 = arith.constant 0 : i32
    return %c0_i32, %c0_i32_0 : i32, i32
  }
  func.func @transform_18(%arg0: i32) -> (i32, i32) {
    %c0_i32 = arith.constant 0 : i32
    %c0_i32_0 = arith.constant 0 : i32
    %c0_i32_1 = arith.constant 0 : i32
    return %c0_i32, %c0_i32_0 : i32, i32
  }
  func.func @transform_19(%arg0: i32) -> (i32, i32) {
    %c0_i32 = arith.constant 0 : i32
    %c0_i32_0 = arith.constant 0 : i32
    %c0_i32_1 = arith.constant 0 : i32
    return %c0_i32, %c0_i32_0 : i32, i32
  }
  func.func @transform_20(%arg0: i32) -> (i32, i32) {
    %c0_i32 = arith.constant 0 : i32
    %c0_i32_0 = arith.constant 0 : i32
    %c0_i32_1 = arith.constant 0 : i32
    return %c0_i32, %c0_i32_0 : i32, i32
  }
  func.func @transform_21(%arg0: i32) -> (i32, i32) {
    %c0_i32 = arith.constant 0 : i32
    %c0_i32_0 = arith.constant 0 : i32
    %c0_i32_1 = arith.constant 0 : i32
    return %c0_i32, %c0_i32_0 : i32, i32
  }
  func.func @transform_22(%arg0: i32) -> (i32, i32) {
    %c0_i32 = arith.constant 0 : i32
    %c0_i32_0 = arith.constant 0 : i32
    %c0_i32_1 = arith.constant 0 : i32
    return %c0_i32, %c0_i32_0 : i32, i32
  }
  func.func @transform_23(%arg0: i32) -> (i32, i32) {
    %c0_i32 = arith.constant 0 : i32
    %c0_i32_0 = arith.constant 0 : i32
    %c0_i32_1 = arith.constant 0 : i32
    return %c0_i32, %c0_i32_0 : i32, i32
  }
  func.func @transform_24(%arg0: i32) -> (i32, i32) {
    %c0_i32 = arith.constant 0 : i32
    %c0_i32_0 = arith.constant 0 : i32
    %c0_i32_1 = arith.constant 0 : i32
    return %c0_i32, %c0_i32_0 : i32, i32
  }
  func.func @transform_25(%arg0: i32) -> (i32, i32) {
    %c0_i32 = arith.constant 0 : i32
    %c0_i32_0 = arith.constant 0 : i32
    %c0_i32_1 = arith.constant 0 : i32
    return %c0_i32, %c0_i32_0 : i32, i32
  }
  func.func @transform_26(%arg0: i32) -> (i32, i32) {
    %c0_i32 = arith.constant 0 : i32
    %c0_i32_0 = arith.constant 0 : i32
    %c0_i32_1 = arith.constant 0 : i32
    return %c0_i32, %c0_i32_0 : i32, i32
  }
  func.func @transform_27(%arg0: i32) -> (i32, i32, i32) {
    %c0_i32 = arith.constant 0 : i32
    %c0_i32_0 = arith.constant 0 : i32
    %c0_i32_1 = arith.constant 0 : i32
    return %arg0, %c0_i32, %c0_i32_0 : i32, i32, i32
  }
}

</mosaic_0001>

<bundles_post_ra>
// kernel: transformer_forward.1
= control target key start
LH: loop header
LB: loop body
LE: loop exit
PB: predicated region body
PF: predicated region fallthrough
CT: control target
= control target key end

     0   :  { %s4911_s0 = inlined_call_operand.vmem [shape: f32[2,8,32], index: 0, kind: input, shape index: {}]   ;;  %s4912_s1 = inlined_call_operand.vmem [shape: f32[2,1,8], index: 1, kind: input, shape index: {}]   ;;  %s4913_s2 = inlined_call_operand.vmem [shape: f32[2,8,1], index: 2, kind: input, shape index: {}]   ;;  %s4914_s3 = inlined_call_operand.vmem [shape: f32[1,32], index: 3, kind: input, shape index: {}]   ;;  %s4915_s4 = inlined_call_operand.vmem [shape: f32[1,32], index: 4, kind: input, shape index: {}]   ;;  %s4916_s5 = inlined_call_operand.vmem [shape: f32[2,1,32], index: 5, kind: input, shape index: {}]   ;;  %s4917_s6 = inlined_call_operand.vmem [shape: f32[2,1,32], index: 6, kind: input, shape index: {}]   ;;  %s4918_s7 = inlined_call_operand.vmem [shape: bf16[2,32,96], index: 7, kind: input, shape index: {}]   ;;  %s4919_s8 = inlined_call_operand.vmem [shape: f32[2,1,96], index: 8, kind: input, shape index: {}]   ;;  %s4920_s9 = inlined_call_operand.vmem [shape: bf16[2,32,32], index: 9, kind: input, shape index: {}]   ;;  %s4921_s10 = inlined_call_operand.vmem [shape: f32[2,1,32], index: 10, kind: input, shape index: {}]   ;;  %s4922_s11 = inlined_call_operand.vmem [shape: f32[2,1,32], index: 11, kind: input, shape index: {}]   ;;  %s4923_s12 = inlined_call_operand.vmem [shape: f32[2,1,32], index: 12, kind: input, shape index: {}]   ;;  %s4924_s13 = inlined_call_operand.vmem [shape: bf16[2,32,64], index: 13, kind: input, shape index: {}]   ;;  %s4925_s14 = inlined_call_operand.vmem [shape: f32[2,1,64], index: 14, kind: input, shape index: {}]   ;;  %s4926_s15 = inlined_call_operand.vmem [shape: bf16[2,64,32], index: 15, kind: input, shape index: {}]   ;;  %s4927_s16 = inlined_call_operand.vmem [shape: f32[2,1,32], index: 16, kind: input, shape index: {}]   ;;  %s4928_s17 = inlined_call_operand.vmem [shape: f32[1,32], index: 17, kind: input, shape index: {}]   ;;  %s4929_s18 = inlined_call_operand.vmem [shape: f32[1,32], index: 18, kind: input, shape index: {}]   ;;  %s4930_s19 = inlined_call_operand.vmem [shape: bf16[32,1], index: 19, kind: input, shape index: {}]   ;;  %s4931_s20 = inlined_call_operand.<no memory space> [shape: f32[1,1], index: 20, kind: input, shape index: {}]   ;;  %s4932_s21 = inlined_call_operand.vmem [shape: bf16[32,32], index: 21, kind: input, shape index: {}]   ;;  %s4933_s22 = inlined_call_operand.vmem [shape: f32[1,32], index: 22, kind: input, shape index: {}]   ;;  %s4934_s23 = inlined_call_operand.vmem [shape: f32[1,32], index: 23, kind: input, shape index: {}]   ;;  %s4935_s24 = inlined_call_operand.vmem [shape: f32[1,32], index: 24, kind: input, shape index: {}]   ;;  %s4936_s25 = inlined_call_operand.vmem [shape: bf16[32,128], index: 25, kind: input, shape index: {}]   ;;  %s4937_s26 = inlined_call_operand.vmem [shape: f32[1,128], index: 26, kind: input, shape index: {}]   ;;  %s4938_s27 = inlined_call_operand.hbm [shape: f32[2,1,128], index: 27, kind: output, shape index: {}]  }
   0x1   :  { %4963 = sst [smem:[#allocation6_spill]] %s4911_s0  ;;  %v32_v0 = vstv %s4931_s20 }
   0x2   :  { %4964 = sst [smem:[#allocation7_spill]] %s4912_s1  ;;  %33 = vst [vmem:[#allocation2] sm:$0x1] %v32_v0 }
   0x3   :  { %4965 = sst [smem:[#allocation8_spill]] %s4913_s2 }
   0x4   :  { %4966 = sst [smem:[#allocation9_spill]] %s4914_s3 }
   0x5   :  { %4967 = sst [smem:[#allocation10_spill]] %s4915_s4 }
   0x6   :  { %4968 = sst [smem:[#allocation11_spill]] %s4916_s5 }
   0x7   :  { %4969 = sst [smem:[#allocation12_spill]] %s4917_s6 }
   0x8   :  { %4970 = sst [smem:[#allocation13_spill]] %s4918_s7 }
   0x9   :  { %4971 = sst [smem:[#allocation14_spill]] %s4919_s8 }
   0xa   :  { %4972 = sst [smem:[#allocation15_spill]] %s4920_s9 }
   0xb   :  { %4973 = sst [smem:[#allocation16_spill]] %s4921_s10 }
   0xc   :  { %4974 = sst [smem:[#allocation17_spill]] %s4922_s11 }
   0xd   :  { %s4975_s9 = sld [smem:[#allocation6_spill]]  ;;  %vm98_vm0 = vcmask 261120  }
  0x13   :  { %v90_v1 = vld [vmem:[%s4975_s9] sm:$0xff]  ;;  %v91_v2 = vld [vmem:[%s4975_s9 + $0x8] sm:$0xff] }
  0x14   :  { %v99_v3 = vsel %vm98_vm0, %v90_v1, 0.0  ;;  %v102_v4 = vsel %vm98_vm0, %v91_v2, 0.0 }
  0x15   :  { %100 = vadd.xlane.f32.xlu0 %v99_v3 }
  0x19   :  { %103 = vadd.xlane.f32.xlu0 %v102_v4 }
  0x1a   :  { %34 = vsyncpa [#allocation4], 0  ;;  %s4976_s10 = sld [smem:[#allocation9_spill]]  ;;  %s4977_s6 = sld [smem:[#allocation10_spill]]  ;;  %v4017_v44 = vmov 0.0   ;;  %vm4018_vm1 = vmmov 0  }
  0x1b   :  { %s4978_s3 = sld [smem:[#allocation13_spill]]  ;;  %3519 = vmatprep.subr.bf16.mxu0 %v4017_v44  ;;  %3523 = vmatprep.mubr.msk.bf16.mxu0 %vm4018_vm1, %v4017_v44  ;;  %s4979_s9 = sld [smem:[#allocation11_spill]]  ;;  %vm301_vm2 = vcmask 64512   ;;  %vm812_vm3 = vcmask 1043456   ;;  %vm1218_vm4 = vcmask 130048   ;;  %vm1221_vm5 = vcmask 195584  }
  0x1c   :  { %3527 = vmatprep.subr.bf16.mxu1 %v4017_v44  ;;  %3529 = vmatprep.mubr.msk.bf16.mxu1 %vm4018_vm1, %v4017_v44  ;;  %s4980_s20 = sld [smem:[#allocation12_spill]]  ;;  %s4981_s29 = sld [smem:[#allocation14_spill]]  ;;  %vm1464_vm6 = vcmask 523264   ;;  %vm3035_vm7 = vcmask 7168   ;;  %vm3083_vm8 = vcmask 1041409   ;;  %vm3143_vm9 = vcmask 254976  }
  0x1d   :  { %s4961_s1 = smov 104   ;;  %s4959_s11 = smov 80  }
  0x1e   :  { %s4955_s2 = smov 120   ;;  %s4982_s8 = sld [smem:[#allocation7_spill]] }
  0x1f   :  { %s4953_s28 = smov 112   ;;  %s4949_s0 = smov 8  }
  0x20   :  { %v3290_v22 = vld [vmem:[%s4976_s10] ss:$0 sm:$0xff]  ;;  %s4983_s4 = sld [smem:[#allocation15_spill]]  ;;  %s4951_s30 = smov 16  }
  0x21   :  { %v3291_v24 = vld [vmem:[%s4977_s6] ss:$0 sm:$0xff]  ;;  %v3854_v45 = vld [vmem:[%s4978_s3 + $0x8] sm:$0xff]   ;;  %s4957_s6 = smov 56   ;;  %s4950_s10 = smov 24  }
  0x22   :  { %v3853_v43 = vld [vmem:[%s4978_s3] sm:$0xff]   ;;  %s4984_s5 = sld [smem:[#allocation16_spill]]  ;;  %s4988_s7 = smov 56  }
  0x23   :  { %3520 = vmatpush3.bf16.msra.mxu0 %v3853_v43  ;;  %v3292_v54 = vld [vmem:[%s4979_s9] ss:$0 sm:$0xff] }
  0x24   :  { %3521 = vmatprep.subr.bf16.mxu0 %v4017_v44  ;;  %v3293_v58 = vld [vmem:[%s4980_s20] ss:$0 sm:$0xff] }
  0x25   :  { %v3294_v63 = vld [vmem:[%s4981_s29] ss:$0 sm:$0xff] }
  0x27   :  { %3522 = vmatpush3.bf16.msra.mxu0 %v3854_v45 }
  0x28   :  { %3533 = vmatprep.subr.bf16.mxu0 %v4017_v44 }
  0xa2   :  { %v101_v5 = vpop.xlane.xlu0 %100 }
  0xa3   :  { %v106_v6 = vmul.f32 0.03125, %v101_v5 }
  0xa5   :  { %v108_v7 = vsub.f32 %v90_v1, %v106_v6 }
  0xa6   :  { %v104_v8 = vpop.xlane.xlu0 %103 }
  0xa7   :  { %v107_v9 = vmul.f32 0.03125, %v104_v8  ;;  %v110_v10 = vmul.f32 %v108_v7, %v108_v7 }
  0xa9   :  { %v109_v11 = vsub.f32 %v91_v2, %v107_v9  ;;  %v112_v12 = vsel %vm98_vm0, %v110_v10, 0.0 }
  0xaa   :  { %113 = vadd.xlane.f32.xlu1 %v112_v12 }
  0xab   :  { %v111_v13 = vmul.f32 %v109_v11, %v109_v11 }
  0xad   :  { %v115_v14 = vsel %vm98_vm0, %v111_v13, 0.0 }
  0xae   :  { %116 = vadd.xlane.f32.xlu1 %v115_v14 }
 0x137   :  { %v114_v15 = vpop.xlane.xlu1 %113 }
 0x138   :  { %v118_v16 = vmul.f32 0.03125, %v114_v15 }
 0x13a   :  { %v120_v17 = vadd.f32 1e-05, %v118_v16 }
 0x13b   :  { %v117_v18 = vpop.xlane.xlu1 %116 }
 0x13c   :  { %3879 = vrsqrt.f32 %v120_v17  ;;  %v119_v19 = vmul.f32 0.03125, %v117_v18 }
 0x13e   :  { %v121_v20 = vadd.f32 1e-05, %v119_v19 }
 0x140   :  { %3881 = vrsqrt.f32 %v121_v20 }
 0x146   :  { %v3880_v21 = vpop.eup %3879 }
 0x147   :  { %v124_v23 = vmul.f32 %v3880_v21, %v108_v7 }
 0x149   :  { %v132_v25 = vmul.f32 %v3290_v22, %v124_v23 }
 0x14a   :  { %v3882_v26 = vpop.eup %3881 }
 0x14b   :  { %v4190_v27 = vadd.f32 %v3291_v24, %v132_v25  ;;  %v125_v28 = vmul.f32 %v3882_v26, %v109_v11 }
 0x14d   :  { %v144_v29 = vsel %vm98_vm0, %v4190_v27, 0.0  ;;  %v133_v30 = vmul.f32 %v3290_v22, %v125_v28 }
 0x14e   :  { %145 = vadd.xlane.f32.xlu0 %v144_v29 }
 0x14f   :  { %v4194_v31 = vadd.f32 %v3291_v24, %v133_v30 }
 0x151   :  { %v147_v32 = vsel %vm98_vm0, %v4194_v31, 0.0 }
 0x152   :  { %148 = vadd.xlane.f32.xlu1 %v147_v32 }
 0x1db   :  { %v146_v33 = vpop.xlane.xlu0 %145 }
 0x1dc   :  { %v150_v34 = vmul.f32 0.03125, %v146_v33 }
 0x1de   :  { %v152_v35 = vsub.f32 %v4190_v27, %v150_v34 }
 0x1df   :  { %v149_v36 = vpop.xlane.xlu1 %148 }
 0x1e0   :  { %v151_v37 = vmul.f32 0.03125, %v149_v36  ;;  %v154_v38 = vmul.f32 %v152_v35, %v152_v35 }
 0x1e2   :  { %v153_v39 = vsub.f32 %v4194_v31, %v151_v37  ;;  %v156_v40 = vsel %vm98_vm0, %v154_v38, 0.0 }
 0x1e3   :  { %157 = vadd.xlane.f32.xlu0 %v156_v40 }
 0x1e4   :  { %v155_v41 = vmul.f32 %v153_v39, %v153_v39 }
 0x1e6   :  { %v159_v42 = vsel %vm98_vm0, %v155_v41, 0.0 }
 0x1e7   :  { %160 = vadd.xlane.f32.xlu1 %v159_v42 }
 0x270   :  { %v158_v46 = vpop.xlane.xlu0 %157 }
 0x271   :  { %v162_v47 = vmul.f32 0.03125, %v158_v46 }
 0x273   :  { %v164_v48 = vadd.f32 1e-05, %v162_v47 }
 0x274   :  { %v161_v49 = vpop.xlane.xlu1 %160 }
 0x275   :  { %3883 = vrsqrt.f32 %v164_v48  ;;  %v163_v50 = vmul.f32 0.03125, %v161_v49 }
 0x277   :  { %v165_v51 = vadd.f32 1e-05, %v163_v50 }
 0x279   :  { %3885 = vrsqrt.f32 %v165_v51 }
 0x27f   :  { %v3884_v52 = vpop.eup %3883 }
 0x280   :  { %v168_v53 = vmul.f32 %v3884_v52, %v152_v35 }
 0x282   :  { %v176_v57 = vmul.f32 %v3292_v54, %v168_v53 }
 0x283   :  { %v3886_v55 = vpop.eup %3885 }
 0x284   :  { %v169_v56 = vmul.f32 %v3886_v55, %v153_v39  ;;  %v184_v60 = vadd.f32 %v3293_v58, %v176_v57  ;;  %v3306_v55 = vld [vmem:[%s4982_s8] ss:$0 sm:$0xff] }
 0x286   :  { %v177_v59 = vmul.f32 %v3292_v54, %v169_v56 }
 0x288   :  { %v185_v61 = vadd.f32 %v3293_v58, %v177_v59 }
 0x28a   :  { %v190_v62 = vpack.c.bf16 %v185_v61, %v184_v60 }
 0x28c   :  { %3524 = vmatmul.mubr.msk.bf16.vlgmr.msra.gmra.mrb[0].mxu0 %vm98_vm0, %v190_v62  ;;  %v3307_v62 = vld [vmem:[%s4982_s8 + $0x1] ss:$0 sm:$0xff] }
 0x28d   :  { %3535 = vmatprep.mubr.msk.bf16.mxu0 %vm4018_vm1, %v4017_v44 }
 0x35f   :  { %v247_v0 = vpop.f32.mrb[0].mxu0 }
 0x360   :  { %v248_v1 = vadd.f32 %v3294_v63, %v247_v0  ;;  %v3525_v2 = vpop.f32.mrb[1].mxu0 }
 0x361   :  { %v250_v3 = vpop.f32.mrb[2].mxu0 }
 0x362   :  { %v251_v4 = vadd.f32 %v3294_v63, %v250_v3  ;;  %256 = vrot.lane.b32.xlu0 %v248_v1, %s4961_s1  ;;  %v3526_v5 = vpop.f32.mrb[3].mxu0  ;;  %v4232_v6 = vpack.c.bf16 %v248_v1, %v248_v1  ;;  %v274_v20 = vmul.f32 0.35355338, %v248_v1 }
 0x364   :  { %258 = vrot.lane.b32.xlu1 %v251_v4, %s4961_s1  ;;  %v4238_v7 = vpack.c.bf16 %v251_v4, %v251_v4  ;;  %v282_v23 = vpack.c.bf16 %v274_v20, %v274_v20  ;;  %v275_v26 = vmul.f32 0.35355338, %v251_v4 }
 0x366   :  { %268 = vrot.lane.b32.xlu0 %v248_v1, %s4957_s6  ;;  %v283_v28 = vpack.c.bf16 %v275_v26, %v275_v26 }
 0x368   :  { %262 = vrot.lane.b32.xlu1 %v248_v1, %s4959_s11 }
 0x36a   :  { %299 = vrot.lane.b32.xlu0 %v4232_v6, %s4955_s2 }
 0x36c   :  { %264 = vrot.lane.b32.xlu1 %v251_v4, %s4959_s11 }
 0x370   :  { %270 = vrot.lane.b32.xlu1 %v251_v4, %s4957_s6 }
 0x374   :  { %349 = vrot.lane.b32.xlu1 %v4238_v7, %s4955_s2 }
 0x3d4   :  { %v257_v8 = vpop.permute.xlu0 %256 }
 0x3d5   :  { %v4242_v9 = vpack.c.bf16 %v257_v8, %v257_v8  ;;  %v276_v33 = vmul.f32 0.35355338, %v257_v8 }
 0x3d6   :  { %v259_v10 = vpop.permute.xlu1 %258 }
 0x3d7   :  { %v4244_v11 = vpack.c.bf16 %v259_v10, %v259_v10  ;;  %398 = vrot.lane.b32.xlu0 %v4242_v9, %s4955_s2  ;;  %v277_v35 = vmul.f32 0.35355338, %v259_v10  ;;  %v284_v37 = vpack.c.bf16 %v276_v33, %v276_v33 }
 0x3d8   :  { %v4248_v12 = vpop.permute.xlu0 %268 }
 0x3d9   :  { %447 = vrot.lane.b32.xlu1 %v4244_v11, %s4955_s2  ;;  %v4259_v18 = vpack.c.bf16 %v4248_v12, %v4248_v12  ;;  %v285_v38 = vpack.c.bf16 %v277_v35, %v277_v35  ;;  %v280_v50 = vmul.f32 0.35355338, %v4248_v12 }
 0x3da   :  { %v263_v13 = vpop.permute.xlu1 %262 }
 0x3db   :  { %v4252_v14 = vpack.c.bf16 %v263_v13, %v263_v13  ;;  %v278_v41 = vmul.f32 0.35355338, %v263_v13  ;;  %v288_v53 = vpack.c.bf16 %v280_v50, %v280_v50 }
 0x3dc   :  { %v300_v15 = vpop.permute.xlu0 %299 }
 0x3dd   :  { %496 = vrot.lane.b32.xlu0 %v4252_v14, %s4955_s2  ;;  %v306_v16 = vsel %vm301_vm2, %v300_v15, 0  ;;  %v286_v46 = vpack.c.bf16 %v278_v41, %v278_v41 }
 0x3de   :  { %3528 = vmatpush3.bf16.xpose.msra.mxu1 %v306_v16  ;;  %v265_v17 = vpop.permute.xlu1 %264 }
 0x3df   :  { %v4261_v19 = vpack.c.bf16 %v265_v17, %v265_v17  ;;  %3539 = vmatprep.subr.bf16.mxu1 %v4017_v44  ;;  %v279_v43 = vmul.f32 0.35355338, %v265_v17 }
 0x3e1   :  { %594 = vrot.lane.b32.xlu0 %v4259_v18, %s4955_s2  ;;  %545 = vrot.lane.b32.xlu1 %v4261_v19, %s4955_s2  ;;  %v287_v48 = vpack.c.bf16 %v279_v43, %v279_v43 }
 0x3e2   :  { %v271_v21 = vpop.permute.xlu1 %270 }
 0x3e3   :  { %v4268_v22 = vpack.c.bf16 %v271_v21, %v271_v21  ;;  %v281_v52 = vmul.f32 0.35355338, %v271_v21 }
 0x3e5   :  { %3530 = vmatmul.mubr.msk.bf16.vlgmr.msra.gmra.mrb[0].mxu1 %vm301_vm2, %v282_v23  ;;  %643 = vrot.lane.b32.xlu1 %v4268_v22, %s4955_s2  ;;  %v289_v54 = vpack.c.bf16 %v281_v52, %v281_v52 }
 0x3e6   :  { %v350_v24 = vpop.permute.xlu1 %349  ;;  %3541 = vmatprep.mubr.msk.bf16.mxu1 %vm4018_vm1, %v4017_v44 }
 0x3e7   :  { %v355_v25 = vsel %vm301_vm2, %v350_v24, 0 }
 0x3e8   :  { %3534 = vmatpush3.bf16.xpose.msra.mxu0 %v355_v25 }
 0x3e9   :  { %3545 = vmatprep.subr.bf16.mxu0 %v4017_v44 }
 0x3ef   :  { %3536 = vmatmul.mubr.msk.bf16.vlgmr.msra.gmra.mrb[4].mxu0 %vm301_vm2, %v283_v28 }
 0x3f0   :  { %3547 = vmatprep.mubr.msk.bf16.mxu0 %vm4018_vm1, %v4017_v44 }
 0x449   :  { %v399_v29 = vpop.permute.xlu0 %398 }
 0x44a   :  { %v404_v30 = vsel %vm301_vm2, %v399_v29, 0 }
 0x44b   :  { %3540 = vmatpush3.bf16.xpose.msra.mxu1 %v404_v30  ;;  %v448_v32 = vpop.permute.xlu1 %447 }
 0x44c   :  { %v453_v34 = vsel %vm301_vm2, %v448_v32, 0  ;;  %3551 = vmatprep.subr.bf16.mxu1 %v4017_v44 }
 0x44d   :  { %3546 = vmatpush3.bf16.xpose.msra.mxu0 %v453_v34 }
 0x44e   :  { %3557 = vmatprep.subr.bf16.mxu0 %v4017_v44 }
 0x44f   :  { %v497_v36 = vpop.permute.xlu0 %496 }
 0x450   :  { %v502_v39 = vsel %vm301_vm2, %v497_v36, 0 }
 0x452   :  { %3542 = vmatmul.mubr.msk.bf16.vlgmr.msra.gmra.mrb[4].mxu1 %vm301_vm2, %v284_v37 }
 0x453   :  { %3552 = vmatpush3.bf16.xpose.msra.mxu1 %v502_v39  ;;  %v546_v40 = vpop.permute.xlu1 %545  ;;  %3553 = vmatprep.mubr.msk.bf16.mxu1 %vm4018_vm1, %v4017_v44  ;;  %v595_v45 = vpop.permute.xlu0 %594 }
 0x454   :  { %v551_v42 = vsel %vm301_vm2, %v546_v40, 0  ;;  %3548 = vmatmul.mubr.msk.bf16.vlgmr.msra.gmra.mrb[8].mxu0 %vm301_vm2, %v285_v38  ;;  %3563 = vmatprep.subr.bf16.mxu1 %v4017_v44  ;;  %v600_v49 = vsel %vm301_vm2, %v595_v45, 0 }
 0x455   :  { %3558 = vmatpush3.bf16.xpose.msra.mxu0 %v551_v42  ;;  %3559 = vmatprep.mubr.msk.bf16.mxu0 %vm4018_vm1, %v4017_v44 }
 0x456   :  { %3569 = vmatprep.subr.bf16.mxu0 %v4017_v44 }
 0x457   :  { %v644_v47 = vpop.permute.xlu1 %643 }
 0x458   :  { %v649_v51 = vsel %vm301_vm2, %v644_v47, 0 }
 0x45a   :  { %3554 = vmatmul.mubr.msk.bf16.vlgmr.msra.gmra.mrb[8].mxu1 %vm301_vm2, %v286_v46 }
 0x45b   :  { %3564 = vmatpush3.bf16.xpose.msra.mxu1 %v600_v49  ;;  %3565 = vmatprep.mubr.msk.bf16.mxu1 %vm4018_vm1, %v4017_v44 }
 0x45c   :  { %3560 = vmatmul.mubr.msk.bf16.vlgmr.msra.gmra.mrb[12].mxu0 %vm301_vm2, %v287_v48  ;;  %3575 = vmatprep.subr.bf16.mxu1 %v4017_v44 }
 0x45d   :  { %3570 = vmatpush3.bf16.xpose.msra.mxu0 %v649_v51  ;;  %3571 = vmatprep.mubr.msk.bf16.mxu0 %vm4018_vm1, %v4017_v44 }
 0x45e   :  { %3581 = vmatprep.subr.bf16.mxu0 %v4017_v44 }
 0x462   :  { %3566 = vmatmul.mubr.msk.bf16.vlgmr.msra.gmra.mrb[12].mxu1 %vm301_vm2, %v288_v53 }
 0x463   :  { %3577 = vmatprep.mubr.msk.bf16.mxu1 %vm4018_vm1, %v4017_v44 }
 0x464   :  { %3572 = vmatmul.mubr.msk.bf16.vlgmr.msra.gmra.mrb[16].mxu0 %vm301_vm2, %v289_v54 }
 0x465   :  { %3583 = vmatprep.mubr.msk.bf16.mxu0 %vm4018_vm1, %v4017_v44 }
 0x4b8   :  { %v342_v56 = vpop.f32.mrb[0].mxu1 }
 0x4b9   :  { %v703_v57 = vadd.f32 %v3306_v55, %v342_v56  ;;  %v3531_v58 = vpop.f32.mrb[1].mxu1 }
 0x4ba   :  { %v345_v59 = vpop.f32.mrb[2].mxu1 }
 0x4bb   :  { %v3532_v60 = vpop.f32.mrb[3].mxu1  ;;  %v711_v61 = vsel %vm301_vm2, %v703_v57, -inf }
 0x4bc   :  { %712 = vmax.xlane.f32.xlu0 %v711_v61 }
 0x4c2   :  { %v391_v63 = vpop.f32.mrb[4].mxu0 }
 0x4c3   :  { %v704_v0 = vadd.f32 %v3307_v62, %v391_v63  ;;  %v3537_v1 = vpop.f32.mrb[5].mxu0 }
 0x4c4   :  { %v394_v2 = vpop.f32.mrb[6].mxu0 }
 0x4c5   :  { %v3538_v3 = vpop.f32.mrb[7].mxu0  ;;  %v714_v4 = vsel %vm301_vm2, %v704_v0, -inf }
 0x4c6   :  { %715 = vmax.xlane.f32.xlu1 %v714_v4 }
 0x525   :  { %v440_v5 = vpop.f32.mrb[4].mxu1 }
 0x526   :  { %v4319_v8 = vadd.f32 %v3306_v55, %v440_v5  ;;  %v3543_v10 = vpop.f32.mrb[5].mxu1 }
 0x527   :  { %v443_v12 = vpop.f32.mrb[6].mxu1  ;;  %v489_v13 = vpop.f32.mrb[8].mxu0 }
 0x528   :  { %v4321_v15 = vadd.f32 %v3307_v62, %v489_v13  ;;  %v3544_v16 = vpop.f32.mrb[7].mxu1  ;;  %v3549_v17 = vpop.f32.mrb[9].mxu0  ;;  %v717_v20 = vsel %vm301_vm2, %v4319_v8, -inf }
 0x529   :  { %718 = vmax.xlane.f32.xlu0 %v717_v20  ;;  %v492_v21 = vpop.f32.mrb[10].mxu0 }
 0x52a   :  { %v3550_v23 = vpop.f32.mrb[11].mxu0  ;;  %v720_v24 = vsel %vm301_vm2, %v4321_v15, -inf }
 0x52d   :  { %v538_v25 = vpop.f32.mrb[8].mxu1  ;;  %721 = vmax.xlane.f32.xlu0 %v720_v24 }
 0x52e   :  { %v4327_v26 = vadd.f32 %v3306_v55, %v538_v25  ;;  %v3555_v28 = vpop.f32.mrb[9].mxu1 }
 0x52f   :  { %v541_v29 = vpop.f32.mrb[10].mxu1  ;;  %v587_v30 = vpop.f32.mrb[12].mxu0 }
 0x530   :  { %v4329_v32 = vadd.f32 %v3307_v62, %v587_v30  ;;  %v3556_v33 = vpop.f32.mrb[11].mxu1  ;;  %v3561_v34 = vpop.f32.mrb[13].mxu0  ;;  %v723_v35 = vsel %vm301_vm2, %v4327_v26, -inf }
 0x531   :  { %724 = vmax.xlane.f32.xlu0 %v723_v35  ;;  %v590_v36 = vpop.f32.mrb[14].mxu0 }
 0x532   :  { %v3562_v37 = vpop.f32.mrb[15].mxu0  ;;  %v726_v38 = vsel %vm301_vm2, %v4329_v32, -inf }
 0x533   :  { %727 = vmax.xlane.f32.xlu1 %v726_v38 }
 0x535   :  { %v636_v39 = vpop.f32.mrb[12].mxu1 }
 0x536   :  { %v4335_v40 = vadd.f32 %v3306_v55, %v636_v39  ;;  %v3567_v41 = vpop.f32.mrb[13].mxu1 }
 0x537   :  { %v639_v42 = vpop.f32.mrb[14].mxu1  ;;  %v685_v43 = vpop.f32.mrb[16].mxu0 }
 0x538   :  { %v3568_v45 = vpop.f32.mrb[15].mxu1  ;;  %v3573_v46 = vpop.f32.mrb[17].mxu0  ;;  %v729_v47 = vsel %vm301_vm2, %v4335_v40, -inf  ;;  %v710_v53 = vadd.f32 %v3307_v62, %v685_v43 }
 0x539   :  { %730 = vmax.xlane.f32.xlu0 %v729_v47  ;;  %v688_v48 = vpop.f32.mrb[18].mxu0 }
 0x53a   :  { %v3574_v49 = vpop.f32.mrb[19].mxu0  ;;  %v732_v55 = vsel %vm301_vm2, %v710_v53, -inf }
 0x544   :  { %856 = vrot.lane.b32.xlu1 %v4238_v7, %s4953_s28 }
 0x548   :  { %904 = vrot.lane.b32.xlu1 %v4242_v9, %s4953_s28 }
 0x549   :  { %v713_v50 = vpop.xlane.xlu0 %712 }
 0x54a   :  { %v735_v51 = vsub.f32 %v703_v57, %v713_v50 }
 0x54c   :  { %v743_v52 = vmul.f32 1.442695, %v735_v51 }
 0x54e   :  { %3887 = vpow2.f32 %v743_v52 }
 0x54f   :  { %807 = vrot.lane.b32.xlu0 %v4232_v6, %s4953_s28 }
 0x553   :  { %v716_v7 = vpop.xlane.xlu1 %715 }
 0x554   :  { %v736_v9 = vsub.f32 %v704_v0, %v716_v7 }
 0x556   :  { %v745_v6 = vmul.f32 1.442695, %v736_v9 }
 0x558   :  { %v4345_v54 = vpop.eup %3887  ;;  %3889 = vpow2.f32 %v745_v6 }
 0x559   :  { %v759_v56 = vsel %vm301_vm2, %v4345_v54, 0.0 }
 0x562   :  { %v4352_v57 = vpop.eup %3889 }
 0x563   :  { %v762_v58 = vsel %vm301_vm2, %v4352_v57, 0.0 }
 0x56c   :  { %733 = vmax.xlane.f32.xlu1 %v732_v55 }
 0x56e   :  { %760 = vadd.xlane.f32.xlu0 %v759_v56 }
 0x57d   :  { %952 = vrot.lane.b32.xlu1 %v4244_v11, %s4953_s28 }
 0x5a1   :  { %763 = vadd.xlane.f32.xlu1 %v762_v58 }
 0x5b2   :  { %1048 = vrot.lane.b32.xlu1 %v4261_v19, %s4953_s28 }
 0x5b6   :  { %v719_v59 = vpop.xlane.xlu0 %718 }
 0x5b7   :  { %v737_v60 = vsub.f32 %v4319_v8, %v719_v59 }
 0x5b9   :  { %v747_v61 = vmul.f32 1.442695, %v737_v60 }
 0x5ba   :  { %v722_v62 = vpop.xlane.xlu0 %721 }
 0x5bb   :  { %3891 = vpow2.f32 %v747_v61  ;;  %v738_v11 = vsub.f32 %v4321_v15, %v722_v62 }
 0x5bd   :  { %v749_v1 = vmul.f32 1.442695, %v738_v11 }
 0x5be   :  { %v725_v0 = vpop.xlane.xlu0 %724 }
 0x5bf   :  { %3893 = vpow2.f32 %v749_v1  ;;  %v739_v21 = vsub.f32 %v4327_v26, %v725_v0 }
 0x5c0   :  { %v728_v63 = vpop.xlane.xlu1 %727 }
 0x5c1   :  { %v740_v2 = vsub.f32 %v4329_v32, %v728_v63  ;;  %v751_v23 = vmul.f32 1.442695, %v739_v21 }
 0x5c3   :  { %v753_v10 = vmul.f32 1.442695, %v740_v2 }
 0x5c4   :  { %v857_v3 = vpop.permute.xlu1 %856 }
 0x5c5   :  { %v4361_v4 = vpop.eup %3891  ;;  %v862_v5 = vsel %vm812_vm3, %v857_v3, 0  ;;  %3895 = vpow2.f32 %v753_v10 }
 0x5c6   :  { %v731_v19 = vpop.xlane.xlu0 %730  ;;  %3582 = vmatpush3.bf16.msra.mxu0 %v862_v5  ;;  %v765_v8 = vsel %vm301_vm2, %v4361_v4, 0.0  ;;  %3897 = vpow2.f32 %v751_v23 }
 0x5c7   :  { %766 = vadd.xlane.f32.xlu0 %v765_v8  ;;  %3593 = vmatprep.subr.bf16.mxu0 %v4017_v44  ;;  %v741_v24 = vsub.f32 %v4335_v40, %v731_v19 }
 0x5c8   :  { %v905_v28 = vpop.permute.xlu1 %904 }
 0x5c9   :  { %v4369_v15 = vpop.eup %3893  ;;  %v755_v25 = vmul.f32 1.442695, %v741_v24  ;;  %v910_v41 = vsel %vm812_vm3, %v905_v28, 0 }
 0x5ca   :  { %v808_v12 = vpop.permute.xlu0 %807  ;;  %v768_v16 = vsel %vm301_vm2, %v4369_v15, 0.0 }
 0x5cb   :  { %v814_v13 = vsel %vm812_vm3, %v808_v12, 0  ;;  %3899 = vpow2.f32 %v755_v25 }
 0x5cc   :  { %3576 = vmatpush3.bf16.msra.mxu1 %v814_v13 }
 0x5cd   :  { %3587 = vmatprep.subr.bf16.mxu1 %v4017_v44 }
 0x5cf   :  { %v4373_v17 = vpop.eup %3895 }
 0x5d0   :  { %v774_v20 = vsel %vm301_vm2, %v4373_v17, 0.0  ;;  %v4381_v29 = vpop.eup %3897 }
 0x5d1   :  { %v771_v34 = vsel %vm301_vm2, %v4381_v29, 0.0 }
 0x5d5   :  { %v4385_v35 = vpop.eup %3899 }
 0x5d6   :  { %769 = vadd.xlane.f32.xlu1 %v768_v16  ;;  %v777_v26 = vsel %vm301_vm2, %v4385_v35, 0.0 }
 0x5da   :  { %775 = vadd.xlane.f32.xlu1 %v774_v20 }
 0x5dd   :  { %1000 = vrot.lane.b32.xlu0 %v4252_v14, %s4953_s28 }
 0x5f9   :  { %v734_v30 = vpop.xlane.xlu1 %733 }
 0x5fa   :  { %v742_v32 = vsub.f32 %v710_v53, %v734_v30 }
 0x5fb   :  { %v761_v33 = vpop.xlane.xlu0 %760 }
 0x5fc   :  { %v757_v14 = vmul.f32 1.442695, %v742_v32  ;;  %3901 = vrcp.f32 %v761_v33  ;;  %772 = vadd.xlane.f32.xlu0 %v771_v34 }
 0x5fd   :  { %v953_v42 = vpop.permute.xlu1 %952 }
 0x5fe   :  { %3903 = vpow2.f32 %v757_v14  ;;  %v958_v48 = vsel %vm812_vm3, %v953_v42, 0 }
 0x600   :  { %778 = vadd.xlane.f32.xlu0 %v777_v26 }
 0x606   :  { %v3902_v36 = vpop.eup %3901 }
 0x607   :  { %v791_v37 = vmul.f32 %v3902_v36, %v4345_v54 }
 0x608   :  { %v4390_v38 = vpop.eup %3903 }
 0x609   :  { %v780_v39 = vsel %vm301_vm2, %v4390_v38, 0.0  ;;  %v799_v40 = vpack.c.bf16 %v791_v37, %v791_v37 }
 0x60a   :  { %781 = vadd.xlane.f32.xlu1 %v780_v39 }
 0x60b   :  { %3578 = vmatmul.mubr.msk.bf16.vlgmr.msra.gmra.mrb[16].mxu1 %vm301_vm2, %v799_v40  ;;  %v3855_v40 = vld [vmem:[%s4983_s4] sm:$0xff]  }
 0x60c   :  { %3588 = vmatpush3.bf16.msra.mxu1 %v910_v41  ;;  %3589 = vmatprep.mubr.msk.bf16.mxu1 %vm4018_vm1, %v4017_v44 }
 0x60d   :  { %3599 = vmatprep.subr.bf16.mxu1 %v4017_v44 }
 0x616   :  { %1096 = vrot.lane.b32.xlu0 %v4259_v18, %s4953_s28 }
 0x61b   :  { %1144 = vrot.lane.b32.xlu1 %v4268_v22, %s4953_s28  ;;  %s4985_s28 = sld [smem:[#allocation17_spill]] }
 0x62e   :  { %v764_v43 = vpop.xlane.xlu1 %763 }
 0x62f   :  { %3905 = vrcp.f32 %v764_v43 }
 0x632   :  { %v1049_v49 = vpop.permute.xlu1 %1048 }
 0x639   :  { %v3906_v45 = vpop.eup %3905 }
 0x63a   :  { %v792_v46 = vmul.f32 %v3906_v45, %v4352_v57  ;;  %v1054_v57 = vsel %vm812_vm3, %v1049_v49, 0 }
 0x63c   :  { %v800_v47 = vpack.c.bf16 %v792_v46, %v792_v46 }
 0x63e   :  { %3584 = vmatmul.mubr.msk.bf16.vlgmr.msra.gmra.mrb[20].mxu0 %vm301_vm2, %v800_v47  ;;  %v3856_v47 = vld [vmem:[%s4983_s4 + $0x8] sm:$0xff]  }
 0x63f   :  { %3594 = vmatpush3.bf16.msra.mxu0 %v958_v48  ;;  %3595 = vmatprep.mubr.msk.bf16.mxu0 %vm4018_vm1, %v4017_v44 }
 0x640   :  { %3605 = vmatprep.subr.bf16.mxu0 %v4017_v44 }
 0x654   :  { %v767_v18 = vpop.xlane.xlu0 %766 }
 0x655   :  { %3907 = vrcp.f32 %v767_v18 }
 0x658   :  { %v1001_v51 = vpop.permute.xlu0 %1000 }
 0x659   :  { %v1006_v54 = vsel %vm812_vm3, %v1001_v51, 0 }
 0x65f   :  { %v3908_v22 = vpop.eup %3907 }
 0x660   :  { %v793_v50 = vmul.f32 %v3908_v22, %v4361_v4 }
 0x662   :  { %v801_v52 = vpack.c.bf16 %v793_v50, %v793_v50 }
 0x663   :  { %v770_v53 = vpop.xlane.xlu1 %769 }
 0x664   :  { %3909 = vrcp.f32 %v770_v53  ;;  %3590 = vmatmul.mubr.msk.bf16.vlgmr.msra.gmra.mrb[20].mxu1 %vm301_vm2, %v801_v52 }
 0x665   :  { %3600 = vmatpush3.bf16.msra.mxu1 %v1006_v54  ;;  %3601 = vmatprep.mubr.msk.bf16.mxu1 %vm4018_vm1, %v4017_v44 }
 0x666   :  { %3611 = vmatprep.subr.bf16.mxu1 %v4017_v44 }
 0x667   :  { %v776_v55 = vpop.xlane.xlu1 %775 }
 0x668   :  { %3911 = vrcp.f32 %v776_v55 }
 0x66e   :  { %v3910_v56 = vpop.eup %3909 }
 0x66f   :  { %v794_v7 = vmul.f32 %v3910_v56, %v4369_v15 }
 0x671   :  { %v802_v9 = vpack.c.bf16 %v794_v7, %v794_v7 }
 0x672   :  { %v3912_v6 = vpop.eup %3911 }
 0x673   :  { %3596 = vmatmul.mubr.msk.bf16.vlgmr.msra.gmra.mrb[24].mxu0 %vm301_vm2, %v802_v9  ;;  %v796_v58 = vmul.f32 %v3912_v6, %v4373_v17 }
 0x674   :  { %3606 = vmatpush3.bf16.msra.mxu0 %v1054_v57  ;;  %3607 = vmatprep.mubr.msk.bf16.mxu0 %vm4018_vm1, %v4017_v44 }
 0x675   :  { %3617 = vmatprep.subr.bf16.mxu0 %v4017_v44  ;;  %v804_v59 = vpack.c.bf16 %v796_v58, %v796_v58 }
 0x67b   :  { %3608 = vmatmul.mubr.msk.bf16.vlgmr.msra.gmra.mrb[28].mxu0 %vm301_vm2, %v804_v59 }
 0x67c   :  { %3619 = vmatprep.mubr.msk.bf16.mxu0 %vm4018_vm1, %v4017_v44 }
 0x689   :  { %v773_v60 = vpop.xlane.xlu0 %772 }
 0x68a   :  { %3913 = vrcp.f32 %v773_v60 }
 0x68d   :  { %v779_v61 = vpop.xlane.xlu0 %778 }
 0x68e   :  { %3915 = vrcp.f32 %v779_v61 }
 0x691   :  { %v1097_v63 = vpop.permute.xlu0 %1096 }
 0x692   :  { %v1102_v3 = vsel %vm812_vm3, %v1097_v63, 0 }
 0x694   :  { %v3914_v62 = vpop.eup %3913 }
 0x695   :  { %v795_v11 = vmul.f32 %v3914_v62, %v4381_v29 }
 0x697   :  { %v782_v0 = vpop.xlane.xlu1 %781  ;;  %v803_v1 = vpack.c.bf16 %v795_v11, %v795_v11 }
 0x698   :  { %v3916_v2 = vpop.eup %3915  ;;  %3917 = vrcp.f32 %v782_v0 }
 0x699   :  { %3602 = vmatmul.mubr.msk.bf16.vlgmr.msra.gmra.mrb[24].mxu1 %vm301_vm2, %v803_v1  ;;  %v797_v4 = vmul.f32 %v3916_v2, %v4385_v35 }
 0x69a   :  { %3612 = vmatpush3.bf16.msra.mxu1 %v1102_v3  ;;  %3613 = vmatprep.mubr.msk.bf16.mxu1 %vm4018_vm1, %v4017_v44  ;;  %v3316_v3 = vld [vmem:[%s4984_s5] ss:$0 sm:$0xff] }
 0x69b   :  { %v1145_v5 = vpop.permute.xlu1 %1144  ;;  %3623 = vmatprep.subr.bf16.mxu1 %v4017_v44  ;;  %v805_v8 = vpack.c.bf16 %v797_v4, %v797_v4 }
 0x69c   :  { %v1150_v19 = vsel %vm812_vm3, %v1145_v5, 0 }
 0x69d   :  { %3618 = vmatpush3.bf16.msra.mxu0 %v1150_v19 }
 0x69e   :  { %3631 = vmatprep.subr.bf16.mxu0 %v4017_v44 }
 0x6a1   :  { %3614 = vmatmul.mubr.msk.bf16.vlgmr.msra.gmra.mrb[28].mxu1 %vm301_vm2, %v805_v8 }
 0x6a2   :  { %v3918_v10 = vpop.eup %3917  ;;  %3627 = vmatprep.mubr.msk.bf16.mxu1 %vm4018_vm1, %v4017_v44  ;;  %3624 = vmatpush3.bf16.msra.mxu1 %v3855_v40 }
 0x6a3   :  { %v798_v12 = vmul.f32 %v3918_v10, %v4390_v38  ;;  %3625 = vmatprep.subr.bf16.mxu1 %v4017_v44 }
 0x6a5   :  { %v806_v13 = vpack.c.bf16 %v798_v12, %v798_v12 }
 0x6a6   :  { %3626 = vmatpush3.bf16.msra.mxu1 %v3856_v47  ;;  %v3321_v47 = vld [vmem:[%s4923_s12] ss:$0 sm:$0xff] }
 0x6a7   :  { %3620 = vmatmul.mubr.msk.bf16.vlgmr.msra.gmra.mrb[32].mxu0 %vm301_vm2, %v806_v13  ;;  %3639 = vmatprep.subr.bf16.mxu1 %v4017_v44 }
 0x6a8   :  { %3635 = vmatprep.mubr.msk.bf16.mxu0 %vm4018_vm1, %v4017_v44 }
 0x6de   :  { %v850_v15 = vpop.f32.mrb[16].mxu1 }
 0x6df   :  { %v3579_v16 = vpop.f32.mrb[17].mxu1 }
 0x6e0   :  { %v853_v17 = vpop.f32.mrb[18].mxu1 }
 0x6e1   :  { %v3580_v20 = vpop.f32.mrb[19].mxu1 }
 0x711   :  { %v898_v21 = vpop.f32.mrb[20].mxu0 }
 0x712   :  { %v3585_v23 = vpop.f32.mrb[21].mxu0 }
 0x713   :  { %v901_v24 = vpop.f32.mrb[22].mxu0 }
 0x714   :  { %v3586_v25 = vpop.f32.mrb[23].mxu0 }
 0x737   :  { %v946_v28 = vpop.f32.mrb[20].mxu1 }
 0x738   :  { %v3591_v29 = vpop.f32.mrb[21].mxu1 }
 0x739   :  { %v949_v30 = vpop.f32.mrb[22].mxu1 }
 0x73a   :  { %v3592_v32 = vpop.f32.mrb[23].mxu1 }
 0x746   :  { %v994_v33 = vpop.f32.mrb[24].mxu0 }
 0x747   :  { %v3821_v34 = vpack.i.bf16 %v994_v33, %v946_v28  ;;  %v3597_v35 = vpop.f32.mrb[25].mxu0 }
 0x748   :  { %v997_v14 = vpop.f32.mrb[26].mxu0  ;;  %v3858_v35 = vld [vmem:[%s4924_s13 + $0x8] sm:$0xff]  }
 0x749   :  { %3822 = vrot.lane.b32.xlu0 %v3821_v34, %s4949_s0  ;;  %v3598_v26 = vpop.f32.mrb[27].mxu0  ;;  %v3857_v34 = vld [vmem:[%s4924_s13] sm:$0xff]  }
 0x74a   :  { %3632 = vmatpush3.bf16.msra.mxu0 %v3857_v34 }
 0x74b   :  { %3633 = vmatprep.subr.bf16.mxu0 %v4017_v44 }
 0x74e   :  { %v1090_v36 = vpop.f32.mrb[28].mxu0  ;;  %3634 = vmatpush3.bf16.msra.mxu0 %v3858_v35  ;;  %v1512_v35 = vmul.f32 0.4, %v4194_v31 }
 0x74f   :  { %v3609_v37 = vpop.f32.mrb[29].mxu0  ;;  %3651 = vmatprep.subr.bf16.mxu0 %v4017_v44 }
 0x750   :  { %v1093_v38 = vpop.f32.mrb[30].mxu0 }
 0x751   :  { %v3610_v39 = vpop.f32.mrb[31].mxu0 }
 0x76c   :  { %v1042_v41 = vpop.f32.mrb[24].mxu1 }
 0x76d   :  { %v3826_v42 = vpack.i.bf16 %v1090_v36, %v1042_v41  ;;  %v3603_v43 = vpop.f32.mrb[25].mxu1 }
 0x76e   :  { %v1045_v45 = vpop.f32.mrb[26].mxu1 }
 0x76f   :  { %v3604_v46 = vpop.f32.mrb[27].mxu1  ;;  %3827 = vrot.lane.b32.xlu1 %v3826_v42, %s4951_s30  ;;  %v3320_v42 = vld [vmem:[%s4985_s28] ss:$0 sm:$0xff]  ;;  %s4989_s30 = smov 120  }
 0x774   :  { %v1138_v48 = vpop.f32.mrb[28].mxu1 }
 0x775   :  { %v3615_v18 = vpop.f32.mrb[29].mxu1 }
 0x776   :  { %v1141_v22 = vpop.f32.mrb[30].mxu1 }
 0x777   :  { %v3616_v49 = vpop.f32.mrb[31].mxu1 }
 0x77a   :  { %v1186_v50 = vpop.f32.mrb[32].mxu0 }
 0x77b   :  { %v3831_v51 = vpack.i.bf16 %v1186_v50, %v1138_v48  ;;  %v3621_v52 = vpop.f32.mrb[33].mxu0  ;;  %v3859_v50 = vld [vmem:[%s4926_s15] sm:$0xff]  }
 0x77c   :  { %v1189_v53 = vpop.f32.mrb[34].mxu0  ;;  %v3861_v52 = vld [vmem:[%s4926_s15 + $0x10] sm:$0xff]  }
 0x77d   :  { %3832 = vrot.lane.b32.xlu0 %v3831_v51, %s4950_s10  ;;  %v3622_v54 = vpop.f32.mrb[35].mxu0  ;;  %v3860_v51 = vld [vmem:[%s4926_s15 + $0x8] sm:$0xff]   ;;  %v3862_v53 = vld [vmem:[%s4926_s15 + $0x18] sm:$0xff]  }
 0x77e   :  { %v3322_v54 = vld [vmem:[%s4925_s14] ss:$0 sm:$0xff] }
 0x7bb   :  { %v3823_v55 = vpop.permute.xlu0 %3822 }
 0x7bc   :  { %v3825_v7 = vunpack.i.h.bf16 %v3823_v55  ;;  %v3824_v9 = vunpack.i.l.bf16 %v3823_v55 }
 0x7be   :  { %v1217_v59 = vsel %vm301_vm2, %v898_v21, %v3825_v7  ;;  %v1216_v60 = vsel %vm301_vm2, %v850_v15, %v3824_v9 }
 0x7e1   :  { %v3828_v56 = vpop.permute.xlu1 %3827 }
 0x7e2   :  { %v3830_v6 = vunpack.i.h.bf16 %v3828_v56  ;;  %v3829_v57 = vunpack.i.l.bf16 %v3828_v56 }
 0x7e4   :  { %v1220_v11 = vsel %vm1218_vm4, %v1217_v59, %v3830_v6  ;;  %v1219_v63 = vsel %vm1218_vm4, %v1216_v60, %v3829_v57 }
 0x7ef   :  { %v3833_v58 = vpop.permute.xlu0 %3832 }
 0x7f0   :  { %v3835_v61 = vunpack.i.h.bf16 %v3833_v58  ;;  %v3834_v62 = vunpack.i.l.bf16 %v3833_v58 }
 0x7f2   :  { %v1223_v0 = vsel %vm1221_vm5, %v1220_v11, %v3835_v61  ;;  %v1222_v1 = vsel %vm1221_vm5, %v1219_v63, %v3834_v62 }
 0x7f3   :  { %v1228_v2 = vpack.c.bf16 %v1223_v0, %v1222_v1 }
 0x7f5   :  { %3628 = vmatmul.mubr.msk.bf16.vlgmr.msra.gmra.mrb[32].mxu1 %vm98_vm0, %v1228_v2 }
 0x7f6   :  { %3647 = vmatprep.mubr.msk.bf16.mxu1 %vm4018_vm1, %v4017_v44  ;;  %3640 = vmatpush3.bf16.msra.mxu1 %v3859_v50 }
 0x7f7   :  { %3641 = vmatprep.subr.bf16.mxu1 %v4017_v44 }
 0x7fa   :  { %3642 = vmatpush3.bf16.msra.mxu1 %v3860_v51  ;;  %v3334_v51 = vld [vmem:[%s4979_s9 + $0x1] ss:$0 sm:$0xff]  ;;  %s4986_s9 = smov 104  }
 0x7fb   :  { %3643 = vmatprep.subr.bf16.mxu1 %v4017_v44 }
 0x7fe   :  { %3644 = vmatpush3.bf16.msra.mxu1 %v3861_v52 }
 0x7ff   :  { %3645 = vmatprep.subr.bf16.mxu1 %v4017_v44 }
 0x802   :  { %3646 = vmatpush3.bf16.msra.mxu1 %v3862_v53 }
 0x803   :  { %3665 = vmatprep.subr.bf16.mxu1 %v4017_v44 }
 0x8c8   :  { %v1285_v4 = vpop.f32.mrb[32].mxu1 }
 0x8c9   :  { %v1286_v5 = vadd.f32 %v3316_v3, %v1285_v4  ;;  %v3629_v19 = vpop.f32.mrb[33].mxu1 }
 0x8ca   :  { %v1288_v8 = vpop.f32.mrb[34].mxu1 }
 0x8cb   :  { %v4465_v10 = vadd.f32 %v1286_v5, %v4190_v27  ;;  %v1289_v12 = vadd.f32 %v3316_v3, %v1288_v8  ;;  %v3630_v13 = vpop.f32.mrb[35].mxu1 }
 0x8cd   :  { %v4468_v15 = vadd.f32 %v1289_v12, %v4194_v31  ;;  %v1296_v16 = vsel %vm98_vm0, %v4465_v10, 0.0 }
 0x8ce   :  { %1297 = vadd.xlane.f32.xlu1 %v1296_v16 }
 0x8cf   :  { %v1299_v17 = vsel %vm98_vm0, %v4468_v15, 0.0 }
 0x8d0   :  { %1300 = vadd.xlane.f32.xlu0 %v1299_v17 }
 0x95b   :  { %v1298_v20 = vpop.xlane.xlu1 %1297 }
 0x95c   :  { %v1302_v21 = vmul.f32 0.03125, %v1298_v20  ;;  %v3326_v20 = vld [vmem:[%s4927_s16] ss:$0 sm:$0xff] }
 0x95d   :  { %v1301_v23 = vpop.xlane.xlu0 %1300 }
 0x95e   :  { %v1304_v24 = vsub.f32 %v4465_v10, %v1302_v21  ;;  %v1303_v25 = vmul.f32 0.03125, %v1301_v23 }
 0x960   :  { %v1305_v28 = vsub.f32 %v4468_v15, %v1303_v25  ;;  %v1306_v29 = vmul.f32 %v1304_v24, %v1304_v24 }
 0x962   :  { %v1308_v30 = vsel %vm98_vm0, %v1306_v29, 0.0  ;;  %v1307_v32 = vmul.f32 %v1305_v28, %v1305_v28  ;;  %v1511_v29 = vmul.f32 0.4, %v4190_v27 }
 0x963   :  { %1309 = vadd.xlane.f32.xlu0 %v1308_v30 }
 0x964   :  { %v1311_v33 = vsel %vm98_vm0, %v1307_v32, 0.0 }
 0x967   :  { %1312 = vadd.xlane.f32.xlu0 %v1311_v33 }
 0x9f0   :  { %v1310_v14 = vpop.xlane.xlu0 %1309 }
 0x9f1   :  { %v1314_v26 = vmul.f32 0.03125, %v1310_v14 }
 0x9f3   :  { %v1316_v36 = vadd.f32 1e-05, %v1314_v26 }
 0x9f4   :  { %v1313_v37 = vpop.xlane.xlu0 %1312 }
 0x9f5   :  { %3919 = vrsqrt.f32 %v1316_v36  ;;  %v1315_v38 = vmul.f32 0.03125, %v1313_v37 }
 0x9f7   :  { %v1317_v39 = vadd.f32 1e-05, %v1315_v38 }
 0x9f9   :  { %3921 = vrsqrt.f32 %v1317_v39 }
 0x9ff   :  { %v3920_v40 = vpop.eup %3919 }
 0xa00   :  { %v1320_v41 = vmul.f32 %v3920_v40, %v1304_v24 }
 0xa02   :  { %v1328_v45 = vmul.f32 %v3320_v42, %v1320_v41 }
 0xa03   :  { %v3922_v43 = vpop.eup %3921 }
 0xa04   :  { %v1321_v46 = vmul.f32 %v3922_v43, %v1305_v28  ;;  %v1336_v18 = vadd.f32 %v3321_v47, %v1328_v45  ;;  %v3863_v43 = vld [vmem:[%s4978_s3 + $0x10] sm:$0xff]   ;;  %v3864_v45 = vld [vmem:[%s4978_s3 + $0x18] sm:$0xff]  }
 0xa06   :  { %v1329_v48 = vmul.f32 %v3320_v42, %v1321_v46 }
 0xa08   :  { %v1337_v22 = vadd.f32 %v3321_v47, %v1329_v48 }
 0xa0a   :  { %v1342_v49 = vpack.c.bf16 %v1337_v22, %v1336_v18 }
 0xa0c   :  { %3636 = vmatmul.mubr.msk.bf16.vlgmr.msra.gmra.mrb[36].mxu0 %vm98_vm0, %v1342_v49 }
 0xa0d   :  { %3655 = vmatprep.mubr.msk.bf16.mxu0 %vm4018_vm1, %v4017_v44  ;;  %3652 = vmatpush3.bf16.msra.mxu0 %v3863_v43 }
 0xa0e   :  { %3653 = vmatprep.subr.bf16.mxu0 %v4017_v44 }
 0xa11   :  { %3654 = vmatpush3.bf16.msra.mxu0 %v3864_v45 }
 0xa12   :  { %3659 = vmatprep.subr.bf16.mxu0 %v4017_v44 }
 0xadf   :  { %v1399_v55 = vpop.f32.mrb[36].mxu0 }
 0xae0   :  { %v1400_v56 = vadd.f32 %v3322_v54, %v1399_v55  ;;  %v3637_v7 = vpop.f32.mrb[37].mxu0 }
 0xae1   :  { %v1402_v9 = vpop.f32.mrb[38].mxu0 }
 0xae2   :  { %v1408_v6 = vmul.f32 0.044715, %v1400_v56  ;;  %v1403_v57 = vadd.f32 %v3322_v54, %v1402_v9  ;;  %v3638_v58 = vpop.f32.mrb[39].mxu0  ;;  %v1406_v19 = vmul.f32 0.5, %v1400_v56 }
 0xae3   :  { %v3341_v58 = vld [vmem:[%s4981_s29 + $0x1] ss:$0 sm:$0xff]  ;;  %s4990_s29 = smov 112  }
 0xae4   :  { %v1410_v59 = vmul.f32 %v1408_v6, %v1400_v56  ;;  %v1409_v60 = vmul.f32 0.044715, %v1403_v57  ;;  %v1407_v8 = vmul.f32 0.5, %v1403_v57 }
 0xae6   :  { %v1412_v61 = vmul.f32 %v1410_v59, %v1400_v56  ;;  %v1411_v62 = vmul.f32 %v1409_v60, %v1403_v57 }
 0xae8   :  { %v1414_v11 = vadd.f32 %v1412_v61, %v1400_v56  ;;  %v1413_v63 = vmul.f32 %v1411_v62, %v1403_v57  ;;  %v3335_v56 = vld [vmem:[%s4980_s20 + $0x1] ss:$0 sm:$0xff]  ;;  %s4987_s20 = smov 80  }
 0xaea   :  { %v1416_v0 = vmul.f32 0.7978846, %v1414_v11  ;;  %v1415_v1 = vadd.f32 %v1413_v63, %v1403_v57 }
 0xaec   :  { %3923 = vtanh.f32 %v1416_v0  ;;  %v1417_v2 = vmul.f32 0.7978846, %v1415_v1 }
 0xaee   :  { %3925 = vtanh.f32 %v1417_v2 }
 0xaf6   :  { %v3924_v3 = vpop.eup %3923 }
 0xaf7   :  { %v1420_v4 = vadd.f32 1.0, %v3924_v3 }
 0xaf8   :  { %v3926_v5 = vpop.eup %3925 }
 0xaf9   :  { %v1421_v12 = vadd.f32 1.0, %v3926_v5  ;;  %v1422_v13 = vmul.f32 %v1420_v4, %v1406_v19 }
 0xafb   :  { %v1423_v16 = vmul.f32 %v1421_v12, %v1407_v8 }
 0xafd   :  { %v1432_v17 = vpack.c.bf16 %v1423_v16, %v1422_v13 }
 0xaff   :  { %3648 = vmatmul.mubr.msk.bf16.vlgmr.msra.gmra.mrb[36].mxu1 %vm1464_vm6, %v1432_v17 }
 0xb00   :  { %3667 = vmatprep.mubr.msk.bf16.mxu1 %vm4018_vm1, %v4017_v44 }
 0xbd2   :  { %v1502_v21 = vpop.f32.mrb[36].mxu1 }
 0xbd3   :  { %v1503_v23 = vadd.f32 %v3326_v20, %v1502_v21  ;;  %v3649_v24 = vpop.f32.mrb[37].mxu1 }
 0xbd4   :  { %v1505_v25 = vpop.f32.mrb[38].mxu1 }
 0xbd5   :  { %v1509_v28 = vadd.f32 %v1503_v23, %v4465_v10  ;;  %v1506_v30 = vadd.f32 %v3326_v20, %v1505_v25  ;;  %v3650_v32 = vpop.f32.mrb[39].mxu1 }
 0xbd7   :  { %v4522_v33 = vadd.f32 %v1511_v29, %v1509_v28  ;;  %v1510_v34 = vadd.f32 %v1506_v30, %v4468_v15 }
 0xbd9   :  { %v4526_v14 = vadd.f32 %v1512_v35, %v1510_v34  ;;  %v1519_v26 = vsel %vm98_vm0, %v4522_v33, 0.0 }
 0xbda   :  { %1520 = vadd.xlane.f32.xlu1 %v1519_v26 }
 0xbdb   :  { %v1522_v36 = vsel %vm98_vm0, %v4526_v14, 0.0 }
 0xbdc   :  { %1523 = vadd.xlane.f32.xlu0 %v1522_v36 }
 0xc67   :  { %v1521_v10 = vpop.xlane.xlu1 %1520 }
 0xc68   :  { %v1525_v27 = vmul.f32 0.03125, %v1521_v10 }
 0xc69   :  { %v1524_v37 = vpop.xlane.xlu0 %1523 }
 0xc6a   :  { %v1527_v38 = vsub.f32 %v4522_v33, %v1525_v27  ;;  %v1526_v39 = vmul.f32 0.03125, %v1524_v37 }
 0xc6c   :  { %v1528_v15 = vsub.f32 %v4526_v14, %v1526_v39  ;;  %v1529_v40 = vmul.f32 %v1527_v38, %v1527_v38 }
 0xc6e   :  { %v1531_v31 = vsel %vm98_vm0, %v1529_v40, 0.0  ;;  %v1530_v41 = vmul.f32 %v1528_v15, %v1528_v15 }
 0xc6f   :  { %1532 = vadd.xlane.f32.xlu1 %v1531_v31 }
 0xc70   :  { %v1534_v42 = vsel %vm98_vm0, %v1530_v41, 0.0 }
 0xc71   :  { %1535 = vadd.xlane.f32.xlu0 %v1534_v42 }
 0xcfc   :  { %v1533_v46 = vpop.xlane.xlu1 %1532 }
 0xcfd   :  { %v1537_v47 = vmul.f32 0.03125, %v1533_v46 }
 0xcfe   :  { %v1536_v48 = vpop.xlane.xlu0 %1535 }
 0xcff   :  { %v1539_v18 = vadd.f32 1e-05, %v1537_v47  ;;  %v1538_v22 = vmul.f32 0.03125, %v1536_v48 }
 0xd01   :  { %3927 = vrsqrt.f32 %v1539_v18  ;;  %v1540_v49 = vadd.f32 1e-05, %v1538_v22 }
 0xd03   :  { %3929 = vrsqrt.f32 %v1540_v49 }
 0xd0b   :  { %v3928_v50 = vpop.eup %3927 }
 0xd0c   :  { %v1543_v52 = vmul.f32 %v3928_v50, %v1527_v38 }
 0xd0d   :  { %v3930_v53 = vpop.eup %3929 }
 0xd0e   :  { %v1551_v54 = vmul.f32 %v3334_v51, %v1543_v52  ;;  %v1544_v55 = vmul.f32 %v3930_v53, %v1528_v15 }
 0xd10   :  { %v1552_v7 = vmul.f32 %v3334_v51, %v1544_v55  ;;  %v1559_v9 = vadd.f32 %v3335_v56, %v1551_v54 }
 0xd12   :  { %v1560_v6 = vadd.f32 %v3335_v56, %v1552_v7  ;;  %v3991_v56 = vld [vmem:[%s4982_s8 + $0x1] ss:$0 sm:$0xff] }
 0xd14   :  { %v1566_v57 = vpack.c.bf16 %v1560_v6, %v1559_v9 }
 0xd16   :  { %3656 = vmatmul.mubr.msk.bf16.vlgmr.msra.gmra.mrb[40].mxu0 %vm98_vm0, %v1566_v57 }
 0xd17   :  { %3661 = vmatprep.mubr.msk.bf16.mxu0 %vm4018_vm1, %v4017_v44 }
 0xde9   :  { %v1624_v59 = vpop.f32.mrb[40].mxu0 }
 0xdea   :  { %v1625_v60 = vadd.f32 %v3341_v58, %v1624_v59  ;;  %v3657_v61 = vpop.f32.mrb[41].mxu0 }
 0xdeb   :  { %v1627_v62 = vpop.f32.mrb[42].mxu0 }
 0xdec   :  { %v1628_v11 = vadd.f32 %v3341_v58, %v1627_v62  ;;  %1633 = vrot.lane.b32.xlu1 %v1625_v60, %s4986_s9  ;;  %v3658_v63 = vpop.f32.mrb[43].mxu0  ;;  %v1667_v1 = vpack.c.bf16 %v1625_v60, %v1625_v60  ;;  %v1651_v32 = vmul.f32 0.35355338, %v1625_v60 }
 0xdee   :  { %1635 = vrot.lane.b32.xlu0 %v1628_v11, %s4986_s9  ;;  %v4561_v0 = vpack.c.bf16 %v1628_v11, %v1628_v11  ;;  %v1652_v25 = vmul.f32 0.35355338, %v1628_v11  ;;  %v1659_v34 = vpack.c.bf16 %v1651_v32, %v1651_v32 }
 0xdf0   :  { %1639 = vrot.lane.b32.xlu1 %v1625_v60, %s4987_s20  ;;  %v1660_v30 = vpack.c.bf16 %v1652_v25, %v1652_v25 }
 0xdf2   :  { %1647 = vrot.lane.b32.xlu0 %v1628_v11, %s4988_s7 }
 0xdf4   :  { %1641 = vrot.lane.b32.xlu1 %v1628_v11, %s4987_s20  ;;  %s4992_s20 = smov 16  }
 0xdf6   :  { %1725 = vrot.lane.b32.xlu0 %v4561_v0, %s4989_s30 }
 0xdf8   :  { %1645 = vrot.lane.b32.xlu1 %v1625_v60, %s4988_s7  ;;  %v3992_v60 = vld [vmem:[%s4982_s8] ss:$0 sm:$0xff]  ;;  %s4991_s8 = smov 8   ;;  %s4993_s7 = smov 24  }
 0xdfc   :  { %1676 = vrot.lane.b32.xlu1 %v1667_v1, %s4989_s30 }
 0xe5e   :  { %v1634_v2 = vpop.permute.xlu1 %1633 }
 0xe5f   :  { %v4567_v3 = vpack.c.bf16 %v1634_v2, %v1634_v2  ;;  %v1653_v10 = vmul.f32 0.35355338, %v1634_v2 }
 0xe60   :  { %v1636_v4 = vpop.permute.xlu0 %1635 }
 0xe61   :  { %v4569_v5 = vpack.c.bf16 %v1636_v4, %v1636_v4  ;;  %1774 = vrot.lane.b32.xlu1 %v4567_v3, %s4989_s30  ;;  %v1654_v37 = vmul.f32 0.35355338, %v1636_v4  ;;  %v1661_v39 = vpack.c.bf16 %v1653_v10, %v1653_v10 }
 0xe62   :  { %v1640_v19 = vpop.permute.xlu1 %1639 }
 0xe63   :  { %v4573_v8 = vpack.c.bf16 %v1640_v19, %v1640_v19  ;;  %1823 = vrot.lane.b32.xlu0 %v4569_v5, %s4989_s30  ;;  %v1662_v40 = vpack.c.bf16 %v1654_v37, %v1654_v37  ;;  %v1655_v41 = vmul.f32 0.35355338, %v1640_v19 }
 0xe64   :  { %v4577_v12 = vpop.permute.xlu0 %1647 }
 0xe65   :  { %1872 = vrot.lane.b32.xlu1 %v4573_v8, %s4989_s30  ;;  %v4588_v23 = vpack.c.bf16 %v4577_v12, %v4577_v12  ;;  %v1663_v46 = vpack.c.bf16 %v1655_v41, %v1655_v41  ;;  %v1658_v50 = vmul.f32 0.35355338, %v4577_v12 }
 0xe66   :  { %v1642_v13 = vpop.permute.xlu1 %1641 }
 0xe67   :  { %v4581_v16 = vpack.c.bf16 %v1642_v13, %v1642_v13  ;;  %v1656_v43 = vmul.f32 0.35355338, %v1642_v13  ;;  %v1666_v53 = vpack.c.bf16 %v1658_v50, %v1658_v50 }
 0xe68   :  { %v1726_v17 = vpop.permute.xlu0 %1725 }
 0xe69   :  { %v1731_v20 = vsel %vm301_vm2, %v1726_v17, 0  ;;  %1921 = vrot.lane.b32.xlu0 %v4581_v16, %s4989_s30  ;;  %v1664_v48 = vpack.c.bf16 %v1656_v43, %v1656_v43 }
 0xe6a   :  { %v1646_v21 = vpop.permute.xlu1 %1645  ;;  %3666 = vmatpush3.bf16.xpose.msra.mxu1 %v1731_v20 }
 0xe6b   :  { %v4590_v24 = vpack.c.bf16 %v1646_v21, %v1646_v21  ;;  %3677 = vmatprep.subr.bf16.mxu1 %v4017_v44  ;;  %v1657_v22 = vmul.f32 0.35355338, %v1646_v21 }
 0xe6d   :  { %1970 = vrot.lane.b32.xlu1 %v4590_v24, %s4989_s30  ;;  %2019 = vrot.lane.b32.xlu0 %v4588_v23, %s4989_s30  ;;  %v1665_v52 = vpack.c.bf16 %v1657_v22, %v1657_v22 }
 0xe6e   :  { %v1677_v28 = vpop.permute.xlu1 %1676 }
 0xe6f   :  { %v1682_v29 = vsel %vm301_vm2, %v1677_v28, 0 }
 0xe70   :  { %3660 = vmatpush3.bf16.xpose.msra.mxu0 %v1682_v29 }
 0xe71   :  { %2171 = vrot.lane.b32.xlu1 %v1667_v1, %s4990_s29  ;;  %3668 = vmatmul.mubr.msk.bf16.vlgmr.msra.gmra.mrb[40].mxu1 %vm301_vm2, %v1660_v30 }
 0xe72   :  { %3671 = vmatprep.subr.bf16.mxu0 %v4017_v44  ;;  %3679 = vmatprep.mubr.msk.bf16.mxu1 %vm4018_vm1, %v4017_v44 }
 0xe77   :  { %3662 = vmatmul.mubr.msk.bf16.vlgmr.msra.gmra.mrb[44].mxu0 %vm301_vm2, %v1659_v34 }
 0xe78   :  { %3673 = vmatprep.mubr.msk.bf16.mxu0 %vm4018_vm1, %v4017_v44 }
 0xed3   :  { %v1775_v35 = vpop.permute.xlu1 %1774 }
 0xed4   :  { %v1780_v26 = vsel %vm301_vm2, %v1775_v35, 0 }
 0xed5   :  { %3672 = vmatpush3.bf16.xpose.msra.mxu0 %v1780_v26  ;;  %v1824_v36 = vpop.permute.xlu0 %1823 }
 0xed6   :  { %v1829_v27 = vsel %vm301_vm2, %v1824_v36, 0  ;;  %3683 = vmatprep.subr.bf16.mxu0 %v4017_v44 }
 0xed7   :  { %3678 = vmatpush3.bf16.xpose.msra.mxu1 %v1829_v27  ;;  %v1873_v38 = vpop.permute.xlu1 %1872 }
 0xed8   :  { %3689 = vmatprep.subr.bf16.mxu1 %v4017_v44  ;;  %v1878_v31 = vsel %vm301_vm2, %v1873_v38, 0 }
 0xedb   :  { %v1922_v15 = vpop.permute.xlu0 %1921 }
 0xedc   :  { %3674 = vmatmul.mubr.msk.bf16.vlgmr.msra.gmra.mrb[48].mxu0 %vm301_vm2, %v1661_v39  ;;  %v1927_v42 = vsel %vm301_vm2, %v1922_v15, 0 }
 0xedd   :  { %3684 = vmatpush3.bf16.xpose.msra.mxu0 %v1878_v31  ;;  %3685 = vmatprep.mubr.msk.bf16.mxu0 %vm4018_vm1, %v4017_v44 }
 0xede   :  { %3680 = vmatmul.mubr.msk.bf16.vlgmr.msra.gmra.mrb[44].mxu1 %vm301_vm2, %v1662_v40  ;;  %3695 = vmatprep.subr.bf16.mxu0 %v4017_v44 }
 0xedf   :  { %3690 = vmatpush3.bf16.xpose.msra.mxu1 %v1927_v42  ;;  %3691 = vmatprep.mubr.msk.bf16.mxu1 %vm4018_vm1, %v4017_v44  ;;  %v1971_v45 = vpop.permute.xlu1 %1970  ;;  %v2020_v47 = vpop.permute.xlu0 %2019 }
 0xee0   :  { %3701 = vmatprep.subr.bf16.mxu1 %v4017_v44  ;;  %v1976_v18 = vsel %vm301_vm2, %v1971_v45, 0  ;;  %v2025_v49 = vsel %vm301_vm2, %v2020_v47, 0 }
 0xee3   :  { %v2172_v51 = vpop.permute.xlu1 %2171 }
 0xee4   :  { %3686 = vmatmul.mubr.msk.bf16.vlgmr.msra.gmra.mrb[52].mxu0 %vm301_vm2, %v1663_v46  ;;  %v2177_v54 = vsel %vm812_vm3, %v2172_v51, 0 }
 0xee5   :  { %3696 = vmatpush3.bf16.xpose.msra.mxu0 %v1976_v18  ;;  %3697 = vmatprep.mubr.msk.bf16.mxu0 %vm4018_vm1, %v4017_v44 }
 0xee6   :  { %3692 = vmatmul.mubr.msk.bf16.vlgmr.msra.gmra.mrb[48].mxu1 %vm301_vm2, %v1664_v48  ;;  %3707 = vmatprep.subr.bf16.mxu0 %v4017_v44 }
 0xee7   :  { %3702 = vmatpush3.bf16.xpose.msra.mxu1 %v2025_v49  ;;  %3703 = vmatprep.mubr.msk.bf16.mxu1 %vm4018_vm1, %v4017_v44 }
 0xee8   :  { %3713 = vmatprep.subr.bf16.mxu1 %v4017_v44 }
 0xeec   :  { %3698 = vmatmul.mubr.msk.bf16.vlgmr.msra.gmra.mrb[56].mxu0 %vm301_vm2, %v1665_v52 }
 0xeed   :  { %3708 = vmatpush3.bf16.msra.mxu0 %v2177_v54  ;;  %3709 = vmatprep.mubr.msk.bf16.mxu0 %vm4018_vm1, %v4017_v44 }
 0xeee   :  { %3704 = vmatmul.mubr.msk.bf16.vlgmr.msra.gmra.mrb[52].mxu1 %vm301_vm2, %v1666_v53  ;;  %3719 = vmatprep.subr.bf16.mxu0 %v4017_v44 }
 0xeef   :  { %3715 = vmatprep.mubr.msk.bf16.mxu1 %vm4018_vm1, %v4017_v44 }
 0xf44   :  { %v1767_v55 = vpop.f32.mrb[40].mxu1 }
 0xf45   :  { %v4642_v7 = vadd.f32 %v3991_v56, %v1767_v55  ;;  %v3669_v9 = vpop.f32.mrb[41].mxu1 }
 0xf46   :  { %v1770_v6 = vpop.f32.mrb[42].mxu1 }
 0xf47   :  { %v3670_v57 = vpop.f32.mrb[43].mxu1  ;;  %v2078_v58 = vsel %vm301_vm2, %v4642_v7, -inf }
 0xf48   :  { %2079 = vmax.xlane.f32.xlu0 %v2078_v58 }
 0xf4a   :  { %v1718_v59 = vpop.f32.mrb[44].mxu0 }
 0xf4b   :  { %v2067_v61 = vadd.f32 %v3992_v60, %v1718_v59  ;;  %v3663_v62 = vpop.f32.mrb[45].mxu0 }
 0xf4c   :  { %v1721_v11 = vpop.f32.mrb[46].mxu0 }
 0xf4d   :  { %v3664_v63 = vpop.f32.mrb[47].mxu0  ;;  %v2075_v1 = vsel %vm301_vm2, %v2067_v61, -inf }
 0xf4e   :  { %2076 = vmax.xlane.f32.xlu1 %v2075_v1 }
 0xfaf   :  { %v1816_v2 = vpop.f32.mrb[48].mxu0 }
 0xfb0   :  { %v2069_v4 = vadd.f32 %v3992_v60, %v1816_v2  ;;  %v3675_v19 = vpop.f32.mrb[49].mxu0 }
 0xfb1   :  { %v1819_v12 = vpop.f32.mrb[50].mxu0  ;;  %v1865_v13 = vpop.f32.mrb[44].mxu1 }
 0xfb2   :  { %v2070_v17 = vadd.f32 %v3991_v56, %v1865_v13  ;;  %v3676_v20 = vpop.f32.mrb[51].mxu0  ;;  %v3681_v21 = vpop.f32.mrb[45].mxu1  ;;  %v2081_v25 = vsel %vm301_vm2, %v2069_v4, -inf }
 0xfb3   :  { %v1868_v28 = vpop.f32.mrb[46].mxu1  ;;  %2082 = vmax.xlane.f32.xlu0 %v2081_v25 }
 0xfb4   :  { %v3682_v29 = vpop.f32.mrb[47].mxu1  ;;  %v2084_v30 = vsel %vm301_vm2, %v2070_v17, -inf }
 0xfb7   :  { %2085 = vmax.xlane.f32.xlu0 %v2084_v30  ;;  %v1914_v32 = vpop.f32.mrb[52].mxu0 }
 0xfb8   :  { %v2071_v34 = vadd.f32 %v3992_v60, %v1914_v32  ;;  %v3687_v35 = vpop.f32.mrb[53].mxu0 }
 0xfb9   :  { %v1917_v26 = vpop.f32.mrb[54].mxu0  ;;  %v1963_v36 = vpop.f32.mrb[48].mxu1 }
 0xfba   :  { %v4652_v10 = vadd.f32 %v3991_v56, %v1963_v36  ;;  %v3688_v27 = vpop.f32.mrb[55].mxu0  ;;  %v3693_v37 = vpop.f32.mrb[49].mxu1  ;;  %v2087_v38 = vsel %vm301_vm2, %v2071_v34, -inf }
 0xfbb   :  { %v1966_v39 = vpop.f32.mrb[50].mxu1  ;;  %2088 = vmax.xlane.f32.xlu1 %v2087_v38 }
 0xfbc   :  { %v3694_v15 = vpop.f32.mrb[51].mxu1  ;;  %v2090_v40 = vsel %vm301_vm2, %v4652_v10, -inf }
 0xfbd   :  { %2091 = vmax.xlane.f32.xlu0 %v2090_v40 }
 0xfbf   :  { %v2012_v31 = vpop.f32.mrb[56].mxu0 }
 0xfc0   :  { %v2073_v41 = vadd.f32 %v3992_v60, %v2012_v31  ;;  %v3699_v42 = vpop.f32.mrb[57].mxu0 }
 0xfc1   :  { %v2015_v43 = vpop.f32.mrb[58].mxu0  ;;  %v2061_v45 = vpop.f32.mrb[52].mxu1 }
 0xfc2   :  { %v4657_v46 = vadd.f32 %v3991_v56, %v2061_v45  ;;  %v3700_v47 = vpop.f32.mrb[59].mxu0  ;;  %v3705_v48 = vpop.f32.mrb[53].mxu1  ;;  %v2093_v18 = vsel %vm301_vm2, %v2073_v41, -inf }
 0xfc3   :  { %v2064_v22 = vpop.f32.mrb[54].mxu1  ;;  %2094 = vmax.xlane.f32.xlu1 %v2093_v18 }
 0xfc4   :  { %v3706_v49 = vpop.f32.mrb[55].mxu1  ;;  %v2096_v50 = vsel %vm301_vm2, %v4657_v46, -inf }
 0xfc5   :  { %2097 = vmax.xlane.f32.xlu0 %v2096_v50 }
 0xfd4   :  { %2267 = vrot.lane.b32.xlu1 %v4567_v3, %s4990_s29 }
 0xfd5   :  { %v2080_v51 = vpop.xlane.xlu0 %2079 }
 0xfd6   :  { %v2100_v53 = vsub.f32 %v4642_v7, %v2080_v51 }
 0xfd8   :  { %2315 = vrot.lane.b32.xlu1 %v4569_v5, %s4990_s29  ;;  %v2109_v55 = vmul.f32 1.442695, %v2100_v53 }
 0xfda   :  { %3931 = vpow2.f32 %v2109_v55 }
 0xfdb   :  { %2219 = vrot.lane.b32.xlu0 %v4561_v0, %s4990_s29  ;;  %v2077_v52 = vpop.xlane.xlu1 %2076 }
 0xfdc   :  { %v2099_v54 = vsub.f32 %v2067_v61, %v2077_v52 }
 0xfde   :  { %v2107_v56 = vmul.f32 1.442695, %v2099_v54 }
 0xfe0   :  { %3933 = vpow2.f32 %v2107_v56 }
 0xfe4   :  { %v3932_v9 = vpop.eup %3931 }
 0xfe5   :  { %v2126_v3 = vsel %vm301_vm2, %v3932_v9, 0.0 }
 0xfea   :  { %v4669_v6 = vpop.eup %3933 }
 0xfeb   :  { %v2123_v5 = vsel %vm301_vm2, %v4669_v6, 0.0 }
 0xffa   :  { %2127 = vadd.xlane.f32.xlu0 %v2126_v3 }
 0xffc   :  { %2124 = vadd.xlane.f32.xlu1 %v2123_v5 }
0x100d   :  { %2363 = vrot.lane.b32.xlu1 %v4573_v8, %s4990_s29 }
0x1040   :  { %v2083_v0 = vpop.xlane.xlu0 %2082 }
0x1041   :  { %v2101_v7 = vsub.f32 %v2069_v4, %v2083_v0 }
0x1043   :  { %v2111_v57 = vmul.f32 1.442695, %v2101_v7 }
0x1044   :  { %v2086_v58 = vpop.xlane.xlu0 %2085 }
0x1045   :  { %3935 = vpow2.f32 %v2111_v57  ;;  %v2102_v59 = vsub.f32 %v2070_v17, %v2086_v58 }
0x1047   :  { %v2113_v60 = vmul.f32 1.442695, %v2102_v59 }
0x1048   :  { %v2089_v61 = vpop.xlane.xlu1 %2088 }
0x1049   :  { %3937 = vpow2.f32 %v2113_v60  ;;  %v2103_v62 = vsub.f32 %v2071_v34, %v2089_v61 }
0x104a   :  { %v2092_v63 = vpop.xlane.xlu0 %2091 }
0x104b   :  { %v2115_v11 = vmul.f32 1.442695, %v2103_v62  ;;  %v2104_v32 = vsub.f32 %v4652_v10, %v2092_v63 }
0x104d   :  { %3939 = vpow2.f32 %v2115_v11  ;;  %v2117_v34 = vmul.f32 1.442695, %v2104_v32 }
0x104f   :  { %v4676_v1 = vpop.eup %3935 }
0x1050   :  { %v2095_v2 = vpop.xlane.xlu1 %2094  ;;  %v2129_v19 = vsel %vm301_vm2, %v4676_v1, 0.0 }
0x1051   :  { %v2105_v8 = vsub.f32 %v2073_v41, %v2095_v2  ;;  %2130 = vadd.xlane.f32.xlu1 %v2129_v19 }
0x1052   :  { %v2098_v4 = vpop.xlane.xlu0 %2097 }
0x1053   :  { %v4680_v12 = vpop.eup %3937  ;;  %v2119_v13 = vmul.f32 1.442695, %v2105_v8  ;;  %v2106_v35 = vsub.f32 %v4657_v46, %v2098_v4 }
0x1054   :  { %v2132_v17 = vsel %vm301_vm2, %v4680_v12, 0.0  ;;  %v2268_v36 = vpop.permute.xlu1 %2267 }
0x1055   :  { %3941 = vpow2.f32 %v2119_v13  ;;  %2133 = vadd.xlane.f32.xlu0 %v2132_v17  ;;  %v2121_v26 = vmul.f32 1.442695, %v2106_v35  ;;  %v2273_v46 = vsel %vm812_vm3, %v2268_v36, 0 }
0x1056   :  { %v2220_v20 = vpop.permute.xlu0 %2219  ;;  %3943 = vpow2.f32 %v2117_v34 }
0x1057   :  { %v4684_v21 = vpop.eup %3939  ;;  %v2225_v25 = vsel %vm812_vm3, %v2220_v20, 0  ;;  %3945 = vpow2.f32 %v2121_v26 }
0x1058   :  { %3714 = vmatpush3.bf16.msra.mxu1 %v2225_v25  ;;  %v2135_v28 = vsel %vm301_vm2, %v4684_v21, 0.0  ;;  %v2316_v27 = vpop.permute.xlu1 %2315 }
0x1059   :  { %2136 = vadd.xlane.f32.xlu1 %v2135_v28  ;;  %3725 = vmatprep.subr.bf16.mxu1 %v4017_v44  ;;  %v2321_v43 = vsel %vm812_vm3, %v2316_v27, 0 }
0x105f   :  { %v4690_v29 = vpop.eup %3941 }
0x1060   :  { %v2141_v30 = vsel %vm301_vm2, %v4690_v29, 0.0  ;;  %v4700_v37 = vpop.eup %3943 }
0x1061   :  { %2142 = vadd.xlane.f32.xlu1 %v2141_v30  ;;  %v4704_v15 = vpop.eup %3945 }
0x106b   :  { %2411 = vrot.lane.b32.xlu0 %v4581_v16, %s4990_s29  ;;  %v2138_v16 = vsel %vm301_vm2, %v4700_v37, 0.0 }
0x1072   :  { %2459 = vrot.lane.b32.xlu1 %v4590_v24, %s4990_s29  ;;  %v2144_v24 = vsel %vm301_vm2, %v4704_v15, 0.0 }
0x1087   :  { %v2128_v38 = vpop.xlane.xlu0 %2127 }
0x1088   :  { %3947 = vrcp.f32 %v2128_v38 }
0x1089   :  { %v2125_v39 = vpop.xlane.xlu1 %2124 }
0x108a   :  { %3949 = vrcp.f32 %v2125_v39  ;;  %2139 = vadd.xlane.f32.xlu0 %v2138_v16 }
0x108d   :  { %v2364_v47 = vpop.permute.xlu1 %2363 }
0x108e   :  { %2145 = vadd.xlane.f32.xlu0 %v2144_v24  ;;  %v2369_v53 = vsel %vm812_vm3, %v2364_v47, 0 }
0x1092   :  { %v3948_v10 = vpop.eup %3947 }
0x1093   :  { %v2156_v40 = vmul.f32 %v3948_v10, %v3932_v9 }
0x1094   :  { %v3950_v31 = vpop.eup %3949 }
0x1095   :  { %v2155_v41 = vmul.f32 %v3950_v31, %v4669_v6  ;;  %v2164_v42 = vpack.c.bf16 %v2156_v40, %v2156_v40 }
0x1097   :  { %3716 = vmatmul.mubr.msk.bf16.vlgmr.msra.gmra.mrb[56].mxu1 %vm301_vm2, %v2164_v42  ;;  %v2163_v45 = vpack.c.bf16 %v2155_v41, %v2155_v41  ;;  %v3865_v42 = vld [vmem:[%s4983_s4 + $0x10] sm:$0xff]  }
0x1098   :  { %3726 = vmatpush3.bf16.msra.mxu1 %v2321_v43  ;;  %3727 = vmatprep.mubr.msk.bf16.mxu1 %vm4018_vm1, %v4017_v44  ;;  %v3866_v43 = vld [vmem:[%s4983_s4 + $0x18] sm:$0xff]  }
0x1099   :  { %3710 = vmatmul.mubr.msk.bf16.vlgmr.msra.gmra.mrb[60].mxu0 %vm301_vm2, %v2163_v45  ;;  %3737 = vmatprep.subr.bf16.mxu1 %v4017_v44 }
0x109a   :  { %3720 = vmatpush3.bf16.msra.mxu0 %v2273_v46  ;;  %3721 = vmatprep.mubr.msk.bf16.mxu0 %vm4018_vm1, %v4017_v44 }
0x109b   :  { %3731 = vmatprep.subr.bf16.mxu0 %v4017_v44 }
0x10a4   :  { %2507 = vrot.lane.b32.xlu0 %v4588_v23, %s4990_s29 }
0x10de   :  { %v2131_v48 = vpop.xlane.xlu1 %2130 }
0x10df   :  { %3951 = vrcp.f32 %v2131_v48 }
0x10e2   :  { %v2134_v18 = vpop.xlane.xlu0 %2133 }
0x10e3   :  { %3953 = vrcp.f32 %v2134_v18 }
0x10e6   :  { %v2137_v22 = vpop.xlane.xlu1 %2136  ;;  %v2412_v23 = vpop.permute.xlu0 %2411 }
0x10e7   :  { %3955 = vrcp.f32 %v2137_v22  ;;  %v2417_v6 = vsel %vm812_vm3, %v2412_v23, 0 }
0x10e9   :  { %v3952_v49 = vpop.eup %3951 }
0x10ea   :  { %v2157_v50 = vmul.f32 %v3952_v49, %v4676_v1 }
0x10ec   :  { %v2165_v51 = vpack.c.bf16 %v2157_v50, %v2157_v50 }
0x10ed   :  { %v3954_v52 = vpop.eup %3953 }
0x10ee   :  { %v2158_v54 = vmul.f32 %v3954_v52, %v4680_v12  ;;  %3722 = vmatmul.mubr.msk.bf16.vlgmr.msra.gmra.mrb[64].mxu0 %vm301_vm2, %v2165_v51  ;;  %v2143_v55 = vpop.xlane.xlu1 %2142 }
0x10ef   :  { %3732 = vmatpush3.bf16.msra.mxu0 %v2369_v53  ;;  %3957 = vrcp.f32 %v2143_v55  ;;  %3733 = vmatprep.mubr.msk.bf16.mxu0 %vm4018_vm1, %v4017_v44 }
0x10f0   :  { %v2166_v56 = vpack.c.bf16 %v2158_v54, %v2158_v54  ;;  %3743 = vmatprep.subr.bf16.mxu0 %v4017_v44 }
0x10f1   :  { %v3956_v9 = vpop.eup %3955 }
0x10f2   :  { %v2159_v3 = vmul.f32 %v3956_v9, %v4684_v21  ;;  %3728 = vmatmul.mubr.msk.bf16.vlgmr.msra.gmra.mrb[60].mxu1 %vm301_vm2, %v2166_v56  ;;  %v2460_v5 = vpop.permute.xlu1 %2459 }
0x10f3   :  { %3738 = vmatpush3.bf16.msra.mxu1 %v2417_v6  ;;  %3739 = vmatprep.mubr.msk.bf16.mxu1 %vm4018_vm1, %v4017_v44  ;;  %v2465_v7 = vsel %vm812_vm3, %v2460_v5, 0 }
0x10f4   :  { %v2167_v0 = vpack.c.bf16 %v2159_v3, %v2159_v3  ;;  %3749 = vmatprep.subr.bf16.mxu1 %v4017_v44 }
0x10f6   :  { %3734 = vmatmul.mubr.msk.bf16.vlgmr.msra.gmra.mrb[68].mxu0 %vm301_vm2, %v2167_v0 }
0x10f7   :  { %3744 = vmatpush3.bf16.msra.mxu0 %v2465_v7  ;;  %3745 = vmatprep.mubr.msk.bf16.mxu0 %vm4018_vm1, %v4017_v44 }
0x10f8   :  { %3755 = vmatprep.subr.bf16.mxu0 %v4017_v44 }
0x10f9   :  { %v3958_v57 = vpop.eup %3957 }
0x10fa   :  { %v2161_v58 = vmul.f32 %v3958_v57, %v4690_v29 }
0x10fc   :  { %v2169_v59 = vpack.c.bf16 %v2161_v58, %v2161_v58 }
0x10fe   :  { %3746 = vmatmul.mubr.msk.bf16.vlgmr.msra.gmra.mrb[72].mxu0 %vm301_vm2, %v2169_v59 }
0x10ff   :  { %3759 = vmatprep.mubr.msk.bf16.mxu0 %vm4018_vm1, %v4017_v44  ;;  %3756 = vmatpush3.bf16.msra.mxu0 %v3865_v42 }
0x1100   :  { %3757 = vmatprep.subr.bf16.mxu0 %v4017_v44 }
0x1103   :  { %3758 = vmatpush3.bf16.msra.mxu0 %v3866_v43 }
0x1104   :  { %3771 = vmatprep.subr.bf16.mxu0 %v4017_v44 }
0x1117   :  { %v2140_v60 = vpop.xlane.xlu0 %2139 }
0x1118   :  { %3959 = vrcp.f32 %v2140_v60 }
0x111b   :  { %v2146_v61 = vpop.xlane.xlu0 %2145 }
0x111c   :  { %3961 = vrcp.f32 %v2146_v61 }
0x111f   :  { %v2508_v63 = vpop.permute.xlu0 %2507 }
0x1120   :  { %v2513_v19 = vsel %vm812_vm3, %v2508_v63, 0 }
0x1122   :  { %v3960_v62 = vpop.eup %3959 }
0x1123   :  { %v2160_v11 = vmul.f32 %v3960_v62, %v4700_v37  ;;  %v3366_v62 = vld [vmem:[%s4984_s5 + $0x1] ss:$0 sm:$0xff] }
0x1125   :  { %v2168_v1 = vpack.c.bf16 %v2160_v11, %v2160_v11 }
0x1126   :  { %v3962_v2 = vpop.eup %3961 }
0x1127   :  { %3740 = vmatmul.mubr.msk.bf16.vlgmr.msra.gmra.mrb[64].mxu1 %vm301_vm2, %v2168_v1  ;;  %v2162_v8 = vmul.f32 %v3962_v2, %v4704_v15 }
0x1128   :  { %3750 = vmatpush3.bf16.msra.mxu1 %v2513_v19  ;;  %3751 = vmatprep.mubr.msk.bf16.mxu1 %vm4018_vm1, %v4017_v44 }
0x1129   :  { %3763 = vmatprep.subr.bf16.mxu1 %v4017_v44  ;;  %v2170_v4 = vpack.c.bf16 %v2162_v8, %v2162_v8 }
0x112f   :  { %3752 = vmatmul.mubr.msk.bf16.vlgmr.msra.gmra.mrb[68].mxu1 %vm301_vm2, %v2170_v4 }
0x1130   :  { %3767 = vmatprep.mubr.msk.bf16.mxu1 %vm4018_vm1, %v4017_v44 }
0x116a   :  { %v2261_v12 = vpop.f32.mrb[56].mxu1 }
0x116b   :  { %v3717_v13 = vpop.f32.mrb[57].mxu1 }
0x116c   :  { %v2213_v17 = vpop.f32.mrb[60].mxu0  ;;  %v2264_v20 = vpop.f32.mrb[58].mxu1 }
0x116d   :  { %v3711_v21 = vpop.f32.mrb[61].mxu0  ;;  %v3718_v25 = vpop.f32.mrb[59].mxu1 }
0x116e   :  { %v2216_v28 = vpop.f32.mrb[62].mxu0 }
0x116f   :  { %v3712_v29 = vpop.f32.mrb[63].mxu0 }
0x11c1   :  { %v2309_v30 = vpop.f32.mrb[64].mxu0 }
0x11c2   :  { %v3723_v32 = vpop.f32.mrb[65].mxu0 }
0x11c3   :  { %v2312_v34 = vpop.f32.mrb[66].mxu0 }
0x11c4   :  { %v3724_v35 = vpop.f32.mrb[67].mxu0 }
0x11c5   :  { %v2357_v26 = vpop.f32.mrb[60].mxu1 }
0x11c6   :  { %v3836_v36 = vpack.i.bf16 %v2357_v26, %v2309_v30  ;;  %v3729_v27 = vpop.f32.mrb[61].mxu1 }
0x11c7   :  { %v2360_v37 = vpop.f32.mrb[62].mxu1  ;;  %v3868_v27 = vld [vmem:[%s4924_s13 + $0x18] sm:$0xff]  }
0x11c8   :  { %v3730_v38 = vpop.f32.mrb[63].mxu1  ;;  %3837 = vrot.lane.b32.xlu1 %v3836_v36, %s4991_s8  ;;  %v3867_v36 = vld [vmem:[%s4924_s13 + $0x10] sm:$0xff]   ;;  %s4994_s8 = sld [smem:[#allocation8_spill]] }
0x11c9   :  { %v2405_v39 = vpop.f32.mrb[68].mxu0  ;;  %3764 = vmatpush3.bf16.msra.mxu1 %v3867_v36 }
0x11ca   :  { %v3735_v16 = vpop.f32.mrb[69].mxu0  ;;  %3765 = vmatprep.subr.bf16.mxu1 %v4017_v44 }
0x11cb   :  { %v2408_v15 = vpop.f32.mrb[70].mxu0 }
0x11cc   :  { %v3736_v24 = vpop.f32.mrb[71].mxu0 }
0x11cd   :  { %3766 = vmatpush3.bf16.msra.mxu1 %v3868_v27  ;;  %v2880_v27 = vmul.f32 0.4, %v4526_v14 }
0x11ce   :  { %3783 = vmatprep.subr.bf16.mxu1 %v4017_v44 }
0x11d1   :  { %v2501_v10 = vpop.f32.mrb[72].mxu0 }
0x11d2   :  { %v3747_v40 = vpop.f32.mrb[73].mxu0 }
0x11d3   :  { %v2504_v31 = vpop.f32.mrb[74].mxu0 }
0x11d4   :  { %v3748_v41 = vpop.f32.mrb[75].mxu0  ;;  %v3372_v31 = vld [vmem:[%s4985_s28 + $0x1] ss:$0 sm:$0xff] }
0x11fa   :  { %v2453_v45 = vpop.f32.mrb[64].mxu1 }
0x11fb   :  { %v3841_v46 = vpack.i.bf16 %v2453_v45, %v2405_v39  ;;  %v3741_v47 = vpop.f32.mrb[65].mxu1  ;;  %v3373_v45 = vld [vmem:[%s4923_s12 + $0x1] ss:$0 sm:$0xff] }
0x11fc   :  { %v2456_v48 = vpop.f32.mrb[66].mxu1 }
0x11fd   :  { %v3742_v18 = vpop.f32.mrb[67].mxu1  ;;  %3842 = vrot.lane.b32.xlu0 %v3841_v46, %s4992_s20 }
0x1202   :  { %v2549_v22 = vpop.f32.mrb[68].mxu1 }
0x1203   :  { %v3846_v49 = vpack.i.bf16 %v2549_v22, %v2501_v10  ;;  %v3753_v50 = vpop.f32.mrb[69].mxu1  ;;  %v3869_v22 = vld [vmem:[%s4926_s15 + $0x20] sm:$0xff]  }
0x1204   :  { %v2552_v51 = vpop.f32.mrb[70].mxu1  ;;  %v3871_v50 = vld [vmem:[%s4926_s15 + $0x30] sm:$0xff]  }
0x1205   :  { %v3754_v52 = vpop.f32.mrb[71].mxu1  ;;  %3847 = vrot.lane.b32.xlu1 %v3846_v49, %s4993_s7  ;;  %v3870_v49 = vld [vmem:[%s4926_s15 + $0x28] sm:$0xff]   ;;  %v3872_v51 = vld [vmem:[%s4926_s15 + $0x38] sm:$0xff]  }
0x1206   :  { %v3379_v52 = vld [vmem:[%s4925_s14 + $0x1] ss:$0 sm:$0xff] }
0x123a   :  { %v3838_v53 = vpop.permute.xlu1 %3837 }
0x123b   :  { %v3840_v55 = vunpack.i.h.bf16 %v3838_v53  ;;  %v3839_v23 = vunpack.i.l.bf16 %v3838_v53 }
0x123d   :  { %v2580_v3 = vsel %vm301_vm2, %v2261_v12, %v3840_v55  ;;  %v2579_v5 = vsel %vm301_vm2, %v2213_v17, %v3839_v23 }
0x126f   :  { %v3843_v54 = vpop.permute.xlu0 %3842 }
0x1270   :  { %v3845_v56 = vunpack.i.h.bf16 %v3843_v54  ;;  %v3844_v9 = vunpack.i.l.bf16 %v3843_v54 }
0x1272   :  { %v2582_v57 = vsel %vm1218_vm4, %v2580_v3, %v3845_v56  ;;  %v2581_v58 = vsel %vm1218_vm4, %v2579_v5, %v3844_v9 }
0x1277   :  { %v3848_v6 = vpop.permute.xlu1 %3847 }
0x1278   :  { %v3850_v0 = vunpack.i.h.bf16 %v3848_v6  ;;  %v3849_v7 = vunpack.i.l.bf16 %v3848_v6 }
0x127a   :  { %v2584_v59 = vsel %vm1221_vm5, %v2582_v57, %v3850_v0  ;;  %v2583_v60 = vsel %vm1221_vm5, %v2581_v58, %v3849_v7 }
0x127b   :  { %v2590_v61 = vpack.c.bf16 %v2584_v59, %v2583_v60 }
0x127d   :  { %3760 = vmatmul.mubr.msk.bf16.vlgmr.msra.gmra.mrb[76].mxu0 %vm98_vm0, %v2590_v61 }
0x127e   :  { %3779 = vmatprep.mubr.msk.bf16.mxu0 %vm4018_vm1, %v4017_v44  ;;  %3772 = vmatpush3.bf16.msra.mxu0 %v3869_v22 }
0x127f   :  { %3773 = vmatprep.subr.bf16.mxu0 %v4017_v44 }
0x1282   :  { %3774 = vmatpush3.bf16.msra.mxu0 %v3870_v49  ;;  %v3398_v49 = vld [vmem:[%s4928_s17] ss:$0 sm:$0xff] }
0x1283   :  { %3775 = vmatprep.subr.bf16.mxu0 %v4017_v44 }
0x1286   :  { %3776 = vmatpush3.bf16.msra.mxu0 %v3871_v50 }
0x1287   :  { %3777 = vmatprep.subr.bf16.mxu0 %v4017_v44 }
0x128a   :  { %3778 = vmatpush3.bf16.msra.mxu0 %v3872_v51 }
0x128b   :  { %3799 = vmatprep.subr.bf16.mxu0 %v4017_v44 }
0x1350   :  { %v2648_v11 = vpop.f32.mrb[76].mxu0 }
0x1351   :  { %v2649_v63 = vadd.f32 %v3366_v62, %v2648_v11  ;;  %v3761_v1 = vpop.f32.mrb[77].mxu0 }
0x1352   :  { %v2651_v2 = vpop.f32.mrb[78].mxu0 }
0x1353   :  { %v4777_v19 = vadd.f32 %v2649_v63, %v4522_v33  ;;  %v2652_v8 = vadd.f32 %v3366_v62, %v2651_v2  ;;  %v3762_v4 = vpop.f32.mrb[79].mxu0 }
0x1355   :  { %v4780_v12 = vadd.f32 %v2652_v8, %v4526_v14  ;;  %v2661_v13 = vsel %vm98_vm0, %v4777_v19, 0.0 }
0x1356   :  { %2662 = vadd.xlane.f32.xlu0 %v2661_v13 }
0x1357   :  { %v2664_v17 = vsel %vm98_vm0, %v4780_v12, 0.0 }
0x1358   :  { %2665 = vadd.xlane.f32.xlu1 %v2664_v17 }
0x13e3   :  { %v2663_v20 = vpop.xlane.xlu0 %2662 }
0x13e4   :  { %v2667_v21 = vmul.f32 0.03125, %v2663_v20  ;;  %v3392_v20 = vld [vmem:[%s4927_s16 + $0x1] ss:$0 sm:$0xff] }
0x13e5   :  { %v2666_v25 = vpop.xlane.xlu1 %2665 }
0x13e6   :  { %v2669_v28 = vsub.f32 %v4777_v19, %v2667_v21  ;;  %v2668_v29 = vmul.f32 0.03125, %v2666_v25 }
0x13e8   :  { %v2670_v30 = vsub.f32 %v4780_v12, %v2668_v29  ;;  %v2671_v32 = vmul.f32 %v2669_v28, %v2669_v28 }
0x13ea   :  { %v2673_v34 = vsel %vm98_vm0, %v2671_v32, 0.0  ;;  %v2672_v35 = vmul.f32 %v2670_v30, %v2670_v30 }
0x13eb   :  { %2674 = vadd.xlane.f32.xlu0 %v2673_v34 }
0x13ec   :  { %v2676_v26 = vsel %vm98_vm0, %v2672_v35, 0.0  ;;  %v2879_v35 = vmul.f32 0.4, %v4522_v33 }
0x13ef   :  { %2677 = vadd.xlane.f32.xlu0 %v2676_v26 }
0x1478   :  { %v2675_v37 = vpop.xlane.xlu0 %2674 }
0x1479   :  { %v2679_v38 = vmul.f32 0.03125, %v2675_v37 }
0x147b   :  { %v2681_v39 = vadd.f32 1e-05, %v2679_v38 }
0x147c   :  { %v2678_v16 = vpop.xlane.xlu0 %2677 }
0x147d   :  { %3963 = vrsqrt.f32 %v2681_v39  ;;  %v2680_v15 = vmul.f32 0.03125, %v2678_v16 }
0x147f   :  { %v2682_v24 = vadd.f32 1e-05, %v2680_v15 }
0x1481   :  { %3965 = vrsqrt.f32 %v2682_v24 }
0x1487   :  { %v3964_v10 = vpop.eup %3963 }
0x1488   :  { %v2685_v40 = vmul.f32 %v3964_v10, %v2669_v28 }
0x148a   :  { %v2693_v42 = vmul.f32 %v3372_v31, %v2685_v40 }
0x148b   :  { %v3966_v41 = vpop.eup %3965 }
0x148c   :  { %v2686_v43 = vmul.f32 %v3966_v41, %v2670_v30  ;;  %v2701_v47 = vadd.f32 %v3373_v45, %v2693_v42  ;;  %v3873_v41 = vld [vmem:[%s4930_s19] sm:$0xff]   ;;  %v3874_v42 = vld [vmem:[%s4930_s19 + $0x8] sm:$0xff]  }
0x148e   :  { %v2694_v46 = vmul.f32 %v3372_v31, %v2686_v43 }
0x1490   :  { %v2702_v48 = vadd.f32 %v3373_v45, %v2694_v46 }
0x1492   :  { %v2708_v18 = vpack.c.bf16 %v2702_v48, %v2701_v47 }
0x1494   :  { %3768 = vmatmul.mubr.msk.bf16.vlgmr.msra.gmra.mrb[72].mxu1 %vm98_vm0, %v2708_v18 }
0x1495   :  { %3787 = vmatprep.mubr.msk.bf16.mxu1 %vm4018_vm1, %v4017_v44  ;;  %3784 = vmatpush3.bf16.msra.mxu1 %v3873_v41 }
0x1496   :  { %3785 = vmatprep.subr.bf16.mxu1 %v4017_v44 }
0x1499   :  { %3786 = vmatpush3.bf16.msra.mxu1 %v3874_v42 }
0x149a   :  { %3791 = vmatprep.subr.bf16.mxu1 %v4017_v44 }
0x1567   :  { %v2766_v53 = vpop.f32.mrb[72].mxu1 }
0x1568   :  { %v2767_v54 = vadd.f32 %v3379_v52, %v2766_v53  ;;  %v3769_v55 = vpop.f32.mrb[73].mxu1 }
0x1569   :  { %v2769_v23 = vpop.f32.mrb[74].mxu1 }
0x156a   :  { %v2775_v56 = vmul.f32 0.044715, %v2767_v54  ;;  %v2770_v9 = vadd.f32 %v3379_v52, %v2769_v23  ;;  %v3770_v6 = vpop.f32.mrb[75].mxu1  ;;  %v2773_v1 = vmul.f32 0.5, %v2767_v54 }
0x156b   :  { %v4027_v6 = vmov 0  }
0x156c   :  { %v2777_v3 = vmul.f32 %v2775_v56, %v2767_v54  ;;  %v2776_v5 = vmul.f32 0.044715, %v2770_v9  ;;  %v2774_v2 = vmul.f32 0.5, %v2770_v9  ;;  %3851 = vset.pattern.permute.xlu0 %v4027_v6  ;;  %3852 = vset.pattern.permute.xlu1 %v4027_v6 }
0x156e   :  { %v2779_v0 = vmul.f32 %v2777_v3, %v2767_v54  ;;  %v2778_v7 = vmul.f32 %v2776_v5, %v2770_v9  ;;  %v3400_v3 = vld [vmem:[#allocation2] ss:$0 sm:$0xff] }
0x1570   :  { %v2781_v57 = vadd.f32 %v2779_v0, %v2767_v54  ;;  %v2780_v58 = vmul.f32 %v2778_v7, %v2770_v9  ;;  %v3399_v54 = vld [vmem:[%s4929_s18] ss:$0 sm:$0xff] }
0x1572   :  { %v2783_v59 = vmul.f32 0.7978846, %v2781_v57  ;;  %v2782_v60 = vadd.f32 %v2780_v58, %v2770_v9 }
0x1574   :  { %3967 = vtanh.f32 %v2783_v59  ;;  %v2784_v61 = vmul.f32 0.7978846, %v2782_v60 }
0x1576   :  { %3969 = vtanh.f32 %v2784_v61 }
0x157e   :  { %v3968_v62 = vpop.eup %3967 }
0x157f   :  { %v2787_v11 = vadd.f32 1.0, %v3968_v62 }
0x1580   :  { %v3970_v63 = vpop.eup %3969 }
0x1581   :  { %v2788_v8 = vadd.f32 1.0, %v3970_v63  ;;  %v2789_v4 = vmul.f32 %v2787_v11, %v2773_v1 }
0x1583   :  { %v2790_v13 = vmul.f32 %v2788_v8, %v2774_v2  ;;  %v92_v2 = vld [vmem:[%s4994_s8] sm:$0xff] }
0x1585   :  { %v2800_v17 = vpack.c.bf16 %v2790_v13, %v2789_v4  ;;  %v93_v4 = vld [vmem:[%s4994_s8 + $0x8] sm:$0xff] }
0x1587   :  { %3780 = vmatmul.mubr.msk.bf16.vlgmr.msra.gmra.mrb[80].mxu0 %vm1464_vm6, %v2800_v17 }
0x1588   :  { %3803 = vmatprep.mubr.msk.bf16.mxu0 %vm4018_vm1, %v4017_v44 }
0x165a   :  { %v2870_v21 = vpop.f32.mrb[80].mxu0 }
0x165b   :  { %v2871_v25 = vadd.f32 %v3392_v20, %v2870_v21  ;;  %v3781_v28 = vpop.f32.mrb[81].mxu0 }
0x165c   :  { %v2873_v29 = vpop.f32.mrb[82].mxu0 }
0x165d   :  { %v2877_v30 = vadd.f32 %v2871_v25, %v4777_v19  ;;  %v2874_v32 = vadd.f32 %v3392_v20, %v2873_v29  ;;  %v3782_v34 = vpop.f32.mrb[83].mxu0 }
0x165f   :  { %v2878_v26 = vadd.f32 %v2874_v32, %v4780_v12  ;;  %v2881_v36 = vadd.f32 %v2879_v35, %v2877_v30 }
0x1661   :  { %v2885_v37 = vsel %vm98_vm0, %v2881_v36, 0.0  ;;  %v2882_v38 = vadd.f32 %v2880_v27, %v2878_v26 }
0x1662   :  { %2886 = vadd.xlane.f32.xlu0 %v2885_v37 }
0x1663   :  { %v2888_v39 = vsel %vm98_vm0, %v2882_v38, 0.0 }
0x1664   :  { %2889 = vadd.xlane.f32.xlu1 %v2888_v39 }
0x16ef   :  { %v2887_v16 = vpop.xlane.xlu0 %2886 }
0x16f0   :  { %v2891_v15 = vmul.f32 0.03125, %v2887_v16 }
0x16f1   :  { %v2890_v24 = vpop.xlane.xlu1 %2889 }
0x16f2   :  { %v2893_v19 = vsub.f32 %v2881_v36, %v2891_v15  ;;  %v2892_v10 = vmul.f32 0.03125, %v2890_v24 }
0x16f4   :  { %v2894_v40 = vsub.f32 %v2882_v38, %v2892_v10  ;;  %v2895_v31 = vmul.f32 %v2893_v19, %v2893_v19  ;;  %v3875_v10 = vld [vmem:[%s4932_s21] sm:$0xff]  }
0x16f6   :  { %v2897_v33 = vsel %vm98_vm0, %v2895_v31, 0.0  ;;  %v2896_v12 = vmul.f32 %v2894_v40, %v2894_v40 }
0x16f7   :  { %2898 = vadd.xlane.f32.xlu0 %v2897_v33 }
0x16f8   :  { %v2900_v14 = vsel %vm98_vm0, %v2896_v12, 0.0 }
0x16f9   :  { %2901 = vadd.xlane.f32.xlu1 %v2900_v14 }
0x1784   :  { %v2899_v43 = vpop.xlane.xlu0 %2898 }
0x1785   :  { %v2903_v45 = vmul.f32 0.03125, %v2899_v43 }
0x1786   :  { %v2902_v46 = vpop.xlane.xlu1 %2901 }
0x1787   :  { %v2905_v47 = vadd.f32 1e-05, %v2903_v45  ;;  %v2904_v48 = vmul.f32 0.03125, %v2902_v46 }
0x1789   :  { %3971 = vrsqrt.f32 %v2905_v47  ;;  %v2906_v18 = vadd.f32 1e-05, %v2904_v48 }
0x178b   :  { %3973 = vrsqrt.f32 %v2906_v18 }
0x1793   :  { %v3972_v22 = vpop.eup %3971 }
0x1794   :  { %v2909_v50 = vmul.f32 %v3972_v22, %v2893_v19 }
0x1795   :  { %v3974_v51 = vpop.eup %3973 }
0x1796   :  { %v2917_v52 = vmul.f32 %v3398_v49, %v2909_v50  ;;  %v2910_v53 = vmul.f32 %v3974_v51, %v2894_v40  ;;  %v3876_v40 = vld [vmem:[%s4932_s21 + $0x8] sm:$0xff]  }
0x1798   :  { %v2918_v55 = vmul.f32 %v3398_v49, %v2910_v53  ;;  %v2925_v23 = vadd.f32 %v3399_v54, %v2917_v52 }
0x179a   :  { %v4854_v56 = vadd.f32 %v3399_v54, %v2918_v55 }
0x179c   :  { %v2931_v9 = vpack.c.bf16 %v4854_v56, %v2925_v23 }
0x179e   :  { %3788 = vmatmul.mubr.msk.bf16.vlgmr.msra.gmra.mrb[76].mxu1 %vm98_vm0, %v2931_v9 }
0x179f   :  { %3795 = vmatprep.mubr.msk.bf16.mxu1 %vm4018_vm1, %v4017_v44  ;;  %3792 = vmatpush3.bf16.msra.mxu1 %v3875_v10 }
0x17a0   :  { %3793 = vmatprep.subr.bf16.mxu1 %v4017_v44 }
0x17a3   :  { %3794 = vmatpush3.bf16.msra.mxu1 %v3876_v40  ;;  %v3251_v40 = vlaneseq }
0x1871   :  { %v2988_v5 = vpop.f32.mrb[76].mxu1 }
0x1872   :  { %v2989_v0 = vadd.f32 %v3400_v3, %v2988_v5  ;;  %v3789_v7 = vpop.f32.mrb[77].mxu1 }
0x1873   :  { %v2991_v57 = vpop.f32.mrb[78].mxu1 }
0x1874   :  { %v3404_v58 = vmul.f32 -1.442695, %v2989_v0  ;;  %v2992_v59 = vadd.f32 %v3400_v3, %v2991_v57  ;;  %v3790_v60 = vpop.f32.mrb[79].mxu1  ;;  %v3406_v57 = vld [vmem:[%s4933_s22] ss:$0 sm:$0xff] }
0x1876   :  { %3975 = vpow2.f32 %v3404_v58  ;;  %v3405_v61 = vmul.f32 -1.442695, %v2992_v59 }
0x1878   :  { %3977 = vpow2.f32 %v3405_v61 }
0x1880   :  { %v3976_v62 = vpop.eup %3975 }
0x1881   :  { %v3001_v11 = vadd.f32 1.0, %v3976_v62 }
0x1882   :  { %v3978_v63 = vpop.eup %3977 }
0x1883   :  { %3979 = vrcp.f32 %v3001_v11  ;;  %v3002_v1 = vadd.f32 1.0, %v3978_v63 }
0x1885   :  { %3981 = vrcp.f32 %v3002_v1 }
0x188d   :  { %v3980_v8 = vpop.eup %3979 }
0x188e   :  { %v3007_v13 = vmul.f32 %v3980_v8, %v92_v2 }
0x188f   :  { %v3982_v17 = vpop.eup %3981 }
0x1890   :  { %3011 = vperm.xlu0 %3851, %v3007_v13   ;;  %v3036_v20 = vsel %vm3035_vm7, %v3007_v13, 0.0  ;;  %v3008_v21 = vmul.f32 %v3982_v17, %v93_v4  ;;  %v3877_v13 = vld [vmem:[%s4936_s25] sm:$0xff]   ;;  %v3878_v17 = vld [vmem:[%s4936_s25 + $0x8] sm:$0xff]   ;;  %s4029_s25 = smov [#allocation3]  }
0x1891   :  { %v3037_v25 = vrot.slane %v3036_v20, 4  ;;  %3800 = vmatpush3.bf16.msra.mxu0 %v3877_v13  ;;  %s3279_s10 = sshll.u32 %s4029_s25, 4  ;;  %s3280_s10 = int_to_ptr.vmem [resolvable:$true] %s3279_s10 }
0x1892   :  { %3016 = vperm.xlu1 %3852, %v3008_v21   ;;  %v3043_v28 = vsel %vm3035_vm7, %v3008_v21, 0.0  ;;  %3801 = vmatprep.subr.bf16.mxu0 %v4017_v44  ;;  %s3993_s6 = scalar_lea.vmem %s3280_s10, 32  ;;  %p3998_p1 = scmp.lt.s32.totalorder %s3280_s10, %s3280_s10 }
0x1893   :  { %v3038_v29 = vadd.f32 %v3037_v25, %v3036_v20  ;;  %v3044_v30 = vrot.slane %v3043_v28, 4  ;;  %p3994_p0 = scmp.ne.s32.totalorder %s3280_s10, %s3993_s6  ;;  %p3999_p2 = scmp.lt.s32.totalorder %s3993_s6, %s3993_s6 }
0x1895   :  { %v3039_v32 = vrot.slane %v3038_v29, 2  ;;  %v3045_v34 = vadd.f32 %v3044_v30, %v3043_v28  ;;  %3802 = vmatpush3.bf16.msra.mxu0 %v3878_v17  ;;  %p4000_p3 = por %p3999_p2, %p3998_p1 }
0x1897   :  { %v3040_v35 = vadd.f32 %v3039_v32, %v3038_v29  ;;  %v3046_v26 = vrot.slane %v3045_v34, 2  ;;  %v3410_v29 = vld [vmem:[%s4934_s23] ss:$0 sm:$0xff]  ;;  %p4001_p4 = pnand %p4000_p3, %p3994_p0 }
0x1898   :  { %v3411_v32 = vld [vmem:[%s4935_s24] ss:$0 sm:$0xff] }
0x1899   :  { %v3041_v36 = vrot.slane %v3040_v35, 1  ;;  %v3047_v27 = vadd.f32 %v3046_v26, %v3045_v34 }
0x189b   :  { %v3042_v37 = vadd.f32 %v3041_v36, %v3040_v35  ;;  %v3048_v38 = vrot.slane %v3047_v27, 1 }
0x189d   :  { %v3050_v39 = vmax.f32 %v3042_v37, 1e-09  ;;  %v3049_v16 = vadd.f32 %v3048_v38, %v3047_v27 }
0x189f   :  { %3983 = vrcp.f32 %v3050_v39  ;;  %v3051_v15 = vmax.f32 %v3049_v16, 1e-09 }
0x18a1   :  { %3985 = vrcp.f32 %v3051_v15 }
0x18a9   :  { %v3984_v24 = vpop.eup %3983 }
0x18aa   :  { %3056 = vperm.xlu1 %3852, %v3984_v24  }
0x18ab   :  { %v3986_v19 = vpop.eup %3985 }
0x18ae   :  { %3061 = vperm.xlu1 %3852, %v3986_v19   ;;  %v4028_v19 = vmov 1966171168  }
0x18af   :  { %v3249_v10 = vunpack.c.l.s4 %v4028_v19 }
0x190f   :  { %v3012_v31 = vpop.permute.xlu0 %3011 }
0x1910   :  { %v3019_v33 = vmul.f32 %v3012_v31, %v2925_v23  ;;  %v3250_v31 = vunpack.c.0.s8 %v3249_v10 }
0x1911   :  { %v3017_v12 = vpop.permute.xlu1 %3016 }
0x1912   :  { %v3021_v14 = vsel %vm98_vm0, %v3019_v33, 0.0  ;;  %v3020_v41 = vmul.f32 %v3017_v12, %v4854_v56  ;;  %v3252_v33 = vshrl.u32 %v3251_v40, 7  ;;  %v3412_v12 = vld [vmem:[%s4937_s26] ss:$0 sm:$0xff] }
0x1913   :  { %v3022_v42 = vrot.slane %v3021_v14, 4 }
0x1914   :  { %v3028_v43 = vsel %vm98_vm0, %v3020_v41, 0.0 }
0x1915   :  { %v3023_v45 = vadd.f32 %v3022_v42, %v3021_v14  ;;  %v3029_v46 = vrot.slane %v3028_v43, 4  ;;  %v3253_v14 = vsub.s32 %v3250_v31, %v3252_v33 }
0x1917   :  { %v3024_v47 = vrot.slane %v3023_v45, 2  ;;  %v3030_v48 = vadd.f32 %v3029_v46, %v3028_v43 }
0x1919   :  { %v3031_v18 = vrot.slane %v3030_v48, 2  ;;  %v3025_v22 = vadd.f32 %v3024_v47, %v3023_v45 }
0x191b   :  { %v3026_v49 = vrot.slane %v3025_v22, 1  ;;  %v3032_v50 = vadd.f32 %v3031_v18, %v3030_v48 }
0x191d   :  { %v3027_v51 = vadd.f32 %v3026_v49, %v3025_v22  ;;  %v3033_v52 = vrot.slane %v3032_v50, 1 }
0x191f   :  { %v3034_v55 = vadd.f32 %v3033_v52, %v3032_v50 }
0x1929   :  { %v3057_v53 = vpop.permute.xlu1 %3056 }
0x192a   :  { %v3064_v54 = vmul.f32 %v3057_v53, %v3027_v51 }
0x192c   :  { %v3070_v9 = vpack.c.bf16 %v3064_v54, %v3064_v54 }
0x192d   :  { %v3062_v23 = vpop.permute.xlu1 %3061 }
0x192e   :  { %v3065_v6 = vmul.f32 %v3062_v23, %v3034_v55  ;;  %v3081_v3 = vunpack.c.l.b16 %v3070_v9 }
0x1930   :  { %v3071_v56 = vpack.c.bf16 %v3065_v6, %v3065_v6 }
0x1932   :  { %v3082_v5 = vunpack.c.l.b16 %v3071_v56 }
0x1934   :  { %v3084_v0 = vsel %vm3083_vm8, %v3082_v5, %v3081_v3 }
0x1935   :  { %v3085_v7 = vpack.c.b16 %v3084_v0, %v3084_v0 }
0x1937   :  { %3796 = vmatmul.mubr.msk.bf16.vlgmr.msra.gmra.mrb[80].mxu1 %vm98_vm0, %v3085_v7 }
0x1a0a   :  { %v3135_v58 = vpop.f32.mrb[80].mxu1 }
0x1a0b   :  { %v3136_v59 = vadd.f32 %v3406_v57, %v3135_v58  ;;  %v3797_v60 = vpop.f32.mrb[81].mxu1 }
0x1a0c   :  { %v3138_v61 = vpop.f32.mrb[82].mxu1 }
0x1a0d   :  { %v3798_v62 = vpop.f32.mrb[83].mxu1  ;;  %v3144_v11 = vsel %vm3143_vm9, %v3136_v59, 0.0 }
0x1a0e   :  { %3145 = vadd.xlane.f32.xlu1 %v3144_v11 }
0x1a9b   :  { %v3146_v63 = vpop.xlane.xlu1 %3145 }
0x1a9c   :  { %v3147_v1 = vmul.f32 0.03125, %v3146_v63 }
0x1a9e   :  { %v3148_v2 = vsub.f32 %v3136_v59, %v3147_v1 }
0x1aa0   :  { %v3149_v8 = vmul.f32 %v3148_v2, %v3148_v2 }
0x1aa2   :  { %v3150_v4 = vsel %vm3143_vm9, %v3149_v8, 0.0 }
0x1aa3   :  { %3151 = vadd.xlane.f32.xlu0 %v3150_v4 }
0x1b30   :  { %v3152_v20 = vpop.xlane.xlu0 %3151 }
0x1b31   :  { %v3153_v21 = vmul.f32 0.03125, %v3152_v20 }
0x1b33   :  { %v3154_v25 = vadd.f32 1e-05, %v3153_v21 }
0x1b35   :  { %3987 = vrsqrt.f32 %v3154_v25 }
0x1b3f   :  { %v3988_v28 = vpop.eup %3987 }
0x1b40   :  { %v3156_v30 = vmul.f32 %v3988_v28, %v3148_v2 }
0x1b42   :  { %v3163_v34 = vmul.f32 %v3410_v29, %v3156_v30 }
0x1b44   :  { %v3170_v35 = vadd.f32 %v3411_v32, %v3163_v34 }
0x1b46   :  { %v3172_v26 = vmul.f32 0.044715, %v3170_v35  ;;  %v3171_v39 = vmul.f32 0.5, %v3170_v35 }
0x1b48   :  { %v3173_v36 = vmul.f32 %v3172_v26, %v3170_v35 }
0x1b4a   :  { %v3174_v44 = vmul.f32 %v3173_v36, %v3170_v35 }
0x1b4c   :  { %v3175_v27 = vadd.f32 %v3174_v44, %v3170_v35 }
0x1b4e   :  { %v3176_v37 = vmul.f32 0.7978846, %v3175_v27 }
0x1b50   :  { %3989 = vtanh.f32 %v3176_v37 }
0x1b5a   :  { %v3990_v38 = vpop.eup %3989 }
0x1b5b   :  { %v3178_v16 = vadd.f32 1.0, %v3990_v38 }
0x1b5d   :  { %v3179_v15 = vmul.f32 %v3178_v16, %v3171_v39 }
0x1b5f   :  { %v3184_v24 = vpack.c.bf16 %v3179_v15, %v3179_v15 }
0x1b61   :  { %3804 = vmatmul.mubr.msk.bf16.vlgmr.msra.gmra.mrb[84].mxu0 %vm98_vm0, %v3184_v24 }
0x1c34   :  { %v3241_v41 = vpop.f32.mrb[84].mxu0 }
0x1c35   :  { %v3242_v42 = vadd.f32 %v3412_v12, %v3241_v41  ;;  %v3805_v43 = vpop.f32.mrb[85].mxu0 }
0x1c36   :  { %v3244_v45 = vpop.f32.mrb[86].mxu0 }
0x1c37   :  { %v3254_v46 = vrot.slane %v3242_v42, %v3253_v14  ;;  %v3806_v47 = vpop.f32.mrb[87].mxu0 }
0x1c39   :  { %v3255_v48 = vcombine.high %v3254_v46, %v3254_v46  ;;  %3416 = vst.sshfl [vmem:[#allocation3] sm:$0x1 pattern:$0x73625140] %v3254_v46 }
0x1c3b   :  { %3417 = vst.sshfl [vmem:[#allocation3 + $0x1] sm:$0x1 pattern:$0x73625140] %v3255_v48 }
0x1c3c   :  { %4004 = shalt.err (!%p4001_p4)
}
0x1c3d   :  { %s4005_s3 = scalar_lea.hbm %s4938_s27, 32 }
0x1c3e   :  { %p4006_p5 = scmp.ne.s32.totalorder %s4938_s27, %s4005_s3  ;;  %p4009_p6 = scmp.lt.u32.totalorder %s4005_s3, %s4938_s27 }
0x1c40   :  { %p4011_p7 = pnand %p4009_p6, %p4006_p5 }
0x1c42   :  { %4014 = shalt.err (!%p4011_p7)
}
0x1c43   :  { %s4030_s8 = smov 1  }
0x1c44   :  { %3285 = dma.vmem_to_hbm [thread:$0]  %s3280_s10, 32, %s4938_s27, [#allocation4], %s4992_s20, %s4992_s20, %s4030_s8  }
0x1c45   :  { %4015 = dma.done.wait [#allocation4], 32  }
0x1c46   :  { %4016 = vsyncadd [#allocation4], 4294967264 }
0x1c47   :  { %3289 = vsyncpa [#allocation4], 1 }

</bundles_post_ra>
